<compile_context>
chip_gen: v7x
topology: tpu7x:2x2x1
jax: 0.10.0
libtpu: 0.0.40
codegen_flags: <defaults>
</compile_context>

<pallas_src>
import functools

import jax
import jax.numpy as jnp
from jax.experimental import pallas as pl
from jax.experimental.pallas import tpu as pltpu


def _mish_kernel(x):
    """Mish with one transcendental (exp) + one approx reciprocal.

    mish(x) = x * tanh(softplus(x)).  With t = exp(min(x, 20)):
        tanh(log1p(t)) = t*(t+2) / (t*(t+2) + 2)
    For x > 20 (PyTorch softplus threshold) t saturates at e^20 and the ratio
    rounds to 1.0 in f32, so mish(x) == x, matching torch.nn.Mish.
    """
    t = jnp.exp(jnp.minimum(x, 20.0))
    u = t * (t + 2.0)
    d = u + 2.0
    r = pl.reciprocal(d, approx=True)
    r = r * (2.0 - d * r)  # one Newton step (VPU-only, free slot) -> ~f32 precision
    return x * u * r


def _mish_ref(x):
    """Exact Mish (PyTorch formulation) for the pure-JAX reference."""
    sp = jnp.where(x > 20.0, x, jnp.log1p(jnp.exp(jnp.minimum(x, 20.0))))
    return x * jnp.tanh(sp)


def _ae_kernel(matmul_dtype, x_ref, *refs):
    """refs = (w0, b0, w1, b1, ..., w5, b5, out_ref). Fused 6x (Mish -> Linear)."""
    out_ref = refs[-1]
    wb = refs[:-1]
    n_layers = len(wb) // 2

    h = x_ref[...].astype(jnp.float32)
    for i in range(n_layers):
        w = wb[2 * i][...]                       # already stored in matmul_dtype
        b = wb[2 * i + 1][...].astype(jnp.float32)
        h = _mish_kernel(h)
        h = jnp.dot(h.astype(matmul_dtype), w,
                    preferred_element_type=jnp.float32) + b
    out_ref[...] = h.astype(out_ref.dtype)


def _round_up(n, m):
    return ((n + m - 1) // m) * m


def vanilla_ae_forward(x, params, *, block_m=256, matmul_dtype=jnp.float32):
    """x: (B, input_dim) float32.  params: list of (w, b), w (in, out), b (1, out).

    block_m: batch-tile rows (rounded to a multiple of 8, clamped to the batch).
    matmul_dtype: jnp.bfloat16 is recommended on v6e/v7x (bf16 MXU operands,
    f32 accumulation); default f32 keeps exact nn.Linear numerics.
    Note: for tiny batches (a few rows) the plain JAX reference is faster than
    any kernel launch — batch requests before calling this.
    """
    B, D = x.shape
    out_dim = params[-1][0].shape[1]
    assert out_dim == D, "autoencoder output dim must equal input dim"

    # Tile the batch: multiple of 8 sublanes, no larger than the padded batch.
    block_m = max(8, min(_round_up(block_m, 8), _round_up(B, 8)))
    grid_m = pl.cdiv(B, block_m)
    padded_b = grid_m * block_m
    x_in = x if padded_b == B else jnp.pad(x, ((0, padded_b - B), (0, 0)))

    in_specs = [pl.BlockSpec((block_m, D), lambda i: (i, 0))]
    args = [x_in]
    for (w, b) in params:
        w = w.astype(matmul_dtype)  # pre-cast once in HBM, not per grid step
        # Weights/biases are grid-invariant (index_map always (0,0)) -> they stay
        # resident in VMEM across the batch tiles.
        in_specs.append(pl.BlockSpec(w.shape, lambda i: (0, 0)))
        in_specs.append(pl.BlockSpec(b.shape, lambda i: (0, 0)))
        args.append(w)
        args.append(b)

    out = pl.pallas_call(
        functools.partial(_ae_kernel, matmul_dtype),
        out_shape=jax.ShapeDtypeStruct((padded_b, D), x.dtype),
        grid_spec=pltpu.PrefetchScalarGridSpec(
            num_scalar_prefetch=0,
            grid=(grid_m,),
            in_specs=in_specs,
            out_specs=pl.BlockSpec((block_m, D), lambda i: (i, 0)),
        ),
        compiler_params=pltpu.CompilerParams(
            dimension_semantics=("parallel",),
        ),
    )(*args)

    return out if padded_b == B else out[:B]


def make_params(key, input_dim, down_dims):
    """Deterministic init mimicking nn.Linear default (uniform +-1/sqrt(fan_in))."""
    all_dims = [input_dim] + list(down_dims)
    in_out = list(zip(all_dims[:-1], all_dims[1:]))
    # down modules: Linear(in_dim, out_dim)
    layer_dims = [(i, o) for (i, o) in in_out]
    # up modules: Linear(in_dim, out_dim) for (out_dim, in_dim) in reversed(in_out)
    layer_dims += [(i, o) for (o, i) in reversed(in_out)]

    params = []
    for (fan_in, fan_out) in layer_dims:
        key, kw, kb = jax.random.split(key, 3)
        bound = 1.0 / jnp.sqrt(fan_in)
        w = jax.random.uniform(kw, (fan_in, fan_out), jnp.float32, -bound, bound)
        b = jax.random.uniform(kb, (1, fan_out), jnp.float32, -bound, bound)
        params.append((w, b))
    return params


def vanilla_ae_ref(x, params):
    """Pure-JAX reference of the same forward, for correctness checking."""
    h = x.astype(jnp.float32)
    for (w, b) in params:
        h = _mish_ref(h)
        h = h @ w + b
    return h


if __name__ == "__main__":
    # Small shapes consistent with the module: input_dim=128, down_dims=[64, 32, 16].
    # B is deliberately not a multiple of block_m to exercise the padded/ragged path,
    # and large enough that the grid has >1 batch tile (pipeline + megacore sharding).
    B = 500
    input_dim = 128
    down_dims = [64, 32, 16]

    key = jax.random.PRNGKey(0)
    key, kx = jax.random.split(key)
    x = jax.random.normal(kx, (B, input_dim), jnp.float32)

    params = make_params(key, input_dim, down_dims)

    out = vanilla_ae_forward(x, params, block_m=256)
    out = jax.block_until_ready(out)

    ref = vanilla_ae_ref(x, params)
    assert out.shape == (B, input_dim)
    # Tolerance covers the approx-reciprocal (+Newton) Mish vs exact log1p/tanh.
    assert jnp.allclose(out, ref, atol=2e-3, rtol=2e-3), (
        f"max abs err {jnp.max(jnp.abs(out - ref))}"
    )

    print("KERNEL_OK")
</pallas_src>

<mosaic_0001>
module attributes {stable_mosaic.version = 11 : i64} {
  func.func @_ae_kernel(%arg0: i32, %arg1: memref<256x128xf32, #tpu.memory_space<vmem>>, %arg2: memref<128x64xf32, #tpu.memory_space<vmem>>, %arg3: memref<1x64xf32, #tpu.memory_space<vmem>>, %arg4: memref<64x32xf32, #tpu.memory_space<vmem>>, %arg5: memref<1x32xf32, #tpu.memory_space<vmem>>, %arg6: memref<32x16xf32, #tpu.memory_space<vmem>>, %arg7: memref<1x16xf32, #tpu.memory_space<vmem>>, %arg8: memref<16x32xf32, #tpu.memory_space<vmem>>, %arg9: memref<1x32xf32, #tpu.memory_space<vmem>>, %arg10: memref<32x64xf32, #tpu.memory_space<vmem>>, %arg11: memref<1x64xf32, #tpu.memory_space<vmem>>, %arg12: memref<64x128xf32, #tpu.memory_space<vmem>>, %arg13: memref<1x128xf32, #tpu.memory_space<vmem>>, %arg14: memref<256x128xf32, #tpu.memory_space<vmem>>) attributes {dimension_semantics = [#tpu.dimension_semantics<parallel>], iteration_bounds = array<i64: 2>, scalar_prefetch = 0 : i64, scratch_operands = 0 : i64, tpu.core_type = #tpu.core_type<tc>, window_params = [{transform_indices = @transform_0, window_bounds = array<i64: 256, 128>}, {pipeline_mode = #tpu.pipeline_mode<synchronous>, transform_indices = @transform_1, window_bounds = array<i64: 128, 64>}, {pipeline_mode = #tpu.pipeline_mode<synchronous>, transform_indices = @transform_2, window_bounds = array<i64: 1, 64>}, {pipeline_mode = #tpu.pipeline_mode<synchronous>, transform_indices = @transform_3, window_bounds = array<i64: 64, 32>}, {pipeline_mode = #tpu.pipeline_mode<synchronous>, transform_indices = @transform_4, window_bounds = array<i64: 1, 32>}, {pipeline_mode = #tpu.pipeline_mode<synchronous>, transform_indices = @transform_5, window_bounds = array<i64: 32, 16>}, {pipeline_mode = #tpu.pipeline_mode<synchronous>, transform_indices = @transform_6, window_bounds = array<i64: 1, 16>}, {pipeline_mode = #tpu.pipeline_mode<synchronous>, transform_indices = @transform_7, window_bounds = array<i64: 16, 32>}, {pipeline_mode = #tpu.pipeline_mode<synchronous>, transform_indices = @transform_8, window_bounds = array<i64: 1, 32>}, {pipeline_mode = #tpu.pipeline_mode<synchronous>, transform_indices = @transform_9, window_bounds = array<i64: 32, 64>}, {pipeline_mode = #tpu.pipeline_mode<synchronous>, transform_indices = @transform_10, window_bounds = array<i64: 1, 64>}, {pipeline_mode = #tpu.pipeline_mode<synchronous>, transform_indices = @transform_11, window_bounds = array<i64: 64, 128>}, {pipeline_mode = #tpu.pipeline_mode<synchronous>, transform_indices = @transform_12, window_bounds = array<i64: 1, 128>}, {transform_indices = @transform_13, window_bounds = array<i64: 256, 128>}]} {
    %c0 = arith.constant 0 : index
    %c0_0 = arith.constant 0 : index
    %0 = vector.load %arg1[%c0, %c0_0] : memref<256x128xf32, #tpu.memory_space<vmem>>, vector<256x128xf32>
    %c0_1 = arith.constant 0 : index
    %c0_2 = arith.constant 0 : index
    %1 = vector.load %arg2[%c0_1, %c0_2] : memref<128x64xf32, #tpu.memory_space<vmem>>, vector<128x64xf32>
    %c0_3 = arith.constant 0 : index
    %c0_4 = arith.constant 0 : index
    %2 = vector.load %arg3[%c0_3, %c0_4] : memref<1x64xf32, #tpu.memory_space<vmem>>, vector<1x64xf32>
    %cst = arith.constant 2.000000e+01 : f32
    %3 = vector.broadcast %cst : f32 to vector<256x128xf32>
    %4 = arith.minimumf %0, %3 : vector<256x128xf32>
    %5 = math.exp %4 : vector<256x128xf32>
    %cst_5 = arith.constant 2.000000e+00 : f32
    %6 = vector.broadcast %cst_5 : f32 to vector<256x128xf32>
    %7 = arith.addf %5, %6 : vector<256x128xf32>
    %8 = arith.mulf %5, %7 : vector<256x128xf32>
    %cst_6 = arith.constant 2.000000e+00 : f32
    %9 = vector.broadcast %cst_6 : f32 to vector<256x128xf32>
    %10 = arith.addf %8, %9 : vector<256x128xf32>
    %11 = tpu.reciprocal %10 {approx = true} : vector<256x128xf32> -> vector<256x128xf32>
    %12 = arith.mulf %10, %11 : vector<256x128xf32>
    %cst_7 = arith.constant 2.000000e+00 : f32
    %13 = vector.broadcast %cst_7 : f32 to vector<256x128xf32>
    %14 = arith.subf %13, %12 : vector<256x128xf32>
    %15 = arith.mulf %11, %14 : vector<256x128xf32>
    %16 = arith.mulf %0, %8 : vector<256x128xf32>
    %17 = arith.mulf %16, %15 : vector<256x128xf32>
    %cst_8 = arith.constant dense<0.000000e+00> : vector<256x64xf32>
    %18 = tpu.matmul %17, %1, %cst_8 {dimension_numbers = #tpu.dot_dimension_numbers<[1], [0], [0], [1], [0, 0, 1, 1], [], []>} : vector<256x128xf32>, vector<128x64xf32>, vector<256x64xf32> -> vector<256x64xf32>
    %19 = vector.broadcast %2 : vector<1x64xf32> to vector<256x64xf32>
    %20 = arith.addf %18, %19 : vector<256x64xf32>
    %c0_9 = arith.constant 0 : index
    %c0_10 = arith.constant 0 : index
    %21 = vector.load %arg4[%c0_9, %c0_10] : memref<64x32xf32, #tpu.memory_space<vmem>>, vector<64x32xf32>
    %c0_11 = arith.constant 0 : index
    %c0_12 = arith.constant 0 : index
    %22 = vector.load %arg5[%c0_11, %c0_12] : memref<1x32xf32, #tpu.memory_space<vmem>>, vector<1x32xf32>
    %cst_13 = arith.constant 2.000000e+01 : f32
    %23 = vector.broadcast %cst_13 : f32 to vector<256x64xf32>
    %24 = arith.minimumf %20, %23 : vector<256x64xf32>
    %25 = math.exp %24 : vector<256x64xf32>
    %cst_14 = arith.constant 2.000000e+00 : f32
    %26 = vector.broadcast %cst_14 : f32 to vector<256x64xf32>
    %27 = arith.addf %25, %26 : vector<256x64xf32>
    %28 = arith.mulf %25, %27 : vector<256x64xf32>
    %cst_15 = arith.constant 2.000000e+00 : f32
    %29 = vector.broadcast %cst_15 : f32 to vector<256x64xf32>
    %30 = arith.addf %28, %29 : vector<256x64xf32>
    %31 = tpu.reciprocal %30 {approx = true} : vector<256x64xf32> -> vector<256x64xf32>
    %32 = arith.mulf %30, %31 : vector<256x64xf32>
    %cst_16 = arith.constant 2.000000e+00 : f32
    %33 = vector.broadcast %cst_16 : f32 to vector<256x64xf32>
    %34 = arith.subf %33, %32 : vector<256x64xf32>
    %35 = arith.mulf %31, %34 : vector<256x64xf32>
    %36 = arith.mulf %20, %28 : vector<256x64xf32>
    %37 = arith.mulf %36, %35 : vector<256x64xf32>
    %cst_17 = arith.constant dense<0.000000e+00> : vector<256x32xf32>
    %38 = tpu.matmul %37, %21, %cst_17 {dimension_numbers = #tpu.dot_dimension_numbers<[1], [0], [0], [1], [0, 0, 1, 1], [], []>} : vector<256x64xf32>, vector<64x32xf32>, vector<256x32xf32> -> vector<256x32xf32>
    %39 = vector.broadcast %22 : vector<1x32xf32> to vector<256x32xf32>
    %40 = arith.addf %38, %39 : vector<256x32xf32>
    %c0_18 = arith.constant 0 : index
    %c0_19 = arith.constant 0 : index
    %41 = vector.load %arg6[%c0_18, %c0_19] : memref<32x16xf32, #tpu.memory_space<vmem>>, vector<32x16xf32>
    %c0_20 = arith.constant 0 : index
    %c0_21 = arith.constant 0 : index
    %42 = vector.load %arg7[%c0_20, %c0_21] : memref<1x16xf32, #tpu.memory_space<vmem>>, vector<1x16xf32>
    %cst_22 = arith.constant 2.000000e+01 : f32
    %43 = vector.broadcast %cst_22 : f32 to vector<256x32xf32>
    %44 = arith.minimumf %40, %43 : vector<256x32xf32>
    %45 = math.exp %44 : vector<256x32xf32>
    %cst_23 = arith.constant 2.000000e+00 : f32
    %46 = vector.broadcast %cst_23 : f32 to vector<256x32xf32>
    %47 = arith.addf %45, %46 : vector<256x32xf32>
    %48 = arith.mulf %45, %47 : vector<256x32xf32>
    %cst_24 = arith.constant 2.000000e+00 : f32
    %49 = vector.broadcast %cst_24 : f32 to vector<256x32xf32>
    %50 = arith.addf %48, %49 : vector<256x32xf32>
    %51 = tpu.reciprocal %50 {approx = true} : vector<256x32xf32> -> vector<256x32xf32>
    %52 = arith.mulf %50, %51 : vector<256x32xf32>
    %cst_25 = arith.constant 2.000000e+00 : f32
    %53 = vector.broadcast %cst_25 : f32 to vector<256x32xf32>
    %54 = arith.subf %53, %52 : vector<256x32xf32>
    %55 = arith.mulf %51, %54 : vector<256x32xf32>
    %56 = arith.mulf %40, %48 : vector<256x32xf32>
    %57 = arith.mulf %56, %55 : vector<256x32xf32>
    %cst_26 = arith.constant dense<0.000000e+00> : vector<256x16xf32>
    %58 = tpu.matmul %57, %41, %cst_26 {dimension_numbers = #tpu.dot_dimension_numbers<[1], [0], [0], [1], [0, 0, 1, 1], [], []>} : vector<256x32xf32>, vector<32x16xf32>, vector<256x16xf32> -> vector<256x16xf32>
    %59 = vector.broadcast %42 : vector<1x16xf32> to vector<256x16xf32>
    %60 = arith.addf %58, %59 : vector<256x16xf32>
    %c0_27 = arith.constant 0 : index
    %c0_28 = arith.constant 0 : index
    %61 = vector.load %arg8[%c0_27, %c0_28] : memref<16x32xf32, #tpu.memory_space<vmem>>, vector<16x32xf32>
    %c0_29 = arith.constant 0 : index
    %c0_30 = arith.constant 0 : index
    %62 = vector.load %arg9[%c0_29, %c0_30] : memref<1x32xf32, #tpu.memory_space<vmem>>, vector<1x32xf32>
    %cst_31 = arith.constant 2.000000e+01 : f32
    %63 = vector.broadcast %cst_31 : f32 to vector<256x16xf32>
    %64 = arith.minimumf %60, %63 : vector<256x16xf32>
    %65 = math.exp %64 : vector<256x16xf32>
    %cst_32 = arith.constant 2.000000e+00 : f32
    %66 = vector.broadcast %cst_32 : f32 to vector<256x16xf32>
    %67 = arith.addf %65, %66 : vector<256x16xf32>
    %68 = arith.mulf %65, %67 : vector<256x16xf32>
    %cst_33 = arith.constant 2.000000e+00 : f32
    %69 = vector.broadcast %cst_33 : f32 to vector<256x16xf32>
    %70 = arith.addf %68, %69 : vector<256x16xf32>
    %71 = tpu.reciprocal %70 {approx = true} : vector<256x16xf32> -> vector<256x16xf32>
    %72 = arith.mulf %70, %71 : vector<256x16xf32>
    %cst_34 = arith.constant 2.000000e+00 : f32
    %73 = vector.broadcast %cst_34 : f32 to vector<256x16xf32>
    %74 = arith.subf %73, %72 : vector<256x16xf32>
    %75 = arith.mulf %71, %74 : vector<256x16xf32>
    %76 = arith.mulf %60, %68 : vector<256x16xf32>
    %77 = arith.mulf %76, %75 : vector<256x16xf32>
    %cst_35 = arith.constant dense<0.000000e+00> : vector<256x32xf32>
    %78 = tpu.matmul %77, %61, %cst_35 {dimension_numbers = #tpu.dot_dimension_numbers<[1], [0], [0], [1], [0, 0, 1, 1], [], []>} : vector<256x16xf32>, vector<16x32xf32>, vector<256x32xf32> -> vector<256x32xf32>
    %79 = vector.broadcast %62 : vector<1x32xf32> to vector<256x32xf32>
    %80 = arith.addf %78, %79 : vector<256x32xf32>
    %c0_36 = arith.constant 0 : index
    %c0_37 = arith.constant 0 : index
    %81 = vector.load %arg10[%c0_36, %c0_37] : memref<32x64xf32, #tpu.memory_space<vmem>>, vector<32x64xf32>
    %c0_38 = arith.constant 0 : index
    %c0_39 = arith.constant 0 : index
    %82 = vector.load %arg11[%c0_38, %c0_39] : memref<1x64xf32, #tpu.memory_space<vmem>>, vector<1x64xf32>
    %cst_40 = arith.constant 2.000000e+01 : f32
    %83 = vector.broadcast %cst_40 : f32 to vector<256x32xf32>
    %84 = arith.minimumf %80, %83 : vector<256x32xf32>
    %85 = math.exp %84 : vector<256x32xf32>
    %cst_41 = arith.constant 2.000000e+00 : f32
    %86 = vector.broadcast %cst_41 : f32 to vector<256x32xf32>
    %87 = arith.addf %85, %86 : vector<256x32xf32>
    %88 = arith.mulf %85, %87 : vector<256x32xf32>
    %cst_42 = arith.constant 2.000000e+00 : f32
    %89 = vector.broadcast %cst_42 : f32 to vector<256x32xf32>
    %90 = arith.addf %88, %89 : vector<256x32xf32>
    %91 = tpu.reciprocal %90 {approx = true} : vector<256x32xf32> -> vector<256x32xf32>
    %92 = arith.mulf %90, %91 : vector<256x32xf32>
    %cst_43 = arith.constant 2.000000e+00 : f32
    %93 = vector.broadcast %cst_43 : f32 to vector<256x32xf32>
    %94 = arith.subf %93, %92 : vector<256x32xf32>
    %95 = arith.mulf %91, %94 : vector<256x32xf32>
    %96 = arith.mulf %80, %88 : vector<256x32xf32>
    %97 = arith.mulf %96, %95 : vector<256x32xf32>
    %cst_44 = arith.constant dense<0.000000e+00> : vector<256x64xf32>
    %98 = tpu.matmul %97, %81, %cst_44 {dimension_numbers = #tpu.dot_dimension_numbers<[1], [0], [0], [1], [0, 0, 1, 1], [], []>} : vector<256x32xf32>, vector<32x64xf32>, vector<256x64xf32> -> vector<256x64xf32>
    %99 = vector.broadcast %82 : vector<1x64xf32> to vector<256x64xf32>
    %100 = arith.addf %98, %99 : vector<256x64xf32>
    %c0_45 = arith.constant 0 : index
    %c0_46 = arith.constant 0 : index
    %101 = vector.load %arg12[%c0_45, %c0_46] : memref<64x128xf32, #tpu.memory_space<vmem>>, vector<64x128xf32>
    %c0_47 = arith.constant 0 : index
    %c0_48 = arith.constant 0 : index
    %102 = vector.load %arg13[%c0_47, %c0_48] : memref<1x128xf32, #tpu.memory_space<vmem>>, vector<1x128xf32>
    %cst_49 = arith.constant 2.000000e+01 : f32
    %103 = vector.broadcast %cst_49 : f32 to vector<256x64xf32>
    %104 = arith.minimumf %100, %103 : vector<256x64xf32>
    %105 = math.exp %104 : vector<256x64xf32>
    %cst_50 = arith.constant 2.000000e+00 : f32
    %106 = vector.broadcast %cst_50 : f32 to vector<256x64xf32>
    %107 = arith.addf %105, %106 : vector<256x64xf32>
    %108 = arith.mulf %105, %107 : vector<256x64xf32>
    %cst_51 = arith.constant 2.000000e+00 : f32
    %109 = vector.broadcast %cst_51 : f32 to vector<256x64xf32>
    %110 = arith.addf %108, %109 : vector<256x64xf32>
    %111 = tpu.reciprocal %110 {approx = true} : vector<256x64xf32> -> vector<256x64xf32>
    %112 = arith.mulf %110, %111 : vector<256x64xf32>
    %cst_52 = arith.constant 2.000000e+00 : f32
    %113 = vector.broadcast %cst_52 : f32 to vector<256x64xf32>
    %114 = arith.subf %113, %112 : vector<256x64xf32>
    %115 = arith.mulf %111, %114 : vector<256x64xf32>
    %116 = arith.mulf %100, %108 : vector<256x64xf32>
    %117 = arith.mulf %116, %115 : vector<256x64xf32>
    %cst_53 = arith.constant dense<0.000000e+00> : vector<256x128xf32>
    %118 = tpu.matmul %117, %101, %cst_53 {dimension_numbers = #tpu.dot_dimension_numbers<[1], [0], [0], [1], [0, 0, 1, 1], [], []>} : vector<256x64xf32>, vector<64x128xf32>, vector<256x128xf32> -> vector<256x128xf32>
    %119 = vector.broadcast %102 : vector<1x128xf32> to vector<256x128xf32>
    %120 = arith.addf %118, %119 : vector<256x128xf32>
    %c0_54 = arith.constant 0 : index
    %c0_55 = arith.constant 0 : index
    %121 = vector.load %arg14[%c0_54, %c0_55] : memref<256x128xf32, #tpu.memory_space<vmem>>, vector<256x128xf32>
    tpu.vector_store %arg14[%c0_54, %c0_55], %120 {strides = array<i32>} : memref<256x128xf32, #tpu.memory_space<vmem>>, vector<256x128xf32>,
    return
  }
  func.func @transform_0(%arg0: i32) -> (i32, i32) {
    %c0_i32 = arith.constant 0 : i32
    %c0_i32_0 = arith.constant 0 : i32
    return %arg0, %c0_i32 : i32, i32
  }
  func.func @transform_1(%arg0: i32) -> (i32, i32) {
    %c0_i32 = arith.constant 0 : i32
    %c0_i32_0 = arith.constant 0 : i32
    %c0_i32_1 = arith.constant 0 : i32
    return %c0_i32, %c0_i32_0 : i32, i32
  }
  func.func @transform_2(%arg0: i32) -> (i32, i32) {
    %c0_i32 = arith.constant 0 : i32
    %c0_i32_0 = arith.constant 0 : i32
    %c0_i32_1 = arith.constant 0 : i32
    return %c0_i32, %c0_i32_0 : i32, i32
  }
  func.func @transform_3(%arg0: i32) -> (i32, i32) {
    %c0_i32 = arith.constant 0 : i32
    %c0_i32_0 = arith.constant 0 : i32
    %c0_i32_1 = arith.constant 0 : i32
    return %c0_i32, %c0_i32_0 : i32, i32
  }
  func.func @transform_4(%arg0: i32) -> (i32, i32) {
    %c0_i32 = arith.constant 0 : i32
    %c0_i32_0 = arith.constant 0 : i32
    %c0_i32_1 = arith.constant 0 : i32
    return %c0_i32, %c0_i32_0 : i32, i32
  }
  func.func @transform_5(%arg0: i32) -> (i32, i32) {
    %c0_i32 = arith.constant 0 : i32
    %c0_i32_0 = arith.constant 0 : i32
    %c0_i32_1 = arith.constant 0 : i32
    return %c0_i32, %c0_i32_0 : i32, i32
  }
  func.func @transform_6(%arg0: i32) -> (i32, i32) {
    %c0_i32 = arith.constant 0 : i32
    %c0_i32_0 = arith.constant 0 : i32
    %c0_i32_1 = arith.constant 0 : i32
    return %c0_i32, %c0_i32_0 : i32, i32
  }
  func.func @transform_7(%arg0: i32) -> (i32, i32) {
    %c0_i32 = arith.constant 0 : i32
    %c0_i32_0 = arith.constant 0 : i32
    %c0_i32_1 = arith.constant 0 : i32
    return %c0_i32, %c0_i32_0 : i32, i32
  }
  func.func @transform_8(%arg0: i32) -> (i32, i32) {
    %c0_i32 = arith.constant 0 : i32
    %c0_i32_0 = arith.constant 0 : i32
    %c0_i32_1 = arith.constant 0 : i32
    return %c0_i32, %c0_i32_0 : i32, i32
  }
  func.func @transform_9(%arg0: i32) -> (i32, i32) {
    %c0_i32 = arith.constant 0 : i32
    %c0_i32_0 = arith.constant 0 : i32
    %c0_i32_1 = arith.constant 0 : i32
    return %c0_i32, %c0_i32_0 : i32, i32
  }
  func.func @transform_10(%arg0: i32) -> (i32, i32) {
    %c0_i32 = arith.constant 0 : i32
    %c0_i32_0 = arith.constant 0 : i32
    %c0_i32_1 = arith.constant 0 : i32
    return %c0_i32, %c0_i32_0 : i32, i32
  }
  func.func @transform_11(%arg0: i32) -> (i32, i32) {
    %c0_i32 = arith.constant 0 : i32
    %c0_i32_0 = arith.constant 0 : i32
    %c0_i32_1 = arith.constant 0 : i32
    return %c0_i32, %c0_i32_0 : i32, i32
  }
  func.func @transform_12(%arg0: i32) -> (i32, i32) {
    %c0_i32 = arith.constant 0 : i32
    %c0_i32_0 = arith.constant 0 : i32
    %c0_i32_1 = arith.constant 0 : i32
    return %c0_i32, %c0_i32_0 : i32, i32
  }
  func.func @transform_13(%arg0: i32) -> (i32, i32) {
    %c0_i32 = arith.constant 0 : i32
    %c0_i32_0 = arith.constant 0 : i32
    return %arg0, %c0_i32 : i32, i32
  }
}

</mosaic_0001>

<bundles_post_ra>
// kernel: tpu_custom_call.1
= control target key start
LH: loop header
LB: loop body
LE: loop exit
PB: predicated region body
PF: predicated region fallthrough
CT: control target
= control target key end

     0   :  { %18 = vsyncpa [#allocation3], 0  ;;  %s9368_s0 = inlined_call_operand.hbm [shape: f32[512,128], index: 0, kind: input, shape index: {}]   ;;  %s9369_s1 = inlined_call_operand.vmem [shape: f32[128,64], index: 1, kind: input, shape index: {}]   ;;  %s9370_s2 = inlined_call_operand.vmem [shape: f32[1,64], index: 2, kind: input, shape index: {}]   ;;  %s9371_s3 = inlined_call_operand.vmem [shape: f32[64,32], index: 3, kind: input, shape index: {}]   ;;  %s9372_s4 = inlined_call_operand.vmem [shape: f32[1,32], index: 4, kind: input, shape index: {}]   ;;  %s9373_s5 = inlined_call_operand.vmem [shape: f32[32,16], index: 5, kind: input, shape index: {}]   ;;  %s9374_s6 = inlined_call_operand.vmem [shape: f32[1,16], index: 6, kind: input, shape index: {}]   ;;  %s9375_s7 = inlined_call_operand.vmem [shape: f32[16,32], index: 7, kind: input, shape index: {}]   ;;  %s9376_s8 = inlined_call_operand.vmem [shape: f32[1,32], index: 8, kind: input, shape index: {}]   ;;  %s9377_s9 = inlined_call_operand.vmem [shape: f32[32,64], index: 9, kind: input, shape index: {}]   ;;  %s9378_s10 = inlined_call_operand.vmem [shape: f32[1,64], index: 10, kind: input, shape index: {}]   ;;  %s9379_s11 = inlined_call_operand.vmem [shape: f32[64,128], index: 11, kind: input, shape index: {}]   ;;  %s9380_s12 = inlined_call_operand.vmem [shape: f32[1,128], index: 12, kind: input, shape index: {}]   ;;  %s9381_s13 = inlined_call_operand.hbm [shape: f32[512,128], index: 13, kind: output, shape index: {}]  }
   0x1   :  { %20 = vsyncpa [#allocation3 + $0x1], 0 }
   0x2   :  { %21 = vsyncpa [#allocation4], 0 }
   0x3   :  { %23 = vsyncpa [#allocation4 + $0x1], 0  ;;  %s6699_s25 = smov 0   ;;  %s6701_s26 = smov 0  }
   0x4   :  { %s6703_s27 = smov 0   ;;  %s6705_s28 = smov 0  }
   0x5 LB: > { %9394 = sst [smem:[#allocation8_spill]] %s6609_s25  ;;  %s6720_s29 = sadd.s32 4294967295, %s6621_s28   ;;  %s6621_s28 = sphi %s6705_s28, %s9421_s28   ;;  %s6617_s27 = sphi %s6703_s27, %s9423_s27   ;;  %s6613_s26 = sphi %s6701_s26, %s9425_s26   ;;  %s6609_s25 = sphi %s6699_s25, %s9424_s25  }
   0x6   : > { %9395 = sst [smem:[#allocation9_spill]] %s6617_s27  ;;  %s4833_s30 = sadd.s32 4294967294, %s6621_s28  }
   0x7   : > { %s6724_s14 = sadd.s32 1, %s6621_s28   ;;  %s36_s15 = sadd.s32 1, %s6617_s27 }
   0x8   : > { %9396 = sst [smem:[#allocation10_spill]] %s6724_s14  ;;  %s33_s16 = ssub.s32 %s6621_s28, %s6724_s14 }
   0x9   : > { %p43_p0 = scmp.ne.s32.totalorder %s6617_s27, %s6613_s26  ;;  %p34_p1 = scmp.eq.s32.totalorder %s33_s16, 0 }
   0xa   : > { %p44_p2 = scmp.eq.s32.totalorder %s6621_s28, 0  ;;  %p49_p3 = scmp.ne.s32.totalorder %s6613_s26, %s6609_s25 }
   0xb   : > { %p50_p4 = scmp.eq.s32.totalorder %s6720_s29, 0  ;;  %p325_p7 = scmp.eq.s32.totalorder %s6720_s29, 1 }
   0xc   : > { %s6736_s17 = scalar_select %p34_p1, %s6617_s27, %s36_s15  }
   0xd   : > { %p6738_p5 = por %p44_p2, %p43_p0  ;;  %p6742_p6 = por %p50_p4, %p49_p3 }
   0xe   : > { %9397 = sst [smem:[#allocation11_spill]] %s6736_s17  ;;  %p331_p8 = scmp.eq.s32.totalorder %s4833_s30, 1 }
   0xf   : > { %p5719_p10 = scmp.lt.s32.totalorder %s6621_s28, 2  ;;  %p6749_p11 = por %p325_p7, %p43_p0 }
  0x10   : > { %p6753_p12 = por %p331_p8, %p49_p3  ;;  %s387_s22 = sand.u32 1, %s6617_s27  }
  0x11   : > { %s9400_s20 = scalar_select %p6749_p11, 1, 0 }
  0x12   : > { %s9401_s21 = scalar_select %p6753_p12, 1, 0 }
  0x13   : > { %s5013_s23 = sshll.u32 %s6621_s28, 12  ;;  %s4836_s24 = sshll.u32 %s387_s22, 8 }
  0x14   : > { %s6762_s17 = scalar_lea.hbm %s9368_s0, %s5013_s23  ;;  %s391_s30 = scalar_lea.vmem [#allocation2], %s4836_s24 }
  0x15   : > { %s398_s14 = sshll.u32 %s391_s30, 4  ;;  %p6766_p13 = pnand %p5719_p10, %p6738_p5  ;;  %s6770_s14 = int_to_ptr.vmem [resolvable:$true] %s398_s14 }
  0x16   : > { %s6772_s27 = scalar_lea.sflag [#allocation3], %s387_s22  ;;  %s6525_s15 = scalar_lea.hbm %s6762_s17, 4096 }
  0x17   : > { %p6526_p0 = scmp.ne.s32.totalorder %s6762_s17, %s6525_s15  ;;  %p6527_p1 = pneg %p6766_p13 }
  0x18   : > { %s6530_s24 = scalar_lea.hbm %s9368_s0, 8192  ;;  %p6531_p4 = scmp.lt.u32.totalorder %s6762_s17, %s9368_s0 }
  0x19   : > { %p6528_p2 = pnand %p6527_p1, %p6526_p0  ;;  %p6532_p5 = scmp.lt.u32.totalorder %s6530_s24, %s6525_s15 }
  0x1a   : > { %p6534_p8 = scmp.lt.u32.totalorder %s6525_s15, %s6762_s17 }
  0x1b   : > { %p6529_p3 = pneg %p6528_p2  ;;  %p6533_p7 = por %p6532_p5, %p6531_p4 }
  0x1d   : > { %p6535_p10 = por %p6534_p8, %p6533_p7 }
  0x1f   : > { %p6536_p9 = pnand %p6535_p10, %p6529_p3 }
  0x21   : > { %6539 = shalt.err (!%p6536_p9)
}
  0x22   : > { %s6540_s22 = scalar_lea.vmem %s6770_s14, 4096  ;;  %s6623_s23 = smov [#allocation2]  }
  0x23   : > { %p6541_p0 = scmp.ne.s32.totalorder %s6770_s14, %s6540_s22  ;;  %s6545_s18 = sshll.u32 %s6623_s23, 4  ;;  %s6546_s18 = int_to_ptr.vmem [resolvable:$false] %s6545_s18 }
  0x24   : > { %s6547_s16 = scalar_lea.vmem %s6546_s18, 8192  ;;  %p6548_p11 = scmp.lt.s32.totalorder %s6770_s14, %s6546_s18 }
  0x25   : > { %p6543_p2 = pnand %p6541_p0, %p6527_p1  ;;  %p6549_p4 = scmp.lt.s32.totalorder %s6547_s16, %s6540_s22 }
  0x27   : > { %p6544_p12 = pneg %p6543_p2  ;;  %p6550_p5 = por %p6549_p4, %p6548_p11 }
  0x29   : > { %p6551_p7 = pnand %p6550_p5, %p6544_p12 }
  0x2b   : > { %6554 = shalt.err (!%p6551_p7)
}
  0x2c   : > { %s6624_s15 = smov 128   ;;  %s6625_s24 = smov 8  }
  0x2d   : > { %5714 = dma.hbm_to_vmem [thread:$0]  (!%p6766_p13), %s6762_s17, 4096, %s6770_s14, %s6772_s27, %s6624_s15, %s6624_s15, %s6625_s24  }
  0x2e   : > { %p4839_p9 = scmp.ge.s32.totalorder %s6621_s28, 1  ;;  %p406_p1 = scmp.lt.s32.totalorder %s6621_s28, 3 }
  0x30   : > { %p407_p3 = pnand %p4839_p9, %p406_p1 }
  0x32   : > { %410 = sbr.rel (%p407_p3) target bundleno = 1743 (0x6cf), region = 72 }
  0x39   : > { %s6803_s30 = sand.u32 1, %s6613_s26  }
  0x3a   : > { %s9387_s22 = sshll.u32 %s6803_s30, 8  ;;  %s413_s23 = scalar_lea.sflag [#allocation3], %s6803_s30 }
  0x3b   : > { %s6809_s18 = scalar_lea.vmem [#allocation2], %s9387_s22 }
  0x3c   : > { %6600 = dma.done.wait (%p6742_p6), %s413_s23, 4096  }
  0x3d   : > { %6602 = vsyncadd (%p6742_p6), %s413_s23, 4294963200  ;;  %v493_v0 = vld [vmem:[%s9369_s1] sm:$0xff]  ;;  %v494_v1 = vld [vmem:[%s9369_s1 + $0x8] sm:$0xff]  ;;  %vm1524_vm0 = vcmask 523264   ;;  %vm2241_vm1 = vcmask 261120   ;;  %vm2956_vm2 = vcmask 130048  }
  0x3e   : > { %v495_v2 = vld [vmem:[%s9369_s1 + $0x10] sm:$0xff]  ;;  %v5621_v3 = vpack.c.bf16 %v494_v1, %v493_v0  ;;  %v496_v4 = vld [vmem:[%s9369_s1 + $0x18] sm:$0xff]  ;;  %v497_v6 = vld [vmem:[%s9369_s1 + $0x20] sm:$0xff]  ;;  %s9416_s25 = sshll.u32 %s6803_s30, 8  ;;  %p9417_p11 = scmp.ne.s32.totalorder %s9400_s20, 0 }
  0x3f   : > { %v5625_v5 = vpack.c.bf16 %v496_v4, %v495_v2  ;;  %v498_v7 = vld [vmem:[%s9369_s1 + $0x28] sm:$0xff]  ;;  %v499_v8 = vld [vmem:[%s9369_s1 + $0x30] sm:$0xff]  ;;  %v500_v10 = vld [vmem:[%s9369_s1 + $0x38] sm:$0xff]  ;;  %s9253_s27 = scalar_lea.vmem [#allocation5], %s9416_s25  ;;  %s6626_s24 = smov [#allocation5]  }
  0x40   : > { %5622 = vmatprep.subr.bf16.mxu0 %v5621_v3  ;;  %v5629_v9 = vpack.c.bf16 %v498_v7, %v497_v6  ;;  %v6840_v11 = vld [vmem:[%s6809_s18] sm:$0xff]  ;;  %v6843_v12 = vld [vmem:[%s6809_s18 + $0x8] sm:$0xff]  ;;  %v6854_v17 = vld [vmem:[%s6809_s18 + $0x10] sm:$0xff]  ;;  %v5633_v30 = vpack.c.bf16 %v500_v10, %v499_v8  ;;  %s4760_s14 = sshll.u32 %s9253_s27, 4  ;;  %s6559_s19 = sshll.u32 %s6626_s24, 4  ;;  %s9321_s14 = int_to_ptr.vmem [resolvable:$true] %s4760_s14  ;;  %s6560_s19 = int_to_ptr.vmem [resolvable:$false] %s6559_s19 }
  0x41   : > { %5624 = vmatpush3.bf16.msra.mxu0 %v5621_v3  ;;  %v501_v13 = vld [vmem:[%s9369_s1 + $0x40] sm:$0xff]  ;;  %v502_v14 = vld [vmem:[%s9369_s1 + $0x48] sm:$0xff]  ;;  %v510_v15 = vmin.f32 %v6840_v11, 20.0  ;;  %v511_v16 = vmin.f32 %v6843_v12, 20.0  ;;  %v6857_v18 = vld [vmem:[%s6809_s18 + $0x18] sm:$0xff]  ;;  %v512_v20 = vmin.f32 %v6854_v17, 20.0  ;;  %p6562_p8 = scmp.lt.s32.totalorder %s9321_s14, %s6560_s19 }
  0x42   : > { %5626 = vmatprep.subr.bf16.mxu0 %v5625_v5  ;;  %v6860_v19 = vld [vmem:[%s6809_s18 + $0x20] sm:$0xff]  ;;  %v513_v21 = vmin.f32 %v6857_v18, 20.0  ;;  %v6866_v23 = vld [vmem:[%s6809_s18 + $0x28] sm:$0xff]  ;;  %v6869_v24 = vld [vmem:[%s6809_s18 + $0x30] sm:$0xff]  ;;  %v5637_v40 = vpack.c.bf16 %v502_v14, %v501_v13  ;;  %s6555_s15 = scalar_lea.vmem %s9321_s14, 4096  ;;  %s6561_s23 = scalar_lea.vmem %s6560_s19, 8192 }
  0x43   : > { %v514_v22 = vmin.f32 %v6860_v19, 20.0  ;;  %v6872_v25 = vld [vmem:[%s6809_s18 + $0x38] sm:$0xff]  ;;  %v542_v26 = vmul.f32 1.442695, %v510_v15  ;;  %v544_v27 = vmul.f32 1.442695, %v511_v16  ;;  %p6556_p6 = scmp.ne.s32.totalorder %s9321_s14, %s6555_s15  ;;  %p6563_p10 = scmp.lt.s32.totalorder %s6561_s23, %s6555_s15 }
  0x44   : > { %v515_v28 = vmin.f32 %v6866_v23, 20.0  ;;  %v516_v29 = vmin.f32 %v6869_v24, 20.0  ;;  %v503_v31 = vld [vmem:[%s9369_s1 + $0x50] sm:$0xff]  ;;  %v504_v32 = vld [vmem:[%s9369_s1 + $0x58] sm:$0xff]  ;;  %v546_v33 = vmul.f32 1.442695, %v512_v20 }
  0x45   : > { %5628 = vmatpush3.bf16.msra.mxu0 %v5625_v5  ;;  %v548_v34 = vmul.f32 1.442695, %v513_v21  ;;  %v505_v35 = vld [vmem:[%s9369_s1 + $0x60] sm:$0xff]  ;;  %v506_v36 = vld [vmem:[%s9369_s1 + $0x68] sm:$0xff]  ;;  %5757 = vpow2.f32 %v542_v26  ;;  %v550_v37 = vmul.f32 1.442695, %v514_v22  ;;  %v6910_v51 = vpack.c.bf16 %v504_v32, %v503_v31  ;;  %p6557_p12 = pnand %p6556_p6, %p9417_p11  ;;  %p6564_p0 = por %p6563_p10, %p6562_p8 }
  0x46   : > { %5630 = vmatprep.subr.bf16.mxu0 %v5629_v9  ;;  %v517_v38 = vmin.f32 %v6872_v25, 20.0  ;;  %v6890_v39 = vld [vmem:[%s6809_s18 + $0x40] sm:$0xff]  ;;  %5759 = vpow2.f32 %v544_v27  ;;  %v552_v41 = vmul.f32 1.442695, %v515_v28  ;;  %v6894_v43 = vld [vmem:[%s6809_s18 + $0x48] sm:$0xff]  ;;  %v6897_v44 = vld [vmem:[%s6809_s18 + $0x50] sm:$0xff]  ;;  %v6924_v60 = vpack.c.bf16 %v506_v36, %v505_v35 }
  0x47   : > { %v518_v42 = vmin.f32 %v6890_v39, 20.0  ;;  %v6900_v45 = vld [vmem:[%s6809_s18 + $0x58] sm:$0xff]  ;;  %5761 = vpow2.f32 %v546_v33  ;;  %v554_v46 = vmul.f32 1.442695, %v516_v29  ;;  %v519_v47 = vmin.f32 %v6894_v43, 20.0  ;;  %v6905_v49 = vld [vmem:[%s6809_s18 + $0x60] sm:$0xff]  ;;  %p6558_p13 = pneg %p6557_p12 }
  0x48   : > { %v520_v48 = vmin.f32 %v6897_v44, 20.0  ;;  %v6908_v50 = vld [vmem:[%s6809_s18 + $0x68] sm:$0xff]  ;;  %5763 = vpow2.f32 %v548_v34  ;;  %v556_v52 = vmul.f32 1.442695, %v517_v38  ;;  %v521_v53 = vmin.f32 %v6900_v45, 20.0  ;;  %v6914_v54 = vld [vmem:[%s6809_s18 + $0x70] sm:$0xff] }
  0x49   : > { %5632 = vmatpush3.bf16.msra.mxu0 %v5629_v9  ;;  %v6917_v55 = vld [vmem:[%s6809_s18 + $0x78] sm:$0xff]  ;;  %5765 = vpow2.f32 %v550_v37  ;;  %v558_v56 = vmul.f32 1.442695, %v518_v42  ;;  %v522_v57 = vmin.f32 %v6905_v49, 20.0  ;;  %v523_v58 = vmin.f32 %v6908_v50, 20.0  ;;  %v6922_v59 = vld [vmem:[%s6809_s18 + $0x80] sm:$0xff]  ;;  %p6565_p2 = pnand %p6564_p0, %p6558_p13 }
  0x4a   : > { %5634 = vmatprep.subr.bf16.mxu0 %v5633_v30  ;;  %5767 = vpow2.f32 %v552_v41  ;;  %v560_v61 = vmul.f32 1.442695, %v519_v47  ;;  %v524_v62 = vmin.f32 %v6914_v54, 20.0  ;;  %v6928_v63 = vld [vmem:[%s6809_s18 + $0x88] sm:$0xff]  ;;  %v562_v0 = vmul.f32 1.442695, %v520_v48 }
  0x4b   : > { %5769 = vpow2.f32 %v554_v46  ;;  %v525_v1 = vmin.f32 %v6917_v55, 20.0  ;;  %v526_v2 = vmin.f32 %v6922_v59, 20.0  ;;  %v6933_v3 = vld [vmem:[%s6809_s18 + $0x90] sm:$0xff]  ;;  %v6936_v4 = vld [vmem:[%s6809_s18 + $0x98] sm:$0xff]  ;;  %v564_v6 = vmul.f32 1.442695, %v521_v53 }
  0x4c   : > { %9403 = vst [vmem:[#allocation12_spill] sm:$0xff] %v6933_v3  ;;  %9404 = vst [vmem:[#allocation13_spill] sm:$0xff] %v6936_v4  ;;  %v507_v5 = vld [vmem:[%s9369_s1 + $0x70] sm:$0xff]  ;;  %5771 = vpow2.f32 %v556_v52  ;;  %v527_v7 = vmin.f32 %v6928_v63, 20.0  ;;  %v528_v8 = vmin.f32 %v6933_v3, 20.0  ;;  %v6944_v9 = vld [vmem:[%s6809_s18 + $0xa0] sm:$0xff] }
  0x4d   : > { %5636 = vmatpush3.bf16.msra.mxu0 %v5633_v30  ;;  %9405 = vst [vmem:[#allocation14_spill] sm:$0xff] %v6944_v9  ;;  %v6947_v10 = vld [vmem:[%s6809_s18 + $0xa8] sm:$0xff]  ;;  %5773 = vpow2.f32 %v558_v56  ;;  %v566_v13 = vmul.f32 1.442695, %v522_v57  ;;  %v568_v14 = vmul.f32 1.442695, %v523_v58 }
  0x4e   : > { %5638 = vmatprep.subr.bf16.mxu0 %v5637_v40  ;;  %9406 = vst [vmem:[#allocation15_spill] sm:$0xff] %v6947_v10  ;;  %v529_v15 = vmin.f32 %v6936_v4, 20.0  ;;  %v6951_v16 = vld [vmem:[%s6809_s18 + $0xb0] sm:$0xff]  ;;  %v508_v20 = vld [vmem:[%s9369_s1 + $0x78] sm:$0xff]  ;;  %5775 = vpow2.f32 %v560_v61  ;;  %v570_v21 = vmul.f32 1.442695, %v524_v62 }
  0x4f   : > { %9407 = vst [vmem:[#allocation16_spill] sm:$0xff] %v6951_v16  ;;  %v6956_v22 = vmul.f32 1.442695, %v525_v1  ;;  %v530_v26 = vmin.f32 %v6944_v9, 20.0  ;;  %v5758_v27 = vpop.eup %5757  ;;  %5777 = vpow2.f32 %v562_v0  ;;  %v6959_v28 = vmul.f32 1.442695, %v526_v2 }
  0x50   : > { %v531_v29 = vmin.f32 %v6947_v10, 20.0  ;;  %v532_v30 = vmin.f32 %v6951_v16, 20.0  ;;  %v6964_v31 = vld [vmem:[%s6809_s18 + $0xb8] sm:$0xff]  ;;  %v5760_v32 = vpop.eup %5759  ;;  %v606_v33 = vadd.f32 2.0, %v5758_v27  ;;  %5779 = vpow2.f32 %v564_v6  ;;  %v6985_v2 = vld [vmem:[%s6809_s18 + $0xc0] sm:$0xff] }
  0x51   : > { %5640 = vmatpush3.bf16.msra.mxu0 %v5637_v40  ;;  %9408 = vst [vmem:[#allocation17_spill] sm:$0xff] %v6964_v31  ;;  %v6967_v34 = vmul.f32 1.442695, %v527_v7  ;;  %v6969_v35 = vmul.f32 1.442695, %v528_v8  ;;  %v5762_v36 = vpop.eup %5761  ;;  %v5649_v37 = vpack.c.bf16 %v508_v20, %v507_v5  ;;  %v607_v38 = vadd.f32 2.0, %v5760_v32 }
  0x52   : > { %5642 = vmatprep.subr.bf16.mxu0 %v6910_v51  ;;  %v6971_v40 = vmul.f32 1.442695, %v529_v15  ;;  %v6973_v41 = vmul.f32 1.442695, %v530_v26  ;;  %v5764_v42 = vpop.eup %5763  ;;  %v638_v46 = vmul.f32 %v5758_v27, %v606_v33  ;;  %v608_v47 = vadd.f32 2.0, %v5762_v36 }
  0x53   : > { %5781 = vpow2.f32 %v566_v13  ;;  %v533_v48 = vmin.f32 %v6964_v31, 20.0  ;;  %v5766_v52 = vpop.eup %5765  ;;  %v639_v53 = vmul.f32 %v5760_v32, %v607_v38  ;;  %v609_v56 = vadd.f32 2.0, %v5764_v42 }
  0x54   : > { %v6977_v57 = vmul.f32 1.442695, %v531_v29  ;;  %v6979_v58 = vmul.f32 1.442695, %v532_v30  ;;  %v5768_v61 = vpop.eup %5767  ;;  %v6982_v62 = vadd.f32 2.0, %v638_v46  ;;  %v640_v0 = vmul.f32 %v5762_v36, %v608_v47 }
  0x55   : > { %5644 = vmatpush3.bf16.msra.mxu0 %v6910_v51  ;;  %v610_v1 = vadd.f32 2.0, %v5766_v52  ;;  %5783 = vpow2.f32 %v568_v14  ;;  %v5770_v5 = vpop.eup %5769  ;;  %v6987_v6 = vadd.f32 2.0, %v639_v53  ;;  %v641_v51 = vmul.f32 %v5764_v42, %v609_v56 }
  0x56   : > { %5646 = vmatprep.subr.bf16.mxu0 %v6924_v60  ;;  %v611_v7 = vadd.f32 2.0, %v5768_v61  ;;  %5785 = vpow2.f32 %v570_v21  ;;  %v5772_v8 = vpop.eup %5771  ;;  %v6990_v13 = vadd.f32 2.0, %v640_v0  ;;  %v6992_v20 = vmul.f32 1.442695, %v533_v48 }
  0x57   : > { %5787 = vrcp.f32 %v6982_v62  ;;  %v642_v15 = vmul.f32 %v5766_v52, %v610_v1  ;;  %v5774_v26 = vpop.eup %5773  ;;  %v6996_v14 = vadd.f32 2.0, %v641_v51  ;;  %v7000_v21 = vmul.f32 %v638_v46, %v6840_v11 }
  0x58   : > { %5789 = vrcp.f32 %v6987_v6  ;;  %v643_v27 = vmul.f32 %v5768_v61, %v611_v7  ;;  %v5776_v30 = vpop.eup %5775  ;;  %v612_v33 = vadd.f32 2.0, %v5770_v5  ;;  %v613_v42 = vadd.f32 2.0, %v5772_v8 }
  0x59   : > { %5648 = vmatpush3.bf16.msra.mxu0 %v6924_v60  ;;  %5791 = vrcp.f32 %v6990_v13  ;;  %v7003_v32 = vadd.f32 2.0, %v642_v15  ;;  %v5778_v36 = vpop.eup %5777  ;;  %v7006_v60 = vmul.f32 %v639_v53, %v6843_v12  ;;  %v614_v11 = vadd.f32 2.0, %v5774_v26 }
  0x5a   : > { %5650 = vmatprep.subr.bf16.mxu0 %v5649_v37  ;;  %5793 = vrcp.f32 %v6996_v14  ;;  %v7009_v38 = vadd.f32 2.0, %v643_v27  ;;  %v5780_v47 = vpop.eup %5779  ;;  %v644_v48 = vmul.f32 %v5770_v5, %v612_v33  ;;  %v615_v46 = vadd.f32 2.0, %v5776_v30 }
  0x5b   : > { %5795 = vrcp.f32 %v7003_v32  ;;  %v645_v52 = vmul.f32 %v5772_v8, %v613_v42  ;;  %v616_v56 = vadd.f32 2.0, %v5778_v36  ;;  %v617_v61 = vadd.f32 2.0, %v5780_v47 }
  0x5c   : > { %5797 = vrcp.f32 %v7009_v38  ;;  %v7014_v12 = vmul.f32 %v640_v0, %v6854_v17  ;;  %v7016_v53 = vadd.f32 2.0, %v644_v48  ;;  %v646_v7 = vmul.f32 %v5774_v26, %v614_v11 }
  0x5d   : > { %5652 = vmatpush3.bf16.msra.mxu0 %v5649_v37  ;;  %v5782_v1 = vpop.eup %5781  ;;  %v647_v29 = vmul.f32 %v5776_v30, %v615_v46  ;;  %v7019_v31 = vmul.f32 %v641_v51, %v6857_v18  ;;  %v7021_v5 = vadd.f32 2.0, %v645_v52  ;;  %v648_v33 = vmul.f32 %v5778_v36, %v616_v56 }
  0x5e   : > { %v7023_v37 = vmul.f32 %v5780_v47, %v617_v61  ;;  %v7026_v8 = vmul.f32 %v642_v15, %v6860_v19  ;;  %5799 = vrcp.f32 %v7016_v53  ;;  %v7029_v17 = vadd.f32 2.0, %v646_v7 }
  0x5f   : > { %v5784_v16 = vpop.eup %5783  ;;  %v7031_v0 = vadd.f32 2.0, %v647_v29  ;;  %v7034_v30 = vmul.f32 %v643_v27, %v6866_v23  ;;  %v7037_v18 = vmul.f32 %v644_v48, %v6869_v24  ;;  %5801 = vrcp.f32 %v7021_v5 }
  0x60   : > { %v5786_v26 = vpop.eup %5785  ;;  %v7040_v51 = vadd.f32 2.0, %v648_v33  ;;  %v7043_v19 = vmul.f32 %v645_v52, %v6872_v25  ;;  %5803 = vrcp.f32 %v7029_v17  ;;  %v7047_v15 = vadd.f32 2.0, %v7023_v37 }
  0x61   : > { %v5788_v36 = vpop.eup %5787  ;;  %v618_v42 = vadd.f32 2.0, %v5782_v1  ;;  %v7051_v24 = vmul.f32 %v646_v7, %v6890_v39  ;;  %5805 = vrcp.f32 %v7031_v0  ;;  %v619_v27 = vadd.f32 2.0, %v5784_v16 }
  0x62   : > { %v5790_v47 = vpop.eup %5789  ;;  %v734_v23 = vmul.f32 %v5788_v36, %v6982_v62  ;;  %v7056_v25 = vmul.f32 %v647_v29, %v6894_v43  ;;  %5807 = vrcp.f32 %v7040_v51  ;;  %v620_v43 = vadd.f32 2.0, %v5786_v26 }
  0x63   : > { %v5792_v48 = vpop.eup %5791  ;;  %v735_v11 = vmul.f32 %v5790_v47, %v6987_v6  ;;  %v7059_v46 = vmul.f32 %v5782_v1, %v618_v42  ;;  %5809 = vrcp.f32 %v7047_v15  ;;  %v7063_v39 = vmul.f32 %v5784_v16, %v619_v27 }
  0x64   : > { %v5794_v52 = vpop.eup %5793  ;;  %v766_v56 = vsub.f32 2.0, %v734_v23  ;;  %v736_v62 = vmul.f32 %v5792_v48, %v6990_v13 }
  0x65   : > { %v5796_v61 = vpop.eup %5795  ;;  %v767_v7 = vsub.f32 2.0, %v735_v11  ;;  %v737_v10 = vmul.f32 %v5794_v52, %v6996_v14  ;;  %v7067_v6 = vadd.f32 2.0, %v7059_v46  ;;  %v7071_v23 = vadd.f32 2.0, %v7063_v39 }
  0x66   : > { %v5798_v29 = vpop.eup %5797  ;;  %v798_v9 = vmul.f32 %v5788_v36, %v766_v56  ;;  %v768_v1 = vsub.f32 2.0, %v736_v62  ;;  %v738_v42 = vmul.f32 %v5796_v61, %v7003_v32  ;;  %v7079_v62 = vmul.f32 %v648_v33, %v6897_v44 }
  0x67   : > { %v799_v13 = vmul.f32 %v5790_v47, %v767_v7  ;;  %v769_v4 = vsub.f32 2.0, %v737_v10  ;;  %v739_v16 = vmul.f32 %v5798_v29, %v7009_v38  ;;  %5811 = vrcp.f32 %v7067_v6 }
  0x68   : > { %v862_v14 = vmul.f32 %v7000_v21, %v798_v9  ;;  %v800_v27 = vmul.f32 %v5792_v48, %v768_v1  ;;  %v770_v11 = vsub.f32 2.0, %v738_v42  ;;  %5813 = vrcp.f32 %v7071_v23  ;;  %v5800_v3 = vpop.eup %5799 }
  0x69   : > { %v863_v36 = vmul.f32 %v7006_v60, %v799_v13  ;;  %v801_v56 = vmul.f32 %v5794_v52, %v769_v4  ;;  %v771_v32 = vsub.f32 2.0, %v739_v16  ;;  %v5802_v47 = vpop.eup %5801  ;;  %v740_v7 = vmul.f32 %v5800_v3, %v7016_v53 }
  0x6a   : > { %5281 = vmatprep.mubr.f32.mxu0 %v862_v14  ;;  %v864_v10 = vmul.f32 %v7014_v12, %v800_v27  ;;  %v802_v38 = vmul.f32 %v5796_v61, %v770_v11  ;;  %v7083_v9 = vmul.f32 %v5786_v26, %v620_v43  ;;  %v5804_v21 = vpop.eup %5803  ;;  %v741_v4 = vmul.f32 %v5802_v47, %v7021_v5  ;;  %v7109_v27 = vld [vmem:[%s6809_s18 + $0xc8] sm:$0xff] }
  0x6b   : > { %5282 = vmatmul.mubr.f32.vlgmr.msra.gmra.mrb[0].mxu0 %v863_v36  ;;  %v865_v48 = vmul.f32 %v7019_v31, %v801_v56  ;;  %v803_v1 = vmul.f32 %v5798_v29, %v771_v32  ;;  %5815 = vpow2.f32 %v6956_v22  ;;  %v5806_v44 = vpop.eup %5805  ;;  %v772_v33 = vsub.f32 2.0, %v740_v7 }
  0x6c   : > { %5284 = vmatprep.mubr.f32.mxu0 %v864_v10  ;;  %v866_v60 = vmul.f32 %v7026_v8, %v802_v38  ;;  %v742_v12 = vmul.f32 %v5804_v21, %v7029_v17  ;;  %v7091_v53 = vadd.f32 2.0, %v7083_v9  ;;  %v5808_v26 = vpop.eup %5807  ;;  %v773_v61 = vsub.f32 2.0, %v741_v4 }
  0x6d   : > { %v867_v52 = vmul.f32 %v7034_v30, %v803_v1  ;;  %v743_v31 = vmul.f32 %v5806_v44, %v7031_v0  ;;  %v7097_v5 = vmul.f32 %v7023_v37, %v6900_v45  ;;  %v5810_v22 = vpop.eup %5809  ;;  %v804_v43 = vmul.f32 %v5800_v3, %v772_v33 }
  0x6e   : > { %v774_v29 = vsub.f32 2.0, %v742_v12  ;;  %v744_v8 = vmul.f32 %v5808_v26, %v7040_v51  ;;  %5817 = vrcp.f32 %v7091_v53  ;;  %v805_v17 = vmul.f32 %v5802_v47, %v773_v61 }
  0x6f   : > { %5285 = vmatmul.mubr.f32.gmra.mrb[2].mxu0 %v865_v48  ;;  %v775_v42 = vsub.f32 2.0, %v743_v31  ;;  %v745_v30 = vmul.f32 %v5810_v22, %v7047_v15  ;;  %5819 = vpow2.f32 %v6959_v28  ;;  %v868_v45 = vmul.f32 %v7037_v18, %v804_v43 }
  0x70   : > { %5287 = vmatprep.mubr.f32.mxu0 %v866_v60  ;;  %v806_v37 = vmul.f32 %v5804_v21, %v774_v29  ;;  %v776_v0 = vsub.f32 2.0, %v744_v8  ;;  %5821 = vpow2.f32 %v6967_v34  ;;  %v9409_v16 = vmin.f32 %v6985_v2, 20.0  ;;  %v7116_v34 = vld [vmem:[%s6809_s18 + $0xd0] sm:$0xff] }
  0x71   : > { %v5812_v3 = vpop.eup %5811  ;;  %v807_v51 = vmul.f32 %v5806_v44, %v775_v42  ;;  %v777_v13 = vsub.f32 2.0, %v745_v30  ;;  %5823 = vpow2.f32 %v6969_v35  ;;  %v842_v18 = vmul.f32 %v7059_v46, %v6905_v49 }
  0x72   : > { %v590_v14 = vmul.f32 1.442695, %v9409_v16  ;;  %v5814_v15 = vpop.eup %5813  ;;  %v808_v28 = vmul.f32 %v5808_v26, %v776_v0  ;;  %v746_v11 = vmul.f32 %v5812_v3, %v7067_v6  ;;  %5825 = vpow2.f32 %v6971_v40  ;;  %v7127_v40 = vld [vmem:[%s6809_s18 + $0xd8] sm:$0xff] }
  0x73   : > { %5288 = vmatmul.mubr.f32.gmra.mrb[4].mxu0 %v867_v52  ;;  %v869_v35 = vmul.f32 %v7043_v19, %v805_v17  ;;  %v747_v36 = vmul.f32 %v5814_v15, %v7071_v23  ;;  %v843_v56 = vmul.f32 %v7063_v39, %v6908_v50  ;;  %5827 = vpow2.f32 %v6973_v41  ;;  %v7133_v39 = vld [vmem:[%s6809_s18 + $0xe0] sm:$0xff] }
  0x74   : > { %5290 = vmatprep.mubr.f32.mxu0 %v868_v45  ;;  %v870_v6 = vmul.f32 %v7051_v24, %v806_v37  ;;  %v778_v32 = vsub.f32 2.0, %v746_v11  ;;  %5829 = vpow2.f32 %v6977_v57  ;;  %v535_v49 = vmin.f32 %v7109_v27, 20.0 }
  0x75   : > { %v5816_v46 = vpop.eup %5815  ;;  %v871_v19 = vmul.f32 %v7056_v25, %v807_v51  ;;  %v809_v47 = vmul.f32 %v5810_v22, %v777_v13  ;;  %5831 = vpow2.f32 %v6979_v58  ;;  %v536_v50 = vmin.f32 %v7116_v34, 20.0  ;;  %v7151_v13 = vld [vmem:[%s6809_s18 + $0xe8] sm:$0xff] }
  0x76   : > { %v872_v41 = vmul.f32 %v7079_v62, %v808_v28  ;;  %v621_v24 = vadd.f32 2.0, %v5816_v46  ;;  %5833 = vpow2.f32 %v6992_v20  ;;  %v592_v57 = vmul.f32 1.442695, %v535_v49 }
  0x77   : > { %5291 = vmatmul.mubr.f32.gmra.mrb[6].mxu0 %v869_v35  ;;  %v779_v23 = vsub.f32 2.0, %v747_v36  ;;  %5835 = vpow2.f32 %v590_v14  ;;  %v594_v10 = vmul.f32 1.442695, %v536_v50  ;;  %v537_v38 = vmin.f32 %v7127_v40, 20.0 }
  0x78   : > { %v5818_v25 = vpop.eup %5817  ;;  %5293 = vmatprep.mubr.f32.mxu0 %v870_v6  ;;  %v810_v7 = vmul.f32 %v5812_v3, %v778_v32  ;;  %v653_v58 = vmul.f32 %v5816_v46, %v621_v24  ;;  %5837 = vpow2.f32 %v592_v57  ;;  %v538_v21 = vmin.f32 %v7133_v39, 20.0  ;;  %v7165_v46 = vld [vmem:[%s6809_s18 + $0xf0] sm:$0xff] }
  0x79   : > { %v5820_v48 = vpop.eup %5819  ;;  %v748_v62 = vmul.f32 %v5818_v25, %v7091_v53  ;;  %v844_v20 = vmul.f32 %v7083_v9, %v6914_v54  ;;  %5839 = vpow2.f32 %v594_v10  ;;  %v596_v1 = vmul.f32 1.442695, %v537_v38 }
  0x7a   : > { %v5822_v4 = vpop.eup %5821  ;;  %v873_v44 = vmul.f32 %v7097_v5, %v809_v47  ;;  %v7143_v60 = vadd.f32 2.0, %v653_v58  ;;  %v622_v33 = vadd.f32 2.0, %v5820_v48  ;;  %v598_v12 = vmul.f32 1.442695, %v538_v21 }
  0x7b   : > { %v5824_v26 = vpop.eup %5823  ;;  %5294 = vmatmul.mubr.f32.gmra.mrb[8].mxu0 %v871_v19  ;;  %v811_v52 = vmul.f32 %v5814_v15, %v779_v23  ;;  %v780_v61 = vsub.f32 2.0, %v748_v62  ;;  %v623_v31 = vadd.f32 2.0, %v5822_v4  ;;  %5841 = vpow2.f32 %v596_v1 }
  0x7c   : > { %v5826_v22 = vpop.eup %5825  ;;  %5296 = vmatprep.mubr.f32.mxu0 %v872_v41  ;;  %v874_v53 = vmul.f32 %v842_v18, %v810_v7  ;;  %5843 = vrcp.f32 %v7143_v60  ;;  %v654_v54 = vmul.f32 %v5820_v48, %v622_v33  ;;  %v624_v9 = vadd.f32 2.0, %v5824_v26 }
  0x7d   : > { %v5828_v43 = vpop.eup %5827  ;;  %v812_v5 = vmul.f32 %v5818_v25, %v780_v61  ;;  %v655_v29 = vmul.f32 %v5822_v4, %v623_v31  ;;  %v625_v8 = vadd.f32 2.0, %v5826_v22  ;;  %5845 = vpow2.f32 %v598_v12  ;;  %v9410_v12 = vld [vmem:[#allocation12_spill] sm:$0xff]  ;;  %v9411_v31 = vld [vmem:[#allocation13_spill] sm:$0xff] }
  0x7e   : > { %v5830_v17 = vpop.eup %5829  ;;  %v7146_v42 = vadd.f32 2.0, %v654_v54  ;;  %v656_v30 = vmul.f32 %v5824_v26, %v624_v9  ;;  %v626_v45 = vadd.f32 2.0, %v5828_v43  ;;  %v875_v0 = vmul.f32 %v843_v56, %v811_v52 }
  0x7f   : > { %v5832_v37 = vpop.eup %5831  ;;  %5297 = vmatmul.mubr.f32.gmra.mrb[10].mxu0 %v873_v44  ;;  %v7148_v3 = vadd.f32 2.0, %v655_v29  ;;  %v657_v51 = vmul.f32 %v5826_v22, %v625_v8  ;;  %v876_v14 = vmul.f32 %v844_v20, %v812_v5  ;;  %v845_v18 = vmul.f32 %v653_v58, %v6917_v55 }
  0x80   : > { %v5834_v16 = vpop.eup %5833  ;;  %5299 = vmatprep.mubr.f32.mxu0 %v874_v53  ;;  %5847 = vrcp.f32 %v7146_v42  ;;  %v7154_v15 = vadd.f32 2.0, %v656_v30  ;;  %v658_v28 = vmul.f32 %v5828_v43, %v626_v45  ;;  %v627_v36 = vadd.f32 2.0, %v5830_v17  ;;  %v9412_v53 = vld [vmem:[#allocation14_spill] sm:$0xff] }
  0x81   : > { %v5836_v11 = vpop.eup %5835  ;;  %5849 = vrcp.f32 %v7148_v3  ;;  %v7158_v35 = vadd.f32 2.0, %v657_v51  ;;  %v628_v32 = vadd.f32 2.0, %v5832_v37  ;;  %v539_v49 = vmin.f32 %v7151_v13, 20.0 }
  0x82   : > { %v5838_v56 = vpop.eup %5837  ;;  %5851 = vrcp.f32 %v7154_v15  ;;  %v7161_v6 = vadd.f32 2.0, %v658_v28  ;;  %v659_v55 = vmul.f32 %v5830_v17, %v627_v36  ;;  %v629_v47 = vadd.f32 2.0, %v5834_v16 }
  0x83   : > { %v5840_v19 = vpop.eup %5839  ;;  %5300 = vmatmul.mubr.f32.gmra.mrb[12].mxu0 %v875_v0  ;;  %5853 = vrcp.f32 %v7158_v35  ;;  %v630_v50 = vadd.f32 2.0, %v5836_v11  ;;  %v660_v41 = vmul.f32 %v5832_v37, %v628_v32  ;;  %v631_v24 = vadd.f32 2.0, %v5838_v56 }
  0x84   : > { %5302 = vmatprep.mubr.f32.mxu0 %v876_v14  ;;  %5855 = vrcp.f32 %v7161_v6  ;;  %v632_v57 = vadd.f32 2.0, %v5840_v19  ;;  %v7169_v10 = vadd.f32 2.0, %v659_v55  ;;  %v7171_v38 = vmul.f32 %v5834_v16, %v629_v47 }
  0x85   : > { %v5842_v23 = vpop.eup %5841  ;;  %v7173_v25 = vmul.f32 %v5836_v11, %v630_v50  ;;  %v540_v7 = vmin.f32 %v7165_v46, 20.0  ;;  %v846_v21 = vmul.f32 %v654_v54, %v6922_v59  ;;  %v7177_v48 = vadd.f32 2.0, %v660_v41 }
  0x86   : > { %v5844_v58 = vpop.eup %5843  ;;  %v7179_v62 = vmul.f32 %v5838_v56, %v631_v24  ;;  %v7181_v20 = vmul.f32 %v5840_v19, %v632_v57  ;;  %v847_v44 = vmul.f32 %v655_v29, %v6928_v63  ;;  %5857 = vrcp.f32 %v7169_v10  ;;  %v9413_v56 = vld [vmem:[#allocation15_spill] sm:$0xff]  ;;  %v9414_v24 = vld [vmem:[#allocation16_spill] sm:$0xff] }
  0x87   : > { %v5846_v1 = vpop.eup %5845  ;;  %v749_v4 = vmul.f32 %v5844_v58, %v7143_v60  ;;  %v7187_v33 = vadd.f32 2.0, %v7171_v38  ;;  %v848_v26 = vmul.f32 %v656_v30, %v9410_v12  ;;  %5859 = vrcp.f32 %v7177_v48 }
  0x88   : > { %v7192_v59 = vadd.f32 2.0, %v7173_v25  ;;  %v7195_v52 = vadd.f32 2.0, %v7179_v62  ;;  %v849_v60 = vmul.f32 %v657_v51, %v9411_v31  ;;  %v7200_v63 = vadd.f32 2.0, %v7181_v20 }
  0x89   : > { %v781_v61 = vsub.f32 2.0, %v749_v4  ;;  %5861 = vrcp.f32 %v7187_v33  ;;  %v850_v54 = vmul.f32 %v658_v28, %v9412_v53  ;;  %v633_v9 = vadd.f32 2.0, %v5842_v23 }
  0x8a   : > { %v5848_v22 = vpop.eup %5847  ;;  %5863 = vrcp.f32 %v7192_v59  ;;  %v634_v43 = vadd.f32 2.0, %v5846_v1  ;;  %v600_v17 = vmul.f32 1.442695, %v539_v49  ;;  %v851_v32 = vmul.f32 %v659_v55, %v9413_v56 }
  0x8b   : > { %v5850_v5 = vpop.eup %5849  ;;  %v813_v29 = vmul.f32 %v5844_v58, %v781_v61  ;;  %v750_v8 = vmul.f32 %v5848_v22, %v7146_v42  ;;  %5865 = vrcp.f32 %v7195_v52  ;;  %v7208_v37 = vmul.f32 %v5842_v23, %v633_v9  ;;  %v7223_v23 = vld [vmem:[%s6809_s18 + $0xf8] sm:$0xff]  ;;  %s5014_s18 = sshll.u32 %s6720_s29, 12  ;;  %s4747_s29 = scalar_lea.sflag [#allocation4], %s6803_s30 }
  0x8c   : > { %v5852_v30 = vpop.eup %5851  ;;  %v751_v45 = vmul.f32 %v5850_v5, %v7148_v3  ;;  %5867 = vrcp.f32 %v7200_v63  ;;  %v7210_v0 = vmul.f32 %v5846_v1, %v634_v43  ;;  %v852_v57 = vmul.f32 %v660_v41, %v9414_v24  ;;  %s9319_s16 = scalar_lea.hbm %s9381_s13, %s5014_s18 }
  0x8d   : > { %v5854_v51 = vpop.eup %5853  ;;  %v877_v16 = vmul.f32 %v845_v18, %v813_v29  ;;  %v782_v14 = vsub.f32 2.0, %v750_v8  ;;  %v752_v28 = vmul.f32 %v5852_v30, %v7154_v15  ;;  %5869 = vpow2.f32 %v600_v17 }
  0x8e   : > { %v5856_v42 = vpop.eup %5855  ;;  %v783_v11 = vsub.f32 2.0, %v751_v45  ;;  %v753_v36 = vmul.f32 %v5854_v51, %v7158_v35  ;;  %v7216_v3 = vadd.f32 2.0, %v7208_v37  ;;  %v698_v18 = vadd.f32 2.0, %v7210_v0 }
  0x8f   : > { %5303 = vmatmul.mubr.f32.gmra.mrb[14].mxu0 %v877_v16  ;;  %v814_v49 = vmul.f32 %v5848_v22, %v782_v14  ;;  %v784_v19 = vsub.f32 2.0, %v752_v28  ;;  %v754_v47 = vmul.f32 %v5856_v42, %v7161_v6  ;;  %v602_v31 = vmul.f32 1.442695, %v540_v7 }
  0x90   : > { %v815_v50 = vmul.f32 %v5850_v5, %v783_v11  ;;  %v785_v15 = vsub.f32 2.0, %v753_v36  ;;  %5871 = vrcp.f32 %v7216_v3  ;;  %v5858_v35 = vpop.eup %5857  ;;  %v541_v43 = vmin.f32 %v7223_v23, 20.0 }
  0x91   : > { %v878_v55 = vmul.f32 %v846_v21, %v814_v49  ;;  %v816_v58 = vmul.f32 %v5852_v30, %v784_v19  ;;  %v786_v1 = vsub.f32 2.0, %v754_v47  ;;  %5873 = vrcp.f32 %v698_v18  ;;  %v5860_v4 = vpop.eup %5859 }
  0x92   : > { %v879_v12 = vmul.f32 %v847_v44, %v815_v50  ;;  %v817_v61 = vmul.f32 %v5854_v51, %v785_v15  ;;  %v755_v6 = vmul.f32 %v5858_v35, %v7169_v10  ;;  %v756_v9 = vmul.f32 %v5860_v4, %v7177_v48  ;;  %v9415_v48 = vld [vmem:[#allocation17_spill] sm:$0xff] }
  0x93   : > { %v5862_v22 = vpop.eup %5861  ;;  %5305 = vmatprep.mubr.f32.mxu0 %v878_v55  ;;  %v880_v41 = vmul.f32 %v848_v26, %v816_v58  ;;  %v818_v53 = vmul.f32 %v5856_v42, %v786_v1  ;;  %5875 = vpow2.f32 %v602_v31  ;;  %v604_v30 = vmul.f32 1.442695, %v541_v43 }
  0x94   : > { %v5864_v21 = vpop.eup %5863  ;;  %5306 = vmatmul.mubr.f32.gmra.mrb[16].mxu0 %v879_v12  ;;  %v881_v5 = vmul.f32 %v849_v60, %v817_v61  ;;  %v787_v29 = vsub.f32 2.0, %v755_v6  ;;  %v757_v44 = vmul.f32 %v5862_v22, %v7187_v33  ;;  %v788_v17 = vsub.f32 2.0, %v756_v9 }
  0x95   : > { %v5866_v8 = vpop.eup %5865  ;;  %5308 = vmatprep.mubr.f32.mxu0 %v880_v41  ;;  %v882_v10 = vmul.f32 %v850_v54, %v818_v53  ;;  %v758_v7 = vmul.f32 %v5864_v21, %v7192_v59  ;;  %v853_v16 = vmul.f32 %v7171_v38, %v9415_v48  ;;  %5877 = vpow2.f32 %v604_v30 }
  0x96   : > { %v5868_v26 = vpop.eup %5867  ;;  %v819_v45 = vmul.f32 %v5858_v35, %v787_v29  ;;  %v789_v51 = vsub.f32 2.0, %v757_v44  ;;  %v759_v14 = vmul.f32 %v5866_v8, %v7195_v52  ;;  %v820_v28 = vmul.f32 %v5860_v4, %v788_v17 }
  0x97   : > { %v5870_v60 = vpop.eup %5869  ;;  %v790_v42 = vsub.f32 2.0, %v758_v7  ;;  %v760_v33 = vmul.f32 %v5868_v26, %v7200_v63  ;;  %v854_v19 = vmul.f32 %v7173_v25, %v6985_v2  ;;  %v855_v15 = vmul.f32 %v7179_v62, %v7109_v27 }
  0x98   : > { %5309 = vmatmul.mubr.f32.gmra.mrb[18].mxu0 %v881_v5  ;;  %v883_v54 = vmul.f32 %v851_v32, %v819_v45  ;;  %v821_v11 = vmul.f32 %v5862_v22, %v789_v51  ;;  %v791_v36 = vsub.f32 2.0, %v759_v14  ;;  %v635_v59 = vadd.f32 2.0, %v5870_v60  ;;  %v1126_v14 = vld [vmem:[%s9371_s3 + $0x8] sm:$0xff] }
  0x99   : > { %5311 = vmatprep.mubr.f32.mxu0 %v882_v10  ;;  %v884_v56 = vmul.f32 %v852_v57, %v820_v28  ;;  %v822_v49 = vmul.f32 %v5864_v21, %v790_v42  ;;  %v792_v38 = vsub.f32 2.0, %v760_v33  ;;  %v856_v2 = vmul.f32 %v7181_v20, %v7116_v34  ;;  %v1129_v42 = vld [vmem:[%s9371_s3 + $0x20] sm:$0xff]  ;;  %v1130_v33 = vld [vmem:[%s9371_s3 + $0x28] sm:$0xff] }
  0x9a   : > { %v5872_v47 = vpop.eup %5871  ;;  %v667_v52 = vmul.f32 %v5870_v60, %v635_v59  ;;  %v885_v32 = vmul.f32 %v853_v16, %v821_v11  ;;  %v823_v24 = vmul.f32 %v5866_v8, %v791_v36  ;;  %v858_v31 = vmul.f32 %v7210_v0, %v7133_v39  ;;  %v1131_v11 = vld [vmem:[%s9371_s3 + $0x30] sm:$0xff]  ;;  %v1132_v36 = vld [vmem:[%s9371_s3 + $0x38] sm:$0xff] }
  0x9b   : > { %v5874_v50 = vpop.eup %5873  ;;  %v761_v63 = vmul.f32 %v5872_v47, %v7216_v3  ;;  %v886_v57 = vmul.f32 %v854_v19, %v822_v49  ;;  %v824_v58 = vmul.f32 %v5868_v26, %v792_v38  ;;  %v857_v3 = vmul.f32 %v7208_v37, %v7127_v40 }
  0x9c   : > { %5312 = vmatmul.mubr.f32.gmra.mrb[20].mxu0 %v883_v54  ;;  %v762_v35 = vmul.f32 %v5874_v50, %v698_v18  ;;  %v699_v55 = vadd.f32 2.0, %v667_v52  ;;  %v887_v27 = vmul.f32 %v855_v15, %v823_v24  ;;  %v859_v5 = vmul.f32 %v667_v52, %v7151_v13  ;;  %v1125_v13 = vld [vmem:[%s9371_s3] sm:$0xff] }
  0x9d   : > { %5314 = vmatprep.mubr.f32.mxu0 %v884_v56  ;;  %v793_v25 = vsub.f32 2.0, %v761_v63  ;;  %v5876_v1 = vpop.eup %5875  ;;  %v888_v18 = vmul.f32 %v856_v2, %v824_v58  ;;  %v5653_v60 = vpack.c.bf16 %v1126_v14, %v1125_v13  ;;  %v5661_v54 = vpack.c.bf16 %v1130_v33, %v1129_v42  ;;  %v7277_v56 = vld [vmem:[%s9370_s2] ss:$0 sm:$0xff] }
  0x9e   : > { %v794_v4 = vsub.f32 2.0, %v762_v35  ;;  %5879 = vrcp.f32 %v699_v55  ;;  %v636_v12 = vadd.f32 2.0, %v5876_v1  ;;  %v5665_v59 = vpack.c.bf16 %v1132_v36, %v1131_v11 }
  0x9f   : > { %v825_v62 = vmul.f32 %v5872_v47, %v793_v25  ;;  %v5878_v61 = vpop.eup %5877  ;;  %5654 = vmatprep.subr.bf16.mxu1 %v5653_v60 }
  0xa0   : > { %5315 = vmatmul.mubr.f32.gmra.mrb[22].mxu0 %v885_v32  ;;  %v826_v6 = vmul.f32 %v5874_v50, %v794_v4  ;;  %v668_v22 = vmul.f32 %v5876_v1, %v636_v12  ;;  %v637_v34 = vadd.f32 2.0, %v5878_v61  ;;  %5656 = vmatpush3.bf16.msra.mxu1 %v5653_v60 }
  0xa1   : > { %5317 = vmatprep.mubr.f32.mxu0 %v886_v57  ;;  %v889_v41 = vmul.f32 %v857_v3, %v825_v62 }
  0xa2   : > { %v700_v20 = vadd.f32 2.0, %v668_v22  ;;  %v669_v53 = vmul.f32 %v5878_v61, %v637_v34  ;;  %v890_v9 = vmul.f32 %v858_v31, %v826_v6  ;;  %v860_v17 = vmul.f32 %v668_v22, %v7165_v46  ;;  %v1127_v46 = vld [vmem:[%s9371_s3 + $0x10] sm:$0xff]  ;;  %v1847_v6 = vld [vmem:[%s9373_s5 + $0x8] sm:$0xff] }
  0xa4   : > { %5318 = vmatmul.mubr.f32.gmra.mrb[24].mxu0 %v887_v27  ;;  %5881 = vrcp.f32 %v700_v20  ;;  %v701_v43 = vadd.f32 2.0, %v669_v53  ;;  %v861_v45 = vmul.f32 %v669_v53, %v7223_v23  ;;  %v1128_v23 = vld [vmem:[%s9371_s3 + $0x18] sm:$0xff] }
  0xa5   : > { %5320 = vmatprep.mubr.f32.mxu0 %v888_v18  ;;  %v5657_v28 = vpack.c.bf16 %v1128_v23, %v1127_v46  ;;  %v1846_v18 = vld [vmem:[%s9373_s5] sm:$0xff] }
  0xa6   : > { %5883 = vrcp.f32 %v701_v43 }
  0xa7   : > { %5658 = vmatprep.subr.bf16.mxu1 %v5657_v28 }
  0xa8   : > { %v5880_v21 = vpop.eup %5879  ;;  %5321 = vmatmul.mubr.f32.gmra.mrb[26].mxu0 %v889_v41  ;;  %5660 = vmatpush3.bf16.msra.mxu1 %v5657_v28 }
  0xa9   : > { %5323 = vmatprep.mubr.f32.mxu0 %v890_v9  ;;  %v763_v40 = vmul.f32 %v5880_v21, %v699_v55  ;;  %5662 = vmatprep.subr.bf16.mxu1 %v5661_v54 }
  0xab   : > { %v795_v37 = vsub.f32 2.0, %v763_v40 }
  0xac   : > { %5664 = vmatpush3.bf16.msra.mxu1 %v5661_v54 }
  0xad   : > { %v827_v29 = vmul.f32 %v5880_v21, %v795_v37  ;;  %5666 = vmatprep.subr.bf16.mxu1 %v5665_v59 }
  0xae   : > { %v5882_v39 = vpop.eup %5881 }
  0xaf   : > { %v891_v0 = vmul.f32 %v859_v5, %v827_v29  ;;  %v764_v44 = vmul.f32 %v5882_v39, %v700_v20  ;;  %v7312_v20 = vpack.c.bf16 %v1847_v6, %v1846_v18 }
  0xb0   : > { %v5884_v8 = vpop.eup %5883  ;;  %5668 = vmatpush3.bf16.msra.mxu1 %v5665_v59 }
  0xb1   : > { %5324 = vmatmul.mubr.f32.gmra.mrb[28].mxu0 %v891_v0  ;;  %v796_v10 = vsub.f32 2.0, %v764_v44  ;;  %v765_v7 = vmul.f32 %v5884_v8, %v701_v43  ;;  %5670 = vmatprep.subr.bf16.mxu1 %v7312_v20 }
  0xb3   : > { %v828_v30 = vmul.f32 %v5882_v39, %v796_v10  ;;  %v797_v26 = vsub.f32 2.0, %v765_v7 }
  0xb5   : > { %v892_v51 = vmul.f32 %v860_v17, %v828_v30  ;;  %v829_v48 = vmul.f32 %v5884_v8, %v797_v26 }
  0xb7   : > { %5326 = vmatprep.mubr.f32.mxu0 %v892_v51  ;;  %v893_v16 = vmul.f32 %v861_v45, %v829_v48 }
  0xb9   : > { %5327 = vmatmul.mubr.f32.gmra.mrb[30].mxu0 %v893_v16 }
 0x13e   : > { %v5283_v49 = vpop.f32.mrb[0].mxu0 }
 0x13f   : > { %v7280_v19 = vadd.f32 %v5283_v49, %v7277_v56  ;;  %v966_v38 = vpop.f32.mrb[1].mxu0 }
 0x140   : > { %v7283_v47 = vadd.f32 %v7277_v56, %v966_v38 }
 0x141   : > { %v1135_v52 = vmin.f32 %v7280_v19, 20.0 }
 0x142   : > { %v1134_v50 = vmin.f32 %v7283_v47, 20.0  ;;  %v5286_v15 = vpop.f32.mrb[2].mxu0 }
 0x143   : > { %v1168_v63 = vmul.f32 1.442695, %v1135_v52  ;;  %v7288_v32 = vadd.f32 %v5286_v15, %v7277_v56  ;;  %v976_v24 = vpop.f32.mrb[3].mxu0 }
 0x144   : > { %v1166_v35 = vmul.f32 1.442695, %v1134_v50  ;;  %v7291_v55 = vadd.f32 %v7277_v56, %v976_v24 }
 0x145   : > { %5885 = vpow2.f32 %v1168_v63  ;;  %v1137_v57 = vmin.f32 %v7288_v32, 20.0 }
 0x146   : > { %5887 = vpow2.f32 %v1166_v35  ;;  %v1136_v58 = vmin.f32 %v7291_v55, 20.0  ;;  %v5289_v2 = vpop.f32.mrb[4].mxu0 }
 0x147   : > { %v1172_v25 = vmul.f32 1.442695, %v1137_v57  ;;  %v7296_v1 = vadd.f32 %v5289_v2, %v7277_v56  ;;  %v986_v4 = vpop.f32.mrb[5].mxu0 }
 0x148   : > { %v1170_v12 = vmul.f32 1.442695, %v1136_v58  ;;  %v7299_v27 = vadd.f32 %v7277_v56, %v986_v4 }
 0x149   : > { %5889 = vpow2.f32 %v1172_v25  ;;  %v1139_v62 = vmin.f32 %v7296_v1, 20.0 }
 0x14a   : > { %5891 = vpow2.f32 %v1170_v12  ;;  %v1138_v3 = vmin.f32 %v7299_v27, 20.0  ;;  %v5292_v61 = vpop.f32.mrb[6].mxu0 }
 0x14b   : > { %v1176_v31 = vmul.f32 1.442695, %v1139_v62  ;;  %v7310_v22 = vadd.f32 %v5292_v61, %v7277_v56  ;;  %v996_v34 = vpop.f32.mrb[7].mxu0 }
 0x14c   : > { %v1174_v41 = vmul.f32 1.442695, %v1138_v3  ;;  %v7315_v53 = vadd.f32 %v7277_v56, %v996_v34 }
 0x14d   : > { %5893 = vpow2.f32 %v1176_v31  ;;  %v1141_v9 = vmin.f32 %v7310_v22, 20.0 }
 0x14e   : > { %5895 = vpow2.f32 %v1174_v41  ;;  %v1140_v43 = vmin.f32 %v7315_v53, 20.0  ;;  %v5295_v21 = vpop.f32.mrb[8].mxu0 }
 0x14f   : > { %v5886_v40 = vpop.eup %5885  ;;  %v1180_v37 = vmul.f32 1.442695, %v1141_v9  ;;  %v7321_v5 = vadd.f32 %v5295_v21, %v7277_v56  ;;  %v1006_v29 = vpop.f32.mrb[9].mxu0 }
 0x150   : > { %v5888_v39 = vpop.eup %5887  ;;  %v1231_v0 = vadd.f32 2.0, %v5886_v40  ;;  %v1178_v44 = vmul.f32 1.442695, %v1140_v43  ;;  %v7324_v8 = vadd.f32 %v7277_v56, %v1006_v29 }
 0x151   : > { %v1230_v10 = vadd.f32 2.0, %v5888_v39  ;;  %5897 = vpow2.f32 %v1180_v37  ;;  %v1143_v17 = vmin.f32 %v7321_v5, 20.0 }
 0x152   : > { %v7327_v7 = vmul.f32 %v5886_v40, %v1231_v0  ;;  %5899 = vpow2.f32 %v1178_v44  ;;  %v1142_v30 = vmin.f32 %v7324_v8, 20.0  ;;  %v5298_v26 = vpop.f32.mrb[10].mxu0 }
 0x153   : > { %v5890_v45 = vpop.eup %5889  ;;  %v7330_v51 = vmul.f32 %v5888_v39, %v1230_v10  ;;  %v1184_v48 = vmul.f32 1.442695, %v1143_v17  ;;  %v7333_v16 = vadd.f32 %v5298_v26, %v7277_v56  ;;  %v1016_v13 = vpop.f32.mrb[11].mxu0 }
 0x154   : > { %v5892_v14 = vpop.eup %5891  ;;  %v1295_v60 = vadd.f32 2.0, %v7327_v7  ;;  %v1233_v46 = vadd.f32 2.0, %v5890_v45  ;;  %v1182_v23 = vmul.f32 1.442695, %v1142_v30  ;;  %v7343_v11 = vadd.f32 %v7277_v56, %v1016_v13 }
 0x155   : > { %v7337_v28 = vadd.f32 2.0, %v7330_v51  ;;  %v1232_v42 = vadd.f32 2.0, %v5892_v14  ;;  %5901 = vpow2.f32 %v1184_v48  ;;  %v1145_v54 = vmin.f32 %v7333_v16, 20.0 }
 0x156   : > { %5903 = vrcp.f32 %v1295_v60  ;;  %v7339_v33 = vmul.f32 %v5890_v45, %v1233_v46  ;;  %v5301_v36 = vpop.f32.mrb[12].mxu0  ;;  %v1144_v2 = vmin.f32 %v7343_v11, 20.0 }
 0x157   : > { %v5894_v59 = vpop.eup %5893  ;;  %v7345_v49 = vmul.f32 %v5892_v14, %v1232_v42  ;;  %v7348_v38 = vadd.f32 %v5301_v36, %v7277_v56  ;;  %v1026_v52 = vpop.f32.mrb[13].mxu0  ;;  %5905 = vpow2.f32 %v1182_v23  ;;  %v1188_v57 = vmul.f32 1.442695, %v1145_v54 }
 0x158   : > { %v5896_v50 = vpop.eup %5895  ;;  %v1297_v15 = vadd.f32 2.0, %v7339_v33  ;;  %v1235_v63 = vadd.f32 2.0, %v5894_v59  ;;  %5907 = vrcp.f32 %v7337_v28  ;;  %v7360_v62 = vadd.f32 %v7277_v56, %v1026_v52 }
 0x159   : > { %v1296_v24 = vadd.f32 2.0, %v7345_v49  ;;  %v1234_v35 = vadd.f32 2.0, %v5896_v50  ;;  %v1147_v25 = vmin.f32 %v7348_v38, 20.0  ;;  %v1186_v34 = vmul.f32 1.442695, %v1144_v2 }
 0x15a   : > { %5909 = vrcp.f32 %v1297_v15  ;;  %v7353_v58 = vmul.f32 %v5894_v59, %v1235_v63  ;;  %v1146_v43 = vmin.f32 %v7360_v62, 20.0  ;;  %v1457_v2 = vmul.f32 %v7339_v33, %v7288_v32 }
 0x15b   : > { %v5898_v4 = vpop.eup %5897  ;;  %5911 = vrcp.f32 %v1296_v24  ;;  %v7357_v12 = vmul.f32 %v5896_v50, %v1234_v35  ;;  %v1192_v9 = vmul.f32 1.442695, %v1147_v25  ;;  %v1455_v50 = vmul.f32 %v7327_v7, %v7280_v19 }
 0x15c   : > { %v5900_v3 = vpop.eup %5899  ;;  %v1299_v61 = vadd.f32 2.0, %v7353_v58  ;;  %v1237_v18 = vadd.f32 2.0, %v5898_v4  ;;  %5913 = vpow2.f32 %v1188_v57  ;;  %v1190_v30 = vmul.f32 1.442695, %v1146_v43 }
 0x15d   : > { %v7364_v6 = vadd.f32 2.0, %v7357_v12  ;;  %v1236_v31 = vadd.f32 2.0, %v5900_v3  ;;  %v7399_v57 = vmul.f32 %v7330_v51, %v7283_v47  ;;  %v1456_v19 = vmul.f32 %v7345_v49, %v7291_v55 }
 0x15e   : > { %5915 = vrcp.f32 %v1299_v61  ;;  %v7366_v41 = vmul.f32 %v5898_v4, %v1237_v18 }
 0x15f   : > { %v5902_v21 = vpop.eup %5901  ;;  %5917 = vrcp.f32 %v7364_v6  ;;  %v7370_v40 = vmul.f32 %v5900_v3, %v1236_v31 }
 0x160   : > { %v5904_v37 = vpop.eup %5903  ;;  %v7373_v29 = vadd.f32 2.0, %v7366_v41  ;;  %v1239_v39 = vadd.f32 2.0, %v5902_v21  ;;  %5919 = vpow2.f32 %v1186_v34 }
 0x161   : > { %v1359_v0 = vmul.f32 %v5904_v37, %v1295_v60  ;;  %v7376_v44 = vadd.f32 2.0, %v7370_v40  ;;  %5921 = vpow2.f32 %v1192_v9  ;;  %v5906_v10 = vpop.eup %5905 }
 0x162   : > { %5923 = vrcp.f32 %v7373_v29  ;;  %v1271_v17 = vmul.f32 %v5902_v21, %v1239_v39  ;;  %v5304_v26 = vpop.f32.mrb[14].mxu0  ;;  %v7379_v45 = vpop.eup %5907  ;;  %v1238_v48 = vadd.f32 2.0, %v5906_v10 }
 0x163   : > { %5925 = vrcp.f32 %v7376_v44  ;;  %v7383_v13 = vadd.f32 %v5304_v26, %v7277_v56  ;;  %v1036_v14 = vpop.f32.mrb[15].mxu0  ;;  %v1391_v54 = vsub.f32 2.0, %v1359_v0  ;;  %v7411_v32 = vmul.f32 %v7379_v45, %v7337_v28 }
 0x164   : > { %v5910_v60 = vpop.eup %5909  ;;  %v7385_v46 = vadd.f32 2.0, %v1271_v17  ;;  %5927 = vpow2.f32 %v1190_v30  ;;  %v7388_v23 = vadd.f32 %v7277_v56, %v1036_v14  ;;  %v7390_v36 = vmul.f32 %v5906_v10, %v1238_v48 }
 0x165   : > { %v5912_v42 = vpop.eup %5911  ;;  %v1149_v59 = vmin.f32 %v7383_v13, 20.0  ;;  %v1361_v63 = vmul.f32 %v5910_v60, %v1297_v15  ;;  %v1423_v9 = vmul.f32 %v5904_v37, %v1391_v54  ;;  %v1459_v28 = vmul.f32 %v7353_v58, %v7296_v1 }
 0x166   : > { %v5914_v52 = vpop.eup %5913  ;;  %5929 = vrcp.f32 %v7385_v46  ;;  %v1148_v35 = vmin.f32 %v7388_v23, 20.0  ;;  %v1360_v25 = vmul.f32 %v5912_v42, %v1296_v24  ;;  %v7404_v4 = vadd.f32 2.0, %v7390_v36 }
 0x167   : > { %v5307_v3 = vpop.f32.mrb[16].mxu0  ;;  %v1241_v7 = vadd.f32 2.0, %v5914_v52  ;;  %v1196_v15 = vmul.f32 1.442695, %v1149_v59  ;;  %v1393_v33 = vsub.f32 2.0, %v1361_v63  ;;  %v7423_v30 = vmul.f32 %v7357_v12, %v7299_v27 }
 0x168   : > { %v5916_v18 = vpop.eup %5915  ;;  %v1194_v31 = vmul.f32 1.442695, %v1148_v35  ;;  %5931 = vrcp.f32 %v7404_v4  ;;  %v1046_v47 = vpop.f32.mrb[17].mxu0  ;;  %v7414_v21 = vadd.f32 %v5307_v3, %v7277_v56  ;;  %v1392_v49 = vsub.f32 2.0, %v1360_v25 }
 0x169   : > { %v5918_v34 = vpop.eup %5917  ;;  %v1363_v43 = vmul.f32 %v5916_v18, %v1299_v61  ;;  %v1273_v24 = vmul.f32 %v5914_v52, %v1241_v7  ;;  %5933 = vpow2.f32 %v1196_v15  ;;  %v7435_v54 = vmul.f32 %v7370_v40, %v7315_v53 }
 0x16a   : > { %v5920_v51 = vpop.eup %5919  ;;  %v1362_v39 = vmul.f32 %v5918_v34, %v7364_v6  ;;  %5935 = vpow2.f32 %v1194_v31  ;;  %v7431_v6 = vmul.f32 %v7366_v41, %v7310_v22  ;;  %v7437_v58 = vmul.f32 %v1455_v50, %v1423_v9 }
 0x16b   : > { %v5922_v55 = vpop.eup %5921  ;;  %v1240_v37 = vadd.f32 2.0, %v5920_v51  ;;  %v5310_v61 = vpop.f32.mrb[18].mxu0  ;;  %v1395_v10 = vsub.f32 2.0, %v1363_v43  ;;  %v7425_v26 = vadd.f32 2.0, %v1273_v24  ;;  %v7440_v27 = vmul.f32 %v1271_v17, %v7321_v5 }
 0x16c   : > { %v7417_v0 = vpop.eup %5923  ;;  %v1056_v48 = vpop.f32.mrb[19].mxu0  ;;  %v1243_v52 = vadd.f32 2.0, %v5922_v55  ;;  %v1151_v12 = vmin.f32 %v7414_v21, 20.0  ;;  %v1390_v63 = vsub.f32 2.0, %v7411_v32  ;;  %v1425_v35 = vmul.f32 %v5910_v60, %v1393_v33 }
 0x16d   : > { %v7427_v14 = vpop.eup %5925  ;;  %v1272_v59 = vmul.f32 %v5920_v51, %v1240_v37  ;;  %v1424_v25 = vmul.f32 %v5912_v42, %v1392_v49  ;;  %v1394_v22 = vsub.f32 2.0, %v1362_v39  ;;  %v1427_v40 = vmul.f32 %v5916_v18, %v1395_v10 }
 0x16e   : > { %v5928_v1 = vpop.eup %5927  ;;  %5937 = vrcp.f32 %v7425_v26  ;;  %v1275_v7 = vmul.f32 %v5922_v55, %v1243_v52  ;;  %v1365_v5 = vmul.f32 %v7417_v0, %v7373_v29  ;;  %v1364_v17 = vmul.f32 %v7427_v14, %v7376_v44 }
 0x16f   : > { %v7444_v41 = vadd.f32 2.0, %v1272_v59  ;;  %v5313_v3 = vpop.f32.mrb[20].mxu0  ;;  %v1242_v50 = vadd.f32 2.0, %v5928_v1  ;;  %v7453_v60 = vmul.f32 %v7390_v36, %v7324_v8  ;;  %v1200_v42 = vmul.f32 1.442695, %v1151_v12 }
 0x170   : > { %v5930_v53 = vpop.eup %5929  ;;  %v1066_v15 = vpop.f32.mrb[21].mxu0  ;;  %v7457_v18 = vadd.f32 2.0, %v1275_v7  ;;  %v7463_v51 = vmul.f32 %v1457_v2, %v1425_v35  ;;  %v7465_v29 = vmul.f32 %v1456_v19, %v1424_v25  ;;  %v7468_v44 = vadd.f32 %v7277_v56, %v1046_v47 }
 0x171   : > { %v1367_v31 = vmul.f32 %v5930_v53, %v7385_v46  ;;  %5939 = vrcp.f32 %v7444_v41  ;;  %v7459_v9 = vmul.f32 %v5928_v1, %v1242_v50  ;;  %v7470_v33 = vmul.f32 %v1459_v28, %v1427_v40 }
 0x172   : > { %v7461_v43 = vpop.eup %5931  ;;  %5941 = vpow2.f32 %v1200_v42  ;;  %v1426_v46 = vmul.f32 %v5918_v34, %v1394_v22  ;;  %v7473_v55 = vmul.f32 %v1273_v24, %v7333_v16  ;;  %v1397_v19 = vsub.f32 2.0, %v1365_v5 }
 0x173   : > { %v5316_v8 = vpop.f32.mrb[22].mxu0  ;;  %v5934_v36 = vpop.eup %5933  ;;  %v7476_v49 = vadd.f32 2.0, %v7459_v9  ;;  %v1396_v37 = vsub.f32 2.0, %v1364_v17  ;;  %v1150_v47 = vmin.f32 %v7468_v44, 20.0  ;;  %v1399_v52 = vsub.f32 2.0, %v1367_v31 }
 0x174   : > { %v7478_v39 = vpop.f32.mrb[23].mxu0  ;;  %v5936_v2 = vpop.eup %5935  ;;  %v1245_v10 = vadd.f32 2.0, %v5934_v36  ;;  %5943 = vrcp.f32 %v7457_v18  ;;  %v7483_v34 = vadd.f32 %v5310_v61, %v7277_v56  ;;  %v7489_v1 = vadd.f32 %v7277_v56, %v1056_v48 }
 0x175   : > { %v1244_v28 = vadd.f32 2.0, %v5936_v2  ;;  %5945 = vrcp.f32 %v7476_v49  ;;  %v1198_v24 = vmul.f32 1.442695, %v1150_v47  ;;  %v1366_v35 = vmul.f32 %v7461_v43, %v7404_v4 }
 0x176   : > { %v7486_v16 = vmul.f32 %v5934_v36, %v1245_v10  ;;  %v1153_v22 = vmin.f32 %v7483_v34, 20.0  ;;  %v7499_v61 = vadd.f32 %v5313_v3, %v7277_v56  ;;  %v7502_v50 = vmul.f32 %v7423_v30, %v1426_v46 }
 0x177   : > { %v7491_v12 = vpop.f32.mrb[24].mxu0  ;;  %v7495_v25 = vmul.f32 %v5936_v2, %v1244_v28  ;;  %v1429_v48 = vmul.f32 %v7417_v0, %v1397_v19  ;;  %v7506_v5 = vmul.f32 %v1272_v59, %v7343_v11  ;;  %5947 = vpow2.f32 %v1198_v24 }
 0x178   : > { %v1086_v40 = vpop.f32.mrb[25].mxu0  ;;  %v5938_v17 = vpop.eup %5937  ;;  %v1428_v4 = vmul.f32 %v7427_v14, %v1396_v37  ;;  %v7510_v42 = vadd.f32 2.0, %v7486_v16  ;;  %v1204_v31 = vmul.f32 1.442695, %v1153_v22  ;;  %v1431_v36 = vmul.f32 %v5930_v53, %v1399_v52 }
 0x179   : > { %v7513_v3 = vadd.f32 2.0, %v7495_v25  ;;  %v7516_v30 = vmul.f32 %v1275_v7, %v7348_v38  ;;  %v1152_v0 = vmin.f32 %v7489_v1, 20.0  ;;  %v1155_v11 = vmin.f32 %v7499_v61, 20.0 }
 0x17a   : > { %v1398_v2 = vsub.f32 2.0, %v1366_v35  ;;  %v7524_v14 = vadd.f32 %v7277_v56, %v1066_v15  ;;  %v7527_v19 = vadd.f32 %v5316_v8, %v7277_v56  ;;  %v1369_v7 = vmul.f32 %v5938_v17, %v7425_v26 }
 0x17b   : > { %v5322_v59 = vpop.f32.mrb[26].mxu0  ;;  %v7520_v46 = vpop.eup %5939  ;;  %5949 = vrcp.f32 %v7513_v3  ;;  %v1202_v37 = vmul.f32 1.442695, %v1152_v0  ;;  %v1208_v10 = vmul.f32 1.442695, %v1155_v11  ;;  %v7536_v15 = vmul.f32 %v7431_v6, %v1429_v48 }
 0x17c   : > { %v7529_v53 = vpop.f32.mrb[27].mxu0  ;;  %v5942_v38 = vpop.eup %5941  ;;  %5951 = vpow2.f32 %v1204_v31  ;;  %v1154_v52 = vmin.f32 %v7524_v14, 20.0  ;;  %v1157_v28 = vmin.f32 %v7527_v19, 20.0  ;;  %v1368_v8 = vmul.f32 %v7520_v46, %v7444_v41 }
 0x17d   : > { %5953 = vrcp.f32 %v7510_v42  ;;  %v1247_v47 = vadd.f32 2.0, %v5942_v38  ;;  %v1422_v26 = vmul.f32 %v7379_v45, %v1390_v63  ;;  %v7544_v35 = vmul.f32 %v7435_v54, %v1428_v4 }
 0x17e   : > { %5955 = vpow2.f32 %v1202_v37  ;;  %v5944_v24 = vpop.eup %5943  ;;  %v1206_v31 = vmul.f32 1.442695, %v1154_v52  ;;  %v1430_v6 = vmul.f32 %v7461_v43, %v1398_v2  ;;  %v1401_v48 = vsub.f32 2.0, %v1369_v7 }
 0x17f   : > { %v7546_v22 = vmul.f32 %v5942_v38, %v1247_v47  ;;  %5957 = vpow2.f32 %v1208_v10  ;;  %v5946_v0 = vpop.eup %5945  ;;  %v1212_v11 = vmul.f32 1.442695, %v1157_v28  ;;  %v1486_v41 = vmul.f32 %v7399_v57, %v1422_v26 }
 0x180   : > { %v7551_v37 = vmul.f32 %v7440_v27, %v1431_v36  ;;  %v7555_v45 = vmul.f32 %v7459_v9, %v7360_v62  ;;  %5959 = vpow2.f32 %v1206_v31  ;;  %v1400_v63 = vsub.f32 2.0, %v1368_v8 }
 0x181   : > { %v7558_v32 = vadd.f32 2.0, %v7546_v22  ;;  %v5948_v54 = vpop.eup %5947  ;;  %v1371_v4 = vmul.f32 %v5944_v24, %v7457_v18  ;;  %5961 = vpow2.f32 %v1212_v11  ;;  %5345 = vmatprep.mubr.msk.f32.mxu1 %vm1524_vm0, %v1486_v41  ;;  %v7564_v57 = vadd.f32 %v7277_v56, %v7478_v39 }
 0x182   : > { %v1370_v27 = vmul.f32 %v5946_v0, %v7476_v49  ;;  %v1246_v43 = vadd.f32 2.0, %v5948_v54  ;;  %5346 = vmatmul.mubr.msk.f32.vlgmr.msra.gmra.mrb[0].mxu1 %vm1524_vm0, %v7437_v58  ;;  %v7571_v62 = vadd.f32 %v7491_v12, %v7277_v56  ;;  %v7574_v9 = vadd.f32 %v7277_v56, %v1086_v40 }
 0x183   : > { %v7579_v36 = vmul.f32 %v7453_v60, %v1430_v6  ;;  %v1433_v39 = vmul.f32 %v5938_v17, %v1401_v48  ;;  %5963 = vrcp.f32 %v7558_v32  ;;  %v1156_v49 = vmin.f32 %v7564_v57, 20.0  ;;  %5348 = vmatprep.mubr.msk.f32.mxu1 %vm1524_vm0, %v7465_v29  ;;  %5672 = vmatpush3.bf16.msra.mxu1 %v7312_v20 }
 0x184   : > { %v7576_v18 = vpop.f32.mrb[28].mxu0  ;;  %v7588_v40 = vmul.f32 %v5948_v54, %v1246_v43  ;;  %v1159_v2 = vmin.f32 %v7571_v62, 20.0  ;;  %v1158_v60 = vmin.f32 %v7574_v9, 20.0  ;;  %v7593_v17 = vadd.f32 %v5322_v59, %v7277_v56 }
 0x185   : > { %v7585_v58 = vpop.f32.mrb[29].mxu0  ;;  %v5950_v12 = vpop.eup %5949  ;;  %v1403_v7 = vsub.f32 2.0, %v1371_v4  ;;  %v7598_v29 = vmul.f32 %v7495_v25, %v7388_v23  ;;  %v1210_v47 = vmul.f32 1.442695, %v1156_v49  ;;  %v1432_v52 = vmul.f32 %v7520_v46, %v1400_v63 }
 0x186   : > { %v5952_v38 = vpop.eup %5951  ;;  %v1372_v10 = vmul.f32 %v5950_v12, %v7513_v3  ;;  %v1402_v28 = vsub.f32 2.0, %v1370_v27  ;;  %v7604_v8 = vadd.f32 2.0, %v7588_v40  ;;  %5349 = vmatmul.mubr.msk.f32.gmra.mrb[2].mxu1 %vm1524_vm0, %v7463_v51  ;;  %v7609_v3 = vmul.f32 %v7473_v55, %v1433_v39 }
 0x187   : > { %v7600_v20 = vpop.eup %5953  ;;  %v1249_v26 = vadd.f32 2.0, %v5952_v38  ;;  %5965 = vpow2.f32 %v1210_v47  ;;  %v1216_v23 = vmul.f32 1.442695, %v1159_v2  ;;  %v1214_v25 = vmul.f32 1.442695, %v1158_v60  ;;  %5351 = vmatprep.mubr.msk.f32.mxu1 %vm1524_vm0, %v7502_v50 }
 0x188   : > { %v5956_v59 = vpop.eup %5955  ;;  %5967 = vrcp.f32 %v7604_v8  ;;  %v1161_v48 = vmin.f32 %v7593_v17, 20.0  ;;  %v1435_v11 = vmul.f32 %v5944_v24, %v1403_v7  ;;  %v1404_v51 = vsub.f32 2.0, %v1372_v10 }
 0x189   : > { %v5958_v31 = vpop.eup %5957  ;;  %v7614_v46 = vmul.f32 %v5952_v38, %v1249_v26  ;;  %v1248_v6 = vadd.f32 2.0, %v5956_v59  ;;  %5969 = vpow2.f32 %v1216_v23  ;;  %v1496_v54 = vmul.f32 %v7506_v5, %v1432_v52 }
 0x18a   : > { %v1251_v41 = vadd.f32 2.0, %v5958_v31  ;;  %v5960_v55 = vpop.eup %5959  ;;  %v1434_v63 = vmul.f32 %v5946_v0, %v1402_v28  ;;  %5352 = vmatmul.mubr.msk.f32.gmra.mrb[4].mxu1 %vm1524_vm0, %v7470_v33  ;;  %v7627_v43 = vmul.f32 %v7600_v20, %v7510_v42  ;;  %5971 = vpow2.f32 %v1214_v25 }
 0x18b   : > { %v7619_v4 = vadd.f32 2.0, %v7614_v46  ;;  %v7621_v50 = vmul.f32 %v5956_v59, %v1248_v6  ;;  %v5962_v27 = vpop.eup %5961  ;;  %v1250_v39 = vadd.f32 2.0, %v5960_v55  ;;  %5354 = vmatprep.mubr.msk.f32.mxu1 %vm1524_vm0, %v7544_v35  ;;  %v1220_v49 = vmul.f32 1.442695, %v1161_v48 }
 0x18c   : > { %v7629_v24 = vmul.f32 %v5958_v31, %v1251_v41  ;;  %v1253_v0 = vadd.f32 2.0, %v5962_v27  ;;  %v5328_v33 = vpop.f32.mrb[30].mxu0  ;;  %v7640_v42 = vmul.f32 %v7516_v30, %v1435_v11  ;;  %v1436_v60 = vmul.f32 %v5950_v12, %v1404_v51 }
 0x18d   : > { %5973 = vrcp.f32 %v7619_v4  ;;  %v7635_v5 = vadd.f32 2.0, %v7621_v50  ;;  %v7637_v2 = vpop.eup %5963  ;;  %v7645_v7 = vmul.f32 %v5960_v55, %v1250_v39  ;;  %v1116_v35 = vpop.f32.mrb[31].mxu0  ;;  %v7652_v47 = vadd.f32 %v7277_v56, %v7529_v53 }
 0x18e   : > { %v7643_v38 = vadd.f32 2.0, %v7629_v24  ;;  %v7648_v10 = vmul.f32 %v5962_v27, %v1253_v0  ;;  %v7656_v52 = vadd.f32 %v7576_v18, %v7277_v56  ;;  %5355 = vmatmul.mubr.msk.f32.gmra.mrb[6].mxu1 %vm1524_vm0, %v7536_v15  ;;  %v1498_v30 = vmul.f32 %v7555_v45, %v1434_v63 }
 0x18f   : > { %5975 = vrcp.f32 %v7635_v5  ;;  %v1405_v12 = vsub.f32 2.0, %v7627_v43  ;;  %v7664_v28 = vadd.f32 2.0, %v7645_v7  ;;  %5357 = vmatprep.mubr.msk.f32.mxu1 %vm1524_vm0, %v7579_v36  ;;  %v1470_v53 = vmul.f32 %v7588_v40, %v7468_v44 }
 0x190   : > { %5977 = vrcp.f32 %v7643_v38  ;;  %v7671_v18 = vadd.f32 2.0, %v7648_v10  ;;  %v1160_v15 = vmin.f32 %v7652_v47, 20.0  ;;  %v1375_v26 = vmul.f32 %v7637_v2, %v7558_v32 }
 0x191   : > { %5979 = vpow2.f32 %v1220_v49  ;;  %v5966_v45 = vpop.eup %5965  ;;  %v1163_v59 = vmin.f32 %v7656_v52, 20.0  ;;  %v7680_v36 = vadd.f32 %v7277_v56, %v7585_v58  ;;  %v1500_v44 = vmul.f32 %v7598_v29, %v1436_v60 }
 0x192   : > { %5981 = vrcp.f32 %v7664_v28  ;;  %v5968_v23 = vpop.eup %5967  ;;  %v1252_v40 = vadd.f32 2.0, %v5966_v45  ;;  %v1218_v25 = vmul.f32 1.442695, %v1160_v15  ;;  %v7684_v31 = vadd.f32 %v5328_v33, %v7277_v56  ;;  %5358 = vmatmul.mubr.msk.f32.gmra.mrb[8].mxu1 %vm1524_vm0, %v7551_v37 }
 0x193   : > { %v5970_v32 = vpop.eup %5969  ;;  %v1374_v6 = vmul.f32 %v5968_v23, %v7604_v8  ;;  %5983 = vrcp.f32 %v7671_v18  ;;  %v1224_v48 = vmul.f32 1.442695, %v1163_v59  ;;  %v1162_v58 = vmin.f32 %v7680_v36, 20.0  ;;  %5360 = vmatprep.mubr.msk.f32.mxu1 %vm1524_vm0, %v1496_v54 }
 0x194   : > { %v7692_v11 = vmul.f32 %v5966_v45, %v1252_v40  ;;  %v1255_v29 = vadd.f32 2.0, %v5970_v32  ;;  %5985 = vpow2.f32 %v1218_v25  ;;  %v1165_v51 = vmin.f32 %v7684_v31, 20.0  ;;  %v5972_v41 = vpop.eup %5971 }
 0x195   : > { %v1407_v55 = vsub.f32 2.0, %v1375_v26  ;;  %v1406_v63 = vsub.f32 2.0, %v1374_v6  ;;  %5987 = vpow2.f32 %v1224_v48  ;;  %v1222_v37 = vmul.f32 1.442695, %v1162_v58 }
 0x196   : > { %v7696_v8 = vadd.f32 2.0, %v7692_v11  ;;  %v7698_v43 = vmul.f32 %v5970_v32, %v1255_v29  ;;  %v1254_v39 = vadd.f32 2.0, %v5972_v41  ;;  %v7701_v54 = vadd.f32 %v7277_v56, %v1116_v35  ;;  %5361 = vmatmul.mubr.msk.f32.gmra.mrb[10].mxu1 %vm1524_vm0, %v7609_v3 }
 0x197   : > { %v5974_v27 = vpop.eup %5973  ;;  %v1438_v0 = vmul.f32 %v5968_v23, %v1406_v63  ;;  %5989 = vpow2.f32 %v1222_v37  ;;  %v1228_v33 = vmul.f32 1.442695, %v1165_v51  ;;  %5363 = vmatprep.mubr.msk.f32.mxu1 %vm1524_vm0, %v1498_v30  ;;  %v1437_v15 = vmul.f32 %v7600_v20, %v1405_v12 }
 0x198   : > { %v1377_v49 = vmul.f32 %v5974_v27, %v7619_v4  ;;  %5991 = vrcp.f32 %v7696_v8  ;;  %v7710_v45 = vadd.f32 2.0, %v7698_v43  ;;  %v7712_v56 = vmul.f32 %v5972_v41, %v1254_v39 }
 0x199   : > { %v5976_v60 = vpop.eup %5975  ;;  %v1469_v3 = vmul.f32 %v7486_v16, %v7383_v13  ;;  %v1439_v4 = vmul.f32 %v7637_v2, %v1407_v55  ;;  %5993 = vpow2.f32 %v1228_v33  ;;  %v1502_v59 = vmul.f32 %v1470_v53, %v1438_v0 }
 0x19a   : > { %v5978_v35 = vpop.eup %5977  ;;  %v1376_v26 = vmul.f32 %v5976_v60, %v7635_v5  ;;  %v1409_v23 = vsub.f32 2.0, %v1377_v49  ;;  %5995 = vrcp.f32 %v7710_v45  ;;  %v1318_v20 = vadd.f32 2.0, %v7712_v56  ;;  %5364 = vmatmul.mubr.msk.f32.gmra.mrb[12].mxu1 %vm1524_vm0, %v7640_v42 }
 0x19b   : > { %v5980_v30 = vpop.eup %5979  ;;  %v1379_v25 = vmul.f32 %v5978_v35, %v7643_v38  ;;  %v1164_v16 = vmin.f32 %v7701_v54, 20.0  ;;  %5366 = vmatprep.mubr.msk.f32.mxu1 %vm1524_vm0, %v1500_v44  ;;  %v1501_v5 = vmul.f32 %v1469_v3, %v1437_v15  ;;  %v1471_v2 = vmul.f32 %v7546_v22, %v7414_v21 }
 0x19c   : > { %v5982_v12 = vpop.eup %5981  ;;  %v1408_v40 = vsub.f32 2.0, %v1376_v26  ;;  %v1257_v13 = vadd.f32 2.0, %v5980_v30  ;;  %5997 = vrcp.f32 %v1318_v20  ;;  %v1472_v42 = vmul.f32 %v7621_v50, %v7489_v1 }
 0x19d   : > { %v1378_v53 = vmul.f32 %v5982_v12, %v7664_v28  ;;  %v5984_v32 = vpop.eup %5983  ;;  %v1503_v58 = vmul.f32 %v1471_v2, %v1439_v4  ;;  %v1441_v29 = vmul.f32 %v5974_v27, %v1409_v23  ;;  %v1411_v55 = vsub.f32 2.0, %v1379_v25 }
 0x19e   : > { %v1440_v6 = vmul.f32 %v5976_v60, %v1408_v40  ;;  %v7730_v48 = vmul.f32 %v5980_v30, %v1257_v13  ;;  %v5986_v38 = vpop.eup %5985  ;;  %5367 = vmatmul.mubr.msk.f32.gmra.mrb[14].mxu1 %vm1524_vm0, %v1501_v5  ;;  %v1226_v22 = vmul.f32 1.442695, %v1164_v16  ;;  %v1381_v63 = vmul.f32 %v5984_v32, %v7671_v18 }
 0x19f   : > { %v1410_v51 = vsub.f32 2.0, %v1378_v53  ;;  %v5988_v44 = vpop.eup %5987  ;;  %5369 = vmatprep.mubr.msk.f32.mxu1 %vm1524_vm0, %v1502_v59  ;;  %v1256_v1 = vadd.f32 2.0, %v5986_v38  ;;  %v1473_v27 = vmul.f32 %v7614_v46, %v7483_v34  ;;  %v1474_v39 = vmul.f32 %v7645_v7, %v7524_v14 }
 0x1a0   : > { %v1504_v41 = vmul.f32 %v1472_v42, %v1440_v6  ;;  %v1321_v21 = vadd.f32 2.0, %v7730_v48  ;;  %v1259_v50 = vadd.f32 2.0, %v5988_v44  ;;  %v1475_v49 = vmul.f32 %v7629_v24, %v7499_v61 }
 0x1a1   : > { %v1442_v28 = vmul.f32 %v5982_v12, %v1410_v51  ;;  %v5990_v37 = vpop.eup %5989  ;;  %v7742_v33 = vmul.f32 %v5986_v38, %v1256_v1  ;;  %v1443_v3 = vmul.f32 %v5978_v35, %v1411_v55  ;;  %v1505_v46 = vmul.f32 %v1473_v27, %v1441_v29 }
 0x1a2   : > { %5999 = vrcp.f32 %v1321_v21  ;;  %v5992_v0 = vpop.eup %5991  ;;  %v7744_v60 = vmul.f32 %v5988_v44, %v1259_v50  ;;  %v1258_v15 = vadd.f32 2.0, %v5990_v37  ;;  %5370 = vmatmul.mubr.msk.f32.gmra.mrb[16].mxu1 %vm1524_vm0, %v1503_v58  ;;  %v1413_v7 = vsub.f32 2.0, %v1381_v63 }
 0x1a3   : > { %v5994_v18 = vpop.eup %5993  ;;  %v1506_v4 = vmul.f32 %v1474_v39, %v1442_v28  ;;  %v1380_v34 = vmul.f32 %v5992_v0, %v7696_v8  ;;  %6001 = vpow2.f32 %v1226_v22  ;;  %5372 = vmatprep.mubr.msk.f32.mxu1 %vm1524_vm0, %v1504_v41  ;;  %v1320_v61 = vadd.f32 2.0, %v7742_v33 }
 0x1a4   : > { %v5996_v14 = vpop.eup %5995  ;;  %v1323_v24 = vadd.f32 2.0, %v7744_v60  ;;  %v1290_v59 = vmul.f32 %v5990_v37, %v1258_v15  ;;  %v1261_v23 = vadd.f32 2.0, %v5994_v18  ;;  %v1476_v35 = vmul.f32 %v7692_v11, %v7564_v57 }
 0x1a5   : > { %v1412_v26 = vsub.f32 2.0, %v1380_v34  ;;  %v1383_v30 = vmul.f32 %v5996_v14, %v7710_v45  ;;  %6003 = vrcp.f32 %v1320_v61  ;;  %v1507_v8 = vmul.f32 %v1475_v49, %v1443_v3 }
 0x1a6   : > { %v5998_v12 = vpop.eup %5997  ;;  %5373 = vmatmul.mubr.msk.f32.gmra.mrb[18].mxu1 %vm1524_vm0, %v1505_v46  ;;  %6005 = vrcp.f32 %v1323_v24  ;;  %v1445_v13 = vmul.f32 %v5984_v32, %v1413_v7  ;;  %v1322_v5 = vadd.f32 2.0, %v1290_v59  ;;  %v1293_v2 = vmul.f32 %v5994_v18, %v1261_v23  ;;  %v1849_v23 = vld [vmem:[%s9373_s5 + $0x18] sm:$0xff] }
 0x1a7   : > { %v1444_v40 = vmul.f32 %v5992_v0, %v1412_v26  ;;  %v1382_v25 = vmul.f32 %v5998_v12, %v1318_v20  ;;  %5375 = vmatprep.mubr.msk.f32.mxu1 %vm1524_vm0, %v1506_v4  ;;  %v1415_v16 = vsub.f32 2.0, %v1383_v30  ;;  %v1477_v6 = vmul.f32 %v7648_v10, %v7527_v19 }
 0x1a8   : > { %6007 = vrcp.f32 %v1322_v5  ;;  %v1325_v57 = vadd.f32 2.0, %v1293_v2  ;;  %v1478_v20 = vmul.f32 %v7712_v56, %v7574_v9  ;;  %v1479_v19 = vmul.f32 %v7698_v43, %v7571_v62 }
 0x1a9   : > { %v1508_v45 = vmul.f32 %v1476_v35, %v1444_v40  ;;  %v1414_v53 = vsub.f32 2.0, %v1382_v25  ;;  %v1509_v32 = vmul.f32 %v1477_v6, %v1445_v13  ;;  %v1447_v38 = vmul.f32 %v5996_v14, %v1415_v16 }
 0x1aa   : > { %5376 = vmatmul.mubr.msk.f32.gmra.mrb[20].mxu1 %vm1524_vm0, %v1507_v8  ;;  %6009 = vrcp.f32 %v1325_v57  ;;  %v1480_v43 = vmul.f32 %v7742_v33, %v7652_v47  ;;  %v1481_v39 = vmul.f32 %v7730_v48, %v7593_v17  ;;  %v1482_v34 = vmul.f32 %v1290_v59, %v7680_v36  ;;  %v1848_v59 = vld [vmem:[%s9373_s5 + $0x10] sm:$0xff] }
 0x1ab   : > { %v1446_v42 = vmul.f32 %v5998_v12, %v1414_v53  ;;  %5378 = vmatprep.mubr.msk.f32.mxu1 %vm1524_vm0, %v1508_v45  ;;  %v1511_v41 = vmul.f32 %v1479_v19, %v1447_v38  ;;  %v1483_v14 = vmul.f32 %v7744_v60, %v7656_v52  ;;  %v1485_v30 = vmul.f32 %v1293_v2, %v7684_v31  ;;  %v7791_v31 = vld [vmem:[%s9372_s4] ss:$0 sm:$0xff] }
 0x1ac   : > { %v6000_v11 = vpop.eup %5999  ;;  %v5673_v12 = vpack.c.bf16 %v1849_v23, %v1848_v59 }
 0x1ad   : > { %v1385_v58 = vmul.f32 %v6000_v11, %v1321_v21  ;;  %v6002_v29 = vpop.eup %6001  ;;  %v1510_v51 = vmul.f32 %v1478_v20, %v1446_v42  ;;  %v2564_v42 = vld [vmem:[%s9375_s7 + $0x8] sm:$0xff] }
 0x1ae   : > { %v1260_v10 = vadd.f32 2.0, %v6002_v29  ;;  %5379 = vmatmul.mubr.msk.f32.gmra.mrb[22].mxu1 %vm1524_vm0, %v1509_v32  ;;  %5674 = vmatprep.subr.bf16.mxu1 %v5673_v12 }
 0x1af   : > { %5381 = vmatprep.mubr.msk.f32.mxu1 %vm1524_vm0, %v1510_v51  ;;  %v6004_v44 = vpop.eup %6003  ;;  %v1417_v55 = vsub.f32 2.0, %v1385_v58  ;;  %5676 = vmatpush3.bf16.msra.mxu1 %v5673_v12 }
 0x1b0   : > { %v1292_v9 = vmul.f32 %v6002_v29, %v1260_v10  ;;  %v6006_v56 = vpop.eup %6005  ;;  %v1384_v22 = vmul.f32 %v6004_v44, %v1320_v61 }
 0x1b1   : > { %v1387_v28 = vmul.f32 %v6006_v56, %v1323_v24  ;;  %v1449_v50 = vmul.f32 %v6000_v11, %v1417_v55  ;;  %v2563_v11 = vld [vmem:[%s9375_s7] sm:$0xff] }
 0x1b2   : > { %v1324_v63 = vadd.f32 2.0, %v1292_v9  ;;  %5382 = vmatmul.mubr.msk.f32.gmra.mrb[24].mxu1 %vm1524_vm0, %v1511_v41  ;;  %v1416_v21 = vsub.f32 2.0, %v1384_v22  ;;  %v6008_v1 = vpop.eup %6007  ;;  %v1484_v26 = vmul.f32 %v1292_v9, %v7701_v54  ;;  %v7815_v38 = vpack.c.bf16 %v2564_v42, %v2563_v11 }
 0x1b3   : > { %v1419_v37 = vsub.f32 2.0, %v1387_v28  ;;  %v1386_v27 = vmul.f32 %v6008_v1, %v1322_v5  ;;  %v1513_v18 = vmul.f32 %v1481_v39, %v1449_v50 }
 0x1b4   : > { %6011 = vrcp.f32 %v1324_v63  ;;  %v1448_v62 = vmul.f32 %v6004_v44, %v1416_v21  ;;  %v6010_v0 = vpop.eup %6009  ;;  %5678 = vmatprep.subr.bf16.mxu0 %v7815_v38  ;;  %5705 = vmatprep.subr.bf16.mxu1 %v7815_v38 }
 0x1b5   : > { %v1418_v15 = vsub.f32 2.0, %v1386_v27  ;;  %v1451_v3 = vmul.f32 %v6006_v56, %v1419_v37  ;;  %v1389_v46 = vmul.f32 %v6010_v0, %v1325_v57  ;;  %5680 = vmatpush3.bf16.msra.mxu0 %v7815_v38 }
 0x1b6   : > { %v1512_v49 = vmul.f32 %v1480_v43, %v1448_v62 }
 0x1b7   : > { %v1450_v4 = vmul.f32 %v6008_v1, %v1418_v15  ;;  %v1515_v33 = vmul.f32 %v1483_v14, %v1451_v3  ;;  %v1421_v48 = vsub.f32 2.0, %v1389_v46 }
 0x1b8   : > { %5384 = vmatprep.mubr.msk.f32.mxu1 %vm1524_vm0, %v1512_v49 }
 0x1b9   : > { %5385 = vmatmul.mubr.msk.f32.gmra.mrb[26].mxu1 %vm1524_vm0, %v1513_v18  ;;  %v1514_v47 = vmul.f32 %v1482_v34, %v1450_v4  ;;  %v1453_v24 = vmul.f32 %v6010_v0, %v1421_v48 }
 0x1bb   : > { %5387 = vmatprep.mubr.msk.f32.mxu1 %vm1524_vm0, %v1514_v47  ;;  %v1517_v60 = vmul.f32 %v1485_v30, %v1453_v24 }
 0x1bd   : > { %5388 = vmatmul.mubr.msk.f32.gmra.mrb[28].mxu1 %vm1524_vm0, %v1515_v33 }
 0x1be   : > { %v6012_v17 = vpop.eup %6011 }
 0x1bf   : > { %v1388_v7 = vmul.f32 %v6012_v17, %v1324_v63 }
 0x1c1   : > { %v1420_v61 = vsub.f32 2.0, %v1388_v7 }
 0x1c3   : > { %v1452_v36 = vmul.f32 %v6012_v17, %v1420_v61 }
 0x1c5   : > { %v1516_v52 = vmul.f32 %v1484_v26, %v1452_v36 }
 0x1c7   : > { %5390 = vmatprep.mubr.msk.f32.mxu1 %vm1524_vm0, %v1516_v52 }
 0x1c8   : > { %5391 = vmatmul.mubr.msk.f32.gmra.mrb[30].mxu1 %vm1524_vm0, %v1517_v60 }
 0x255   : > { %v5347_v54 = vpop.f32.mrb[0].mxu1 }
 0x256   : > { %v7794_v35 = vadd.f32 %v5347_v54, %v7791_v31  ;;  %v1687_v8 = vpop.f32.mrb[1].mxu1 }
 0x257   : > { %v7797_v40 = vadd.f32 %v7791_v31, %v1687_v8 }
 0x258   : > { %v1852_v25 = vmin.f32 %v7794_v35, 20.0 }
 0x259   : > { %v1851_v13 = vmin.f32 %v7797_v40, 20.0  ;;  %v5350_v16 = vpop.f32.mrb[2].mxu1 }
 0x25a   : > { %v1885_v5 = vmul.f32 1.442695, %v1852_v25  ;;  %v7802_v2 = vadd.f32 %v5350_v16, %v7791_v31  ;;  %v1697_v45 = vpop.f32.mrb[3].mxu1 }
 0x25b   : > { %v1883_v53 = vmul.f32 1.442695, %v1851_v13  ;;  %v7805_v6 = vadd.f32 %v7791_v31, %v1697_v45 }
 0x25c   : > { %6013 = vpow2.f32 %v1885_v5  ;;  %v1854_v57 = vmin.f32 %v7802_v2, 20.0 }
 0x25d   : > { %6015 = vpow2.f32 %v1883_v53  ;;  %v1853_v20 = vmin.f32 %v7805_v6, 20.0  ;;  %v5353_v32 = vpop.f32.mrb[4].mxu1 }
 0x25e   : > { %v1889_v58 = vmul.f32 1.442695, %v1854_v57  ;;  %v7818_v29 = vadd.f32 %v5353_v32, %v7791_v31  ;;  %v1707_v51 = vpop.f32.mrb[5].mxu1 }
 0x25f   : > { %v1887_v19 = vmul.f32 1.442695, %v1853_v20  ;;  %v7821_v10 = vadd.f32 %v7791_v31, %v1707_v51 }
 0x260   : > { %6017 = vpow2.f32 %v1889_v58  ;;  %v1856_v44 = vmin.f32 %v7818_v29, 20.0 }
 0x261   : > { %6019 = vpow2.f32 %v1887_v19  ;;  %v1855_v41 = vmin.f32 %v7821_v10, 20.0  ;;  %v5356_v55 = vpop.f32.mrb[6].mxu1 }
 0x262   : > { %v1893_v9 = vmul.f32 1.442695, %v1856_v44  ;;  %v7829_v56 = vadd.f32 %v5356_v55, %v7791_v31  ;;  %v1717_v22 = vpop.f32.mrb[7].mxu1 }
 0x263   : > { %v1891_v28 = vmul.f32 1.442695, %v1855_v41  ;;  %v7832_v63 = vadd.f32 %v7791_v31, %v1717_v22 }
 0x264   : > { %6021 = vpow2.f32 %v1893_v9  ;;  %v1858_v21 = vmin.f32 %v7829_v56, 20.0 }
 0x265   : > { %6023 = vpow2.f32 %v1891_v28  ;;  %v1857_v1 = vmin.f32 %v7832_v63, 20.0  ;;  %v5359_v50 = vpop.f32.mrb[8].mxu1 }
 0x266   : > { %v6014_v37 = vpop.eup %6013  ;;  %v1897_v62 = vmul.f32 1.442695, %v1858_v21  ;;  %v7837_v43 = vadd.f32 %v5359_v50, %v7791_v31  ;;  %v1727_v27 = vpop.f32.mrb[9].mxu1 }
 0x267   : > { %v6016_v39 = vpop.eup %6015  ;;  %v1948_v0 = vadd.f32 2.0, %v6014_v37  ;;  %v1895_v49 = vmul.f32 1.442695, %v1857_v1  ;;  %v7840_v15 = vadd.f32 %v7791_v31, %v1727_v27 }
 0x268   : > { %v1947_v18 = vadd.f32 2.0, %v6016_v39  ;;  %6025 = vpow2.f32 %v1897_v62  ;;  %v1860_v3 = vmin.f32 %v7837_v43, 20.0 }
 0x269   : > { %v1980_v4 = vmul.f32 %v6014_v37, %v1948_v0  ;;  %6027 = vpow2.f32 %v1895_v49  ;;  %v1859_v34 = vmin.f32 %v7840_v15, 20.0  ;;  %v5362_v14 = vpop.f32.mrb[10].mxu1 }
 0x26a   : > { %v6018_v46 = vpop.eup %6017  ;;  %v1979_v47 = vmul.f32 %v6016_v39, %v1947_v18  ;;  %v1901_v33 = vmul.f32 1.442695, %v1860_v3  ;;  %v7845_v17 = vadd.f32 %v5362_v14, %v7791_v31  ;;  %v1737_v48 = vpop.f32.mrb[11].mxu1 }
 0x26b   : > { %v6020_v7 = vpop.eup %6019  ;;  %v2012_v61 = vadd.f32 2.0, %v1980_v4  ;;  %v1950_v24 = vadd.f32 2.0, %v6018_v46  ;;  %v1899_v36 = vmul.f32 1.442695, %v1859_v34  ;;  %v7849_v59 = vadd.f32 %v7791_v31, %v1737_v48 }
 0x26c   : > { %v2011_v26 = vadd.f32 2.0, %v1979_v47  ;;  %v1949_v30 = vadd.f32 2.0, %v6020_v7  ;;  %6029 = vpow2.f32 %v1901_v33  ;;  %v1862_v60 = vmin.f32 %v7845_v17, 20.0 }
 0x26d   : > { %6031 = vrcp.f32 %v2012_v61  ;;  %v1982_v52 = vmul.f32 %v6018_v46, %v1950_v24  ;;  %v5365_v23 = vpop.f32.mrb[12].mxu1  ;;  %v1861_v42 = vmin.f32 %v7849_v59, 20.0  ;;  %v2172_v28 = vmul.f32 %v1980_v4, %v7794_v35 }
 0x26e   : > { %v6022_v12 = vpop.eup %6021  ;;  %6033 = vrcp.f32 %v2011_v26  ;;  %v7851_v54 = vmul.f32 %v6020_v7, %v1949_v30  ;;  %v7854_v8 = vadd.f32 %v5365_v23, %v7791_v31  ;;  %v1747_v25 = vpop.f32.mrb[13].mxu1  ;;  %v1905_v57 = vmul.f32 1.442695, %v1862_v60 }
 0x26f   : > { %v6024_v13 = vpop.eup %6023  ;;  %v7856_v16 = vadd.f32 2.0, %v1982_v52  ;;  %v1952_v5 = vadd.f32 2.0, %v6022_v12  ;;  %6035 = vpow2.f32 %v1899_v36  ;;  %v7870_v19 = vadd.f32 %v7791_v31, %v1747_v25 }
 0x270   : > { %v7859_v45 = vadd.f32 2.0, %v7851_v54  ;;  %v1951_v53 = vadd.f32 2.0, %v6024_v13  ;;  %v1864_v20 = vmin.f32 %v7854_v8, 20.0  ;;  %v1903_v50 = vmul.f32 1.442695, %v1861_v42 }
 0x271   : > { %6037 = vrcp.f32 %v7856_v16  ;;  %v7862_v11 = vmul.f32 %v6022_v12, %v1952_v5  ;;  %v5368_v32 = vpop.f32.mrb[14].mxu1  ;;  %v1863_v27 = vmin.f32 %v7870_v19, 20.0  ;;  %v2171_v49 = vmul.f32 %v1979_v47, %v7797_v40 }
 0x272   : > { %v6026_v58 = vpop.eup %6025  ;;  %6039 = vrcp.f32 %v7859_v45  ;;  %v7867_v51 = vmul.f32 %v6024_v13, %v1951_v53  ;;  %v7873_v44 = vadd.f32 %v5368_v32, %v7791_v31  ;;  %v1757_v41 = vpop.f32.mrb[15].mxu1  ;;  %v1909_v62 = vmul.f32 1.442695, %v1864_v20 }
 0x273   : > { %v6028_v55 = vpop.eup %6027  ;;  %v7876_v9 = vadd.f32 2.0, %v7862_v11  ;;  %v1954_v22 = vadd.f32 2.0, %v6026_v58  ;;  %6041 = vpow2.f32 %v1905_v57  ;;  %v7894_v34 = vmul.f32 %v1982_v52, %v7802_v2 }
 0x274   : > { %v7880_v21 = vadd.f32 2.0, %v7867_v51  ;;  %v1953_v1 = vadd.f32 2.0, %v6028_v55  ;;  %v1866_v35 = vmin.f32 %v7873_v44, 20.0  ;;  %v7903_v48 = vadd.f32 %v7791_v31, %v1757_v41 }
 0x275   : > { %6043 = vrcp.f32 %v7876_v9  ;;  %v7883_v37 = vmul.f32 %v6026_v58, %v1954_v22  ;;  %v5371_v39 = vpop.f32.mrb[16].mxu1  ;;  %v1907_v36 = vmul.f32 1.442695, %v1863_v27  ;;  %v2173_v13 = vmul.f32 %v7851_v54, %v7805_v6 }
 0x276   : > { %v6030_v0 = vpop.eup %6029  ;;  %6045 = vrcp.f32 %v7880_v21  ;;  %v7888_v18 = vmul.f32 %v6028_v55, %v1953_v1  ;;  %v7891_v3 = vpop.f32.mrb[17].mxu1  ;;  %v1913_v60 = vmul.f32 1.442695, %v1866_v35  ;;  %v1865_v41 = vmin.f32 %v7903_v48, 20.0 }
 0x277   : > { %v6032_v4 = vpop.eup %6031  ;;  %v7897_v14 = vadd.f32 2.0, %v7883_v37  ;;  %v1956_v46 = vadd.f32 2.0, %v6030_v0  ;;  %6047 = vpow2.f32 %v1903_v50  ;;  %v2176_v22 = vmul.f32 %v7862_v11, %v7818_v29 }
 0x278   : > { %v6034_v33 = vpop.eup %6033  ;;  %v2076_v40 = vmul.f32 %v6032_v4, %v2012_v61  ;;  %v7900_v47 = vadd.f32 2.0, %v7888_v18  ;;  %6049 = vpow2.f32 %v1909_v62 }
 0x279   : > { %v6036_v7 = vpop.eup %6035  ;;  %v2075_v24 = vmul.f32 %v6034_v33, %v2011_v26  ;;  %6051 = vrcp.f32 %v7897_v14  ;;  %v7906_v2 = vmul.f32 %v6030_v0, %v1956_v46  ;;  %v7908_v30 = vpop.f32.mrb[18].mxu1  ;;  %v1911_v0 = vmul.f32 1.442695, %v1865_v41 }
 0x27a   : > { %v2108_v52 = vsub.f32 2.0, %v2076_v40  ;;  %6053 = vrcp.f32 %v7900_v47  ;;  %v1955_v61 = vadd.f32 2.0, %v6036_v7  ;;  %v7911_v23 = vpop.f32.mrb[19].mxu1 }
 0x27b   : > { %v6038_v12 = vpop.eup %6037  ;;  %v2107_v25 = vsub.f32 2.0, %v2075_v24  ;;  %v7916_v26 = vadd.f32 2.0, %v7906_v2  ;;  %6055 = vpow2.f32 %v1907_v36 }
 0x27c   : > { %v6040_v5 = vpop.eup %6039  ;;  %v2140_v53 = vmul.f32 %v6032_v4, %v2108_v52  ;;  %v2078_v57 = vmul.f32 %v6038_v12, %v7856_v16  ;;  %v7919_v42 = vmul.f32 %v6036_v7, %v1955_v61  ;;  %6057 = vpow2.f32 %v1913_v60 }
 0x27d   : > { %v6042_v20 = vpop.eup %6041  ;;  %v2139_v32 = vmul.f32 %v6034_v33, %v2107_v25  ;;  %v2077_v58 = vmul.f32 %v6040_v5, %v7859_v45  ;;  %6059 = vrcp.f32 %v7916_v26  ;;  %v7924_v6 = vpop.f32.mrb[20].mxu1 }
 0x27e   : > { %v2204_v54 = vmul.f32 %v2172_v28, %v2140_v53  ;;  %v2110_v55 = vsub.f32 2.0, %v2078_v57  ;;  %v7929_v16 = vadd.f32 2.0, %v7919_v42  ;;  %v7931_v1 = vpop.f32.mrb[21].mxu1  ;;  %v1958_v45 = vadd.f32 2.0, %v6042_v20 }
 0x27f   : > { %v6044_v50 = vpop.eup %6043  ;;  %v2203_v62 = vmul.f32 %v2171_v49, %v2139_v32  ;;  %v2109_v27 = vsub.f32 2.0, %v2077_v58  ;;  %v7936_v28 = vadd.f32 %v5371_v39, %v7791_v31  ;;  %v2178_v58 = vmul.f32 %v7883_v37, %v7829_v56 }
 0x280   : > { %v6046_v35 = vpop.eup %6045  ;;  %v2142_v4 = vmul.f32 %v6038_v12, %v2110_v55  ;;  %v2080_v46 = vmul.f32 %v6044_v50, %v7876_v9  ;;  %6061 = vrcp.f32 %v7929_v16  ;;  %v7939_v40 = vmul.f32 %v6042_v20, %v1958_v45 }
 0x281   : > { %v6048_v29 = vpop.eup %6047  ;;  %v2141_v11 = vmul.f32 %v6040_v5, %v2109_v27  ;;  %v2079_v33 = vmul.f32 %v6046_v35, %v7880_v21  ;;  %6063 = vpow2.f32 %v1911_v0  ;;  %v7941_v49 = vpop.f32.mrb[22].mxu1  ;;  %5401 = vmatprep.mubr.msk.f32.mxu1 %vm2241_vm1, %v2203_v62  ;;  %v2175_v9 = vmul.f32 %v7867_v51, %v7821_v10 }
 0x282   : > { %v6050_v7 = vpop.eup %6049  ;;  %v2112_v24 = vsub.f32 2.0, %v2080_v46  ;;  %v1957_v36 = vadd.f32 2.0, %v6048_v29  ;;  %v1868_v39 = vmin.f32 %v7936_v28, 20.0  ;;  %v7947_v52 = vpop.f32.mrb[23].mxu1  ;;  %5402 = vmatmul.mubr.msk.f32.vlgmr.msra.gmra.mrb[32].mxu1 %vm2241_vm1, %v2204_v54  ;;  %v2206_v61 = vmul.f32 %v7894_v34, %v2142_v4 }
 0x283   : > { %v6052_v21 = vpop.eup %6051  ;;  %v2205_v60 = vmul.f32 %v2173_v13, %v2141_v11  ;;  %v2111_v12 = vsub.f32 2.0, %v2079_v33  ;;  %v7952_v25 = vadd.f32 2.0, %v7939_v40  ;;  %5706 = vmatpush3.bf16.msra.mxu1 %v7815_v38  ;;  %v1960_v57 = vadd.f32 2.0, %v6050_v7 }
 0x284   : > { %v6054_v5 = vpop.eup %6053  ;;  %v2144_v53 = vmul.f32 %v6044_v50, %v2112_v24  ;;  %v2082_v10 = vmul.f32 %v6052_v21, %v7897_v14  ;;  %v7956_v51 = vmul.f32 %v6048_v29, %v1957_v36  ;;  %v1917_v55 = vmul.f32 1.442695, %v1868_v39 }
 0x285   : > { %v6056_v20 = vpop.eup %6055  ;;  %v2143_v32 = vmul.f32 %v6046_v35, %v2111_v12  ;;  %v2081_v34 = vmul.f32 %v6054_v5, %v7900_v47  ;;  %6065 = vrcp.f32 %v7952_v25  ;;  %v7962_v13 = vpop.f32.mrb[24].mxu1  ;;  %5404 = vmatprep.mubr.msk.f32.mxu1 %vm2241_vm1, %v2205_v60  ;;  %v7971_v62 = vmul.f32 %v6050_v7, %v1960_v57 }
 0x286   : > { %v6058_v38 = vpop.eup %6057  ;;  %v2208_v41 = vmul.f32 %v2176_v22, %v2144_v53  ;;  %v2114_v54 = vsub.f32 2.0, %v2082_v10  ;;  %v7966_v14 = vadd.f32 2.0, %v7956_v51  ;;  %v7968_v50 = vpop.f32.mrb[25].mxu1  ;;  %5405 = vmatmul.mubr.msk.f32.gmra.mrb[34].mxu1 %vm2241_vm1, %v2206_v61  ;;  %v1959_v27 = vadd.f32 2.0, %v6056_v20 }
 0x287   : > { %v6060_v56 = vpop.eup %6059  ;;  %v2207_v37 = vmul.f32 %v2175_v9, %v2143_v32  ;;  %v2113_v47 = vsub.f32 2.0, %v2081_v34  ;;  %v1962_v22 = vadd.f32 2.0, %v6058_v38  ;;  %v2177_v4 = vmul.f32 %v7888_v18, %v7832_v63 }
 0x288   : > { %v2146_v45 = vmul.f32 %v6052_v21, %v2114_v54  ;;  %v2084_v0 = vmul.f32 %v6060_v56, %v7916_v26  ;;  %6067 = vrcp.f32 %v7966_v14  ;;  %v7978_v46 = vadd.f32 2.0, %v7971_v62 }
 0x289   : > { %v2145_v35 = vmul.f32 %v6054_v5, %v2113_v47  ;;  %v7980_v29 = vmul.f32 %v6056_v20, %v1959_v27  ;;  %5407 = vmatprep.mubr.msk.f32.mxu1 %vm2241_vm1, %v2207_v37  ;;  %v2180_v7 = vmul.f32 %v7906_v2, %v7837_v43  ;;  %v7985_v26 = vmul.f32 %v6058_v38, %v1962_v22 }
 0x28a   : > { %v6062_v11 = vpop.eup %6061  ;;  %v2116_v33 = vsub.f32 2.0, %v2084_v0  ;;  %6069 = vpow2.f32 %v1917_v55  ;;  %5408 = vmatmul.mubr.msk.f32.gmra.mrb[36].mxu1 %vm2241_vm1, %v2208_v41  ;;  %v2210_v36 = vmul.f32 %v2178_v58, %v2146_v45  ;;  %v2179_v21 = vmul.f32 %v7919_v42, %v7840_v15 }
 0x28b   : > { %v6064_v24 = vpop.eup %6063  ;;  %v2209_v9 = vmul.f32 %v2177_v4, %v2145_v35  ;;  %v2083_v63 = vmul.f32 %v6062_v11, %v7929_v16  ;;  %6071 = vrcp.f32 %v7978_v46  ;;  %v7991_v18 = vadd.f32 2.0, %v7980_v29 }
 0x28c   : > { %v2148_v39 = vmul.f32 %v6060_v56, %v2116_v33  ;;  %v7996_v43 = vadd.f32 2.0, %v7985_v26  ;;  %v1961_v61 = vadd.f32 2.0, %v6064_v24  ;;  %v8001_v16 = vadd.f32 %v7791_v31, %v7891_v3  ;;  %v8003_v60 = vpop.f32.mrb[26].mxu1 }
 0x28d   : > { %v2115_v2 = vsub.f32 2.0, %v2083_v63  ;;  %6073 = vrcp.f32 %v7991_v18  ;;  %5410 = vmatprep.mubr.msk.f32.mxu1 %vm2241_vm1, %v2209_v9  ;;  %v2182_v12 = vmul.f32 %v7939_v40, %v7845_v17  ;;  %v8011_v15 = vadd.f32 %v7908_v30, %v7791_v31  ;;  %v8017_v5 = vpop.f32.mrb[27].mxu1 }
 0x28e   : > { %6075 = vrcp.f32 %v7996_v43  ;;  %v8015_v42 = vadd.f32 %v7791_v31, %v7911_v23  ;;  %5411 = vmatmul.mubr.msk.f32.gmra.mrb[38].mxu1 %vm2241_vm1, %v2210_v36  ;;  %v8020_v10 = vmul.f32 %v6064_v24, %v1961_v61  ;;  %v1867_v17 = vmin.f32 %v8001_v16, 20.0 }
 0x28f   : > { %v6066_v3 = vpop.eup %6065  ;;  %v2147_v53 = vmul.f32 %v6062_v11, %v2115_v2  ;;  %v8025_v40 = vadd.f32 %v7924_v6, %v7791_v31  ;;  %v1870_v57 = vmin.f32 %v8011_v15, 20.0  ;;  %v8032_v20 = vadd.f32 %v7791_v31, %v7931_v1 }
 0x290   : > { %v2086_v30 = vmul.f32 %v6066_v3, %v7952_v25  ;;  %v1869_v23 = vmin.f32 %v8015_v42, 20.0  ;;  %v2212_v32 = vmul.f32 %v2180_v7, %v2148_v39  ;;  %v8035_v34 = vadd.f32 2.0, %v8020_v10  ;;  %v8037_v41 = vpop.f32.mrb[28].mxu1 }
 0x291   : > { %v2211_v58 = vmul.f32 %v2179_v21, %v2147_v53  ;;  %v1915_v38 = vmul.f32 1.442695, %v1867_v17  ;;  %v1921_v55 = vmul.f32 1.442695, %v1870_v57  ;;  %v1872_v56 = vmin.f32 %v8025_v40, 20.0  ;;  %v8047_v27 = vpop.f32.mrb[29].mxu1 }
 0x292   : > { %v6068_v6 = vpop.eup %6067  ;;  %v2118_v54 = vsub.f32 2.0, %v2086_v30  ;;  %v1919_v25 = vmul.f32 1.442695, %v1869_v23  ;;  %6077 = vrcp.f32 %v8035_v34  ;;  %v1871_v1 = vmin.f32 %v8032_v20, 20.0 }
 0x293   : > { %v2085_v37 = vmul.f32 %v6068_v6, %v7966_v14  ;;  %v8045_v47 = vadd.f32 %v7941_v49, %v7791_v31  ;;  %5413 = vmatprep.mubr.msk.f32.mxu1 %vm2241_vm1, %v2211_v58  ;;  %v2181_v0 = vmul.f32 %v7956_v51, %v7849_v59  ;;  %6079 = vpow2.f32 %v1915_v38 }
 0x294   : > { %v6070_v45 = vpop.eup %6069  ;;  %v1925_v22 = vmul.f32 1.442695, %v1872_v56  ;;  %v8054_v14 = vadd.f32 %v7791_v31, %v7947_v52  ;;  %5414 = vmatmul.mubr.msk.f32.gmra.mrb[40].mxu1 %vm2241_vm1, %v2212_v32  ;;  %6081 = vpow2.f32 %v1921_v55  ;;  %v1923_v11 = vmul.f32 1.442695, %v1871_v1 }
 0x295   : > { %v6072_v35 = vpop.eup %6071  ;;  %v2117_v4 = vsub.f32 2.0, %v2085_v37  ;;  %v1964_v49 = vadd.f32 2.0, %v6070_v45  ;;  %v2150_v33 = vmul.f32 %v6066_v3, %v2118_v54  ;;  %6083 = vpow2.f32 %v1919_v25 }
 0x296   : > { %v2088_v7 = vmul.f32 %v6072_v35, %v7978_v46  ;;  %v1874_v24 = vmin.f32 %v8045_v47, 20.0  ;;  %6085 = vpow2.f32 %v1925_v22  ;;  %v1873_v52 = vmin.f32 %v8054_v14, 20.0 }
 0x297   : > { %v6074_v59 = vpop.eup %6073  ;;  %v2149_v51 = vmul.f32 %v6068_v6, %v2117_v4  ;;  %v8059_v9 = vmul.f32 %v6070_v45, %v1964_v49  ;;  %6087 = vpow2.f32 %v1923_v11  ;;  %v2214_v3 = vmul.f32 %v2182_v12, %v2150_v33 }
 0x298   : > { %v6076_v63 = vpop.eup %6075  ;;  %v2120_v36 = vsub.f32 2.0, %v2088_v7  ;;  %v2087_v39 = vmul.f32 %v6074_v59, %v7991_v18  ;;  %v1929_v21 = vmul.f32 1.442695, %v1874_v24  ;;  %v1927_v17 = vmul.f32 1.442695, %v1873_v52 }
 0x299   : > { %v2213_v2 = vmul.f32 %v2181_v0, %v2149_v51  ;;  %v2090_v61 = vmul.f32 %v6076_v63, %v7996_v43  ;;  %v8065_v46 = vadd.f32 2.0, %v8059_v9  ;;  %v2184_v57 = vmul.f32 %v7971_v62, %v7854_v8 }
 0x29a   : > { %v2119_v53 = vsub.f32 2.0, %v2087_v39  ;;  %6089 = vpow2.f32 %v1929_v21  ;;  %v2152_v30 = vmul.f32 %v6072_v35, %v2120_v36  ;;  %v8071_v23 = vadd.f32 %v7962_v13, %v7791_v31 }
 0x29b   : > { %v8075_v18 = vadd.f32 %v7791_v31, %v7968_v50  ;;  %v8077_v43 = vpop.f32.mrb[30].mxu1  ;;  %5416 = vmatprep.mubr.msk.f32.mxu1 %vm2241_vm1, %v2213_v2  ;;  %v2183_v32 = vmul.f32 %v7980_v29, %v7870_v19  ;;  %v2122_v58 = vsub.f32 2.0, %v2090_v61  ;;  %6091 = vpow2.f32 %v1927_v17 }
 0x29c   : > { %v2151_v12 = vmul.f32 %v6074_v59, %v2119_v53  ;;  %v8082_v38 = vpop.f32.mrb[31].mxu1  ;;  %5417 = vmatmul.mubr.msk.f32.gmra.mrb[42].mxu1 %vm2241_vm1, %v2214_v3  ;;  %v6078_v8 = vpop.eup %6077  ;;  %6093 = vrcp.f32 %v8065_v46  ;;  %v1876_v13 = vmin.f32 %v8071_v23, 20.0  ;;  %v8090_v62 = vadd.f32 %v8003_v60, %v7791_v31 }
 0x29d   : > { %v1875_v50 = vmin.f32 %v8075_v18, 20.0  ;;  %v6080_v6 = vpop.eup %6079  ;;  %v2186_v19 = vmul.f32 %v7985_v26, %v7873_v44  ;;  %v2089_v29 = vmul.f32 %v6078_v8, %v8035_v34  ;;  %v2185_v55 = vmul.f32 %v8020_v10, %v7903_v48 }
 0x29e   : > { %v2215_v54 = vmul.f32 %v2183_v32, %v2151_v12  ;;  %v6082_v25 = vpop.eup %6081  ;;  %v2216_v56 = vmul.f32 %v2184_v57, %v2152_v30  ;;  %v1963_v37 = vadd.f32 2.0, %v6080_v6  ;;  %v1933_v1 = vmul.f32 1.442695, %v1876_v13 }
 0x29f   : > { %v1931_v45 = vmul.f32 1.442695, %v1875_v50  ;;  %v6084_v0 = vpop.eup %6083  ;;  %v2154_v22 = vmul.f32 %v6076_v63, %v2122_v58  ;;  %v2121_v35 = vsub.f32 2.0, %v2089_v29  ;;  %v1966_v60 = vadd.f32 2.0, %v6082_v25 }
 0x2a0   : > { %v8099_v4 = vadd.f32 %v7791_v31, %v8017_v5  ;;  %5419 = vmatprep.mubr.msk.f32.mxu1 %vm2241_vm1, %v2215_v54  ;;  %v6086_v44 = vpop.eup %6085  ;;  %v8102_v26 = vmul.f32 %v6080_v6, %v1963_v37  ;;  %v1965_v34 = vadd.f32 2.0, %v6084_v0  ;;  %6095 = vpow2.f32 %v1933_v1 }
 0x2a1   : > { %v1878_v48 = vmin.f32 %v8090_v62, 20.0  ;;  %5420 = vmatmul.mubr.msk.f32.gmra.mrb[44].mxu1 %vm2241_vm1, %v2216_v56  ;;  %v6088_v10 = vpop.eup %6087  ;;  %v2153_v49 = vmul.f32 %v6078_v8, %v2121_v35  ;;  %v8106_v11 = vmul.f32 %v6082_v25, %v1966_v60  ;;  %v1968_v33 = vadd.f32 2.0, %v6086_v44 }
 0x2a2   : > { %6097 = vpow2.f32 %v1931_v45  ;;  %v2027_v5 = vadd.f32 2.0, %v8102_v26  ;;  %v8109_v7 = vmul.f32 %v6084_v0, %v1965_v34  ;;  %v1967_v24 = vadd.f32 2.0, %v6088_v10 }
 0x2a3   : > { %v8113_v59 = vadd.f32 %v8037_v41, %v7791_v31  ;;  %v2217_v52 = vmul.f32 %v2185_v55, %v2153_v49  ;;  %v2030_v63 = vadd.f32 2.0, %v8106_v11  ;;  %v8116_v36 = vmul.f32 %v6086_v44, %v1968_v33 }
 0x2a4   : > { %v6090_v51 = vpop.eup %6089  ;;  %v1877_v39 = vmin.f32 %v8099_v4, 20.0  ;;  %v2218_v21 = vmul.f32 %v2186_v19, %v2154_v22  ;;  %6099 = vrcp.f32 %v2027_v5  ;;  %v2029_v2 = vadd.f32 2.0, %v8109_v7 }
 0x2a5   : > { %v8120_v61 = vmul.f32 %v6088_v10, %v1967_v24  ;;  %v6092_v3 = vpop.eup %6091  ;;  %6101 = vrcp.f32 %v2030_v63  ;;  %v2032_v53 = vadd.f32 2.0, %v8116_v36  ;;  %v1937_v41 = vmul.f32 1.442695, %v1878_v48  ;;  %5422 = vmatprep.mubr.msk.f32.mxu1 %vm2241_vm1, %v2217_v52 }
 0x2a6   : > { %v6094_v17 = vpop.eup %6093  ;;  %6103 = vrcp.f32 %v2029_v2  ;;  %v1970_v57 = vadd.f32 2.0, %v6090_v51  ;;  %v1880_v12 = vmin.f32 %v8113_v59, 20.0  ;;  %5423 = vmatmul.mubr.msk.f32.gmra.mrb[46].mxu1 %vm2241_vm1, %v2218_v21  ;;  %v1969_v32 = vadd.f32 2.0, %v6092_v3 }
 0x2a7   : > { %v2031_v30 = vadd.f32 2.0, %v8120_v61  ;;  %6105 = vrcp.f32 %v2032_v53  ;;  %v1935_v58 = vmul.f32 1.442695, %v1877_v39  ;;  %v8131_v13 = vadd.f32 %v7791_v31, %v8047_v27 }
 0x2a8   : > { %v8127_v8 = vmul.f32 %v6090_v51, %v1970_v57  ;;  %v2092_v50 = vmul.f32 %v6094_v17, %v8065_v46  ;;  %v8134_v6 = vmul.f32 %v6092_v3, %v1969_v32  ;;  %v8138_v54 = vadd.f32 %v8077_v43, %v7791_v31 }
 0x2a9   : > { %6107 = vrcp.f32 %v2031_v30  ;;  %v1941_v55 = vmul.f32 1.442695, %v1880_v12  ;;  %v1879_v25 = vmin.f32 %v8131_v13, 20.0  ;;  %v2188_v43 = vmul.f32 %v8059_v9, %v7936_v28 }
 0x2aa   : > { %6109 = vpow2.f32 %v1937_v41  ;;  %v6096_v19 = vpop.eup %6095  ;;  %v2034_v29 = vadd.f32 2.0, %v8127_v8  ;;  %v2033_v27 = vadd.f32 2.0, %v8134_v6  ;;  %v1882_v45 = vmin.f32 %v8138_v54, 20.0 }
 0x2ab   : > { %6111 = vpow2.f32 %v1935_v58  ;;  %v1972_v37 = vadd.f32 2.0, %v6096_v19  ;;  %v1939_v1 = vmul.f32 1.442695, %v1879_v25  ;;  %v8150_v22 = vadd.f32 %v7791_v31, %v8082_v38 }
 0x2ac   : > { %v6098_v56 = vpop.eup %6097  ;;  %6113 = vrcp.f32 %v2034_v29  ;;  %v2124_v60 = vsub.f32 2.0, %v2092_v50  ;;  %v1945_v34 = vmul.f32 1.442695, %v1882_v45  ;;  %v2187_v49 = vmul.f32 %v8102_v26, %v8001_v16 }
 0x2ad   : > { %v1971_v46 = vadd.f32 2.0, %v6098_v56  ;;  %6115 = vrcp.f32 %v2033_v27  ;;  %v8146_v0 = vmul.f32 %v6096_v19, %v1972_v37  ;;  %v2190_v31 = vmul.f32 %v8106_v11, %v8011_v15 }
 0x2ae   : > { %v6100_v35 = vpop.eup %6099  ;;  %6117 = vpow2.f32 %v1941_v55  ;;  %v1881_v16 = vmin.f32 %v8150_v22, 20.0 }
 0x2af   : > { %v8152_v44 = vmul.f32 %v6098_v56, %v1971_v46  ;;  %v6102_v48 = vpop.eup %6101  ;;  %v2091_v10 = vmul.f32 %v6100_v35, %v2027_v5  ;;  %v8157_v28 = vadd.f32 2.0, %v8146_v0  ;;  %6119 = vpow2.f32 %v1939_v1 }
 0x2b0   : > { %v6104_v9 = vpop.eup %6103  ;;  %v2094_v33 = vmul.f32 %v6102_v48, %v2030_v63  ;;  %6121 = vpow2.f32 %v1945_v34  ;;  %v2156_v5 = vmul.f32 %v6094_v17, %v2124_v60  ;;  %v1943_v41 = vmul.f32 1.442695, %v1881_v16 }
 0x2b1   : > { %v8162_v38 = vadd.f32 2.0, %v8152_v44  ;;  %v6106_v24 = vpop.eup %6105  ;;  %v2123_v51 = vsub.f32 2.0, %v2091_v10  ;;  %v2093_v52 = vmul.f32 %v6104_v9, %v2029_v2  ;;  %6123 = vrcp.f32 %v8157_v28 }
 0x2b2   : > { %v2126_v39 = vsub.f32 2.0, %v2094_v33  ;;  %v2096_v21 = vmul.f32 %v6106_v24, %v2032_v53  ;;  %v2189_v2 = vmul.f32 %v8109_v7, %v8015_v42  ;;  %v2220_v53 = vmul.f32 %v2188_v43, %v2156_v5 }
 0x2b3   : > { %v6108_v26 = vpop.eup %6107  ;;  %6125 = vrcp.f32 %v8162_v38  ;;  %v2155_v3 = vmul.f32 %v6100_v35, %v2123_v51  ;;  %v2125_v15 = vsub.f32 2.0, %v2093_v52  ;;  %v2191_v56 = vmul.f32 %v8120_v61, %v8032_v20 }
 0x2b4   : > { %v6110_v63 = vpop.eup %6109  ;;  %v2095_v11 = vmul.f32 %v6108_v26, %v2031_v30  ;;  %v2158_v12 = vmul.f32 %v6102_v48, %v2126_v39  ;;  %v2128_v32 = vsub.f32 2.0, %v2096_v21  ;;  %6127 = vpow2.f32 %v1943_v41 }
 0x2b5   : > { %v6112_v57 = vpop.eup %6111  ;;  %v1974_v58 = vadd.f32 2.0, %v6110_v63  ;;  %v2219_v50 = vmul.f32 %v2187_v49, %v2155_v3  ;;  %v2157_v19 = vmul.f32 %v6104_v9, %v2125_v15 }
 0x2b6   : > { %v2127_v55 = vsub.f32 2.0, %v2095_v11  ;;  %v1973_v17 = vadd.f32 2.0, %v6112_v57  ;;  %v6114_v25 = vpop.eup %6113  ;;  %v2222_v7 = vmul.f32 %v2190_v31, %v2158_v12  ;;  %v2160_v20 = vmul.f32 %v6106_v24, %v2128_v32 }
 0x2b7   : > { %v8171_v37 = vmul.f32 %v6110_v63, %v1974_v58  ;;  %v6116_v30 = vpop.eup %6115  ;;  %v2221_v46 = vmul.f32 %v2189_v2, %v2157_v19  ;;  %v2098_v45 = vmul.f32 %v6114_v25, %v2034_v29  ;;  %5425 = vmatprep.mubr.msk.f32.mxu1 %vm2241_vm1, %v2219_v50  ;;  %v2193_v31 = vmul.f32 %v8134_v6, %v8054_v14 }
 0x2b8   : > { %v2159_v1 = vmul.f32 %v6108_v26, %v2127_v55  ;;  %v8173_v35 = vmul.f32 %v6112_v57, %v1973_v17  ;;  %v6118_v42 = vpop.eup %6117  ;;  %v2097_v60 = vmul.f32 %v6116_v30, %v2033_v27  ;;  %5426 = vmatmul.mubr.msk.f32.gmra.mrb[48].mxu1 %vm2241_vm1, %v2220_v53  ;;  %v2192_v27 = vmul.f32 %v8116_v36, %v8025_v40 }
 0x2b9   : > { %v2038_v34 = vadd.f32 2.0, %v8171_v37  ;;  %v6120_v43 = vpop.eup %6119  ;;  %v2130_v48 = vsub.f32 2.0, %v2098_v45  ;;  %5428 = vmatprep.mubr.msk.f32.mxu1 %vm2241_vm1, %v2221_v46  ;;  %v1976_v9 = vadd.f32 2.0, %v6118_v42  ;;  %v2194_v57 = vmul.f32 %v8127_v8, %v8045_v47 }
 0x2ba   : > { %v2223_v61 = vmul.f32 %v2191_v56, %v2159_v1  ;;  %v2037_v10 = vadd.f32 2.0, %v8173_v35  ;;  %v6122_v29 = vpop.eup %6121  ;;  %v2129_v49 = vsub.f32 2.0, %v2097_v60  ;;  %v1975_v33 = vadd.f32 2.0, %v6120_v43 }
 0x2bb   : > { %6129 = vrcp.f32 %v2038_v34  ;;  %v6124_v51 = vpop.eup %6123  ;;  %v1978_v24 = vadd.f32 2.0, %v6122_v29  ;;  %v2008_v5 = vmul.f32 %v6118_v42, %v1976_v9  ;;  %v2224_v21 = vmul.f32 %v2192_v27, %v2160_v20 }
 0x2bc   : > { %6131 = vrcp.f32 %v2037_v10  ;;  %v2161_v16 = vmul.f32 %v6116_v30, %v2129_v49  ;;  %v2100_v26 = vmul.f32 %v6124_v51, %v8157_v28  ;;  %v2007_v39 = vmul.f32 %v6120_v43, %v1975_v33  ;;  %5429 = vmatmul.mubr.msk.f32.gmra.mrb[50].mxu1 %vm2241_vm1, %v2222_v7 }
 0x2bd   : > { %v6126_v52 = vpop.eup %6125  ;;  %v8187_v3 = vmul.f32 %v6122_v29, %v1978_v24  ;;  %5431 = vmatprep.mubr.msk.f32.mxu1 %vm2241_vm1, %v2223_v61  ;;  %v2162_v40 = vmul.f32 %v6114_v25, %v2130_v48  ;;  %v2040_v6 = vadd.f32 2.0, %v2008_v5  ;;  %v2195_v12 = vmul.f32 %v8152_v44, %v8075_v18 }
 0x2be   : > { %v2099_v63 = vmul.f32 %v6126_v52, %v8162_v38  ;;  %v2225_v36 = vmul.f32 %v2193_v31, %v2161_v16  ;;  %v2132_v14 = vsub.f32 2.0, %v2100_v26  ;;  %v2039_v11 = vadd.f32 2.0, %v2007_v39  ;;  %v6128_v28 = vpop.eup %6127 }
 0x2bf   : > { %v2042_v41 = vadd.f32 2.0, %v8187_v3  ;;  %6133 = vrcp.f32 %v2040_v6  ;;  %v1977_v2 = vadd.f32 2.0, %v6128_v28  ;;  %v2226_v32 = vmul.f32 %v2194_v57, %v2162_v40 }
 0x2c0   : > { %v2131_v15 = vsub.f32 2.0, %v2099_v63  ;;  %5432 = vmatmul.mubr.msk.f32.gmra.mrb[52].mxu1 %vm2241_vm1, %v2224_v21  ;;  %6135 = vrcp.f32 %v2039_v11  ;;  %v2164_v58 = vmul.f32 %v6124_v51, %v2132_v14  ;;  %v2196_v47 = vmul.f32 %v8146_v0, %v8071_v23 }
 0x2c1   : > { %5434 = vmatprep.mubr.msk.f32.mxu1 %vm2241_vm1, %v2225_v36  ;;  %6137 = vrcp.f32 %v2042_v41  ;;  %v2009_v19 = vmul.f32 %v6128_v28, %v1977_v2  ;;  %v2197_v23 = vmul.f32 %v8173_v35, %v8099_v4  ;;  %v2198_v45 = vmul.f32 %v8171_v37, %v8090_v62 }
 0x2c2   : > { %v2163_v38 = vmul.f32 %v6126_v52, %v2131_v15  ;;  %v2228_v18 = vmul.f32 %v2196_v47, %v2164_v58  ;;  %v2199_v4 = vmul.f32 %v2007_v39, %v8131_v13  ;;  %v2200_v49 = vmul.f32 %v2008_v5, %v8113_v59  ;;  %v8220_v59 = vld [vmem:[%s9374_s6] ss:$0 sm:$0xff] }
 0x2c3   : > { %v2041_v25 = vadd.f32 2.0, %v2009_v19  ;;  %v2201_v24 = vmul.f32 %v2009_v19, %v8150_v22  ;;  %v2202_v52 = vmul.f32 %v8187_v3, %v8138_v54 }
 0x2c4   : > { %v2227_v50 = vmul.f32 %v2195_v12, %v2163_v38  ;;  %5435 = vmatmul.mubr.msk.f32.gmra.mrb[54].mxu1 %vm2241_vm1, %v2226_v32 }
 0x2c5   : > { %v6130_v55 = vpop.eup %6129  ;;  %6139 = vrcp.f32 %v2041_v25 }
 0x2c6   : > { %v6132_v8 = vpop.eup %6131  ;;  %v2102_v17 = vmul.f32 %v6130_v55, %v2038_v34  ;;  %5437 = vmatprep.mubr.msk.f32.mxu1 %vm2241_vm1, %v2227_v50 }
 0x2c7   : > { %v2101_v44 = vmul.f32 %v6132_v8, %v2037_v10 }
 0x2c8   : > { %v2134_v53 = vsub.f32 2.0, %v2102_v17  ;;  %5438 = vmatmul.mubr.msk.f32.gmra.mrb[56].mxu1 %vm2241_vm1, %v2228_v18 }
 0x2c9   : > { %v2133_v56 = vsub.f32 2.0, %v2101_v44  ;;  %v6134_v46 = vpop.eup %6133 }
 0x2ca   : > { %v2166_v30 = vmul.f32 %v6130_v55, %v2134_v53  ;;  %v6136_v0 = vpop.eup %6135  ;;  %v2104_v42 = vmul.f32 %v6134_v46, %v2040_v6 }
 0x2cb   : > { %v2165_v1 = vmul.f32 %v6132_v8, %v2133_v56  ;;  %v6138_v7 = vpop.eup %6137  ;;  %v2103_v34 = vmul.f32 %v6136_v0, %v2039_v11 }
 0x2cc   : > { %v2230_v43 = vmul.f32 %v2198_v45, %v2166_v30  ;;  %v2136_v20 = vsub.f32 2.0, %v2104_v42  ;;  %v2106_v61 = vmul.f32 %v6138_v7, %v2042_v41 }
 0x2cd   : > { %v2229_v60 = vmul.f32 %v2197_v23, %v2165_v1  ;;  %v2135_v48 = vsub.f32 2.0, %v2103_v34 }
 0x2ce   : > { %v2168_v10 = vmul.f32 %v6134_v46, %v2136_v20  ;;  %v2138_v62 = vsub.f32 2.0, %v2106_v61 }
 0x2cf   : > { %5440 = vmatprep.mubr.msk.f32.mxu1 %vm2241_vm1, %v2229_v60  ;;  %v2167_v29 = vmul.f32 %v6136_v0, %v2135_v48  ;;  %v6140_v35 = vpop.eup %6139 }
 0x2d0   : > { %5441 = vmatmul.mubr.msk.f32.gmra.mrb[58].mxu1 %vm2241_vm1, %v2230_v43  ;;  %v2105_v9 = vmul.f32 %v6140_v35, %v2041_v25  ;;  %v2232_v33 = vmul.f32 %v2200_v49, %v2168_v10  ;;  %v2170_v27 = vmul.f32 %v6138_v7, %v2138_v62 }
 0x2d1   : > { %v2231_v37 = vmul.f32 %v2199_v4, %v2167_v29 }
 0x2d2   : > { %v2137_v51 = vsub.f32 2.0, %v2105_v9  ;;  %v2234_v16 = vmul.f32 %v2202_v52, %v2170_v27 }
 0x2d3   : > { %5443 = vmatprep.mubr.msk.f32.mxu1 %vm2241_vm1, %v2231_v37 }
 0x2d4   : > { %5444 = vmatmul.mubr.msk.f32.gmra.mrb[60].mxu1 %vm2241_vm1, %v2232_v33  ;;  %v2169_v31 = vmul.f32 %v6140_v35, %v2137_v51 }
 0x2d6   : > { %v2233_v13 = vmul.f32 %v2201_v24, %v2169_v31 }
 0x2d8   : > { %5446 = vmatprep.mubr.msk.f32.mxu1 %vm2241_vm1, %v2233_v13 }
 0x2d9   : > { %5447 = vmatmul.mubr.msk.f32.gmra.mrb[62].mxu1 %vm2241_vm1, %v2234_v16 }
 0x355   : > { %v5403_v26 = vpop.f32.mrb[32].mxu1 }
 0x356   : > { %v8223_v5 = vadd.f32 %v5403_v26, %v8220_v59  ;;  %v2404_v39 = vpop.f32.mrb[33].mxu1 }
 0x357   : > { %v8226_v22 = vadd.f32 %v8220_v59, %v2404_v39 }
 0x358   : > { %v2567_v54 = vmin.f32 %v8223_v5, 20.0 }
 0x359   : > { %v2566_v21 = vmin.f32 %v8226_v22, 20.0  ;;  %v5406_v63 = vpop.f32.mrb[34].mxu1 }
 0x35a   : > { %v2600_v3 = vmul.f32 1.442695, %v2567_v54  ;;  %v8231_v40 = vadd.f32 %v5406_v63, %v8220_v59  ;;  %v2414_v36 = vpop.f32.mrb[35].mxu1 }
 0x35b   : > { %v2598_v14 = vmul.f32 1.442695, %v2566_v21  ;;  %v8234_v6 = vadd.f32 %v8220_v59, %v2414_v36 }
 0x35c   : > { %6141 = vpow2.f32 %v2600_v3  ;;  %v2569_v15 = vmin.f32 %v8231_v40, 20.0 }
 0x35d   : > { %6143 = vpow2.f32 %v2598_v14  ;;  %v2568_v11 = vmin.f32 %v8234_v6, 20.0  ;;  %v5409_v41 = vpop.f32.mrb[36].mxu1 }
 0x35e   : > { %v2604_v28 = vmul.f32 1.442695, %v2569_v15  ;;  %v8239_v57 = vadd.f32 %v5409_v41, %v8220_v59  ;;  %v2424_v38 = vpop.f32.mrb[37].mxu1 }
 0x35f   : > { %v2602_v12 = vmul.f32 1.442695, %v2568_v11  ;;  %v8242_v2 = vadd.f32 %v8220_v59, %v2424_v38 }
 0x360   : > { %6145 = vpow2.f32 %v2604_v28  ;;  %v2571_v32 = vmin.f32 %v8239_v57, 20.0 }
 0x361   : > { %6147 = vpow2.f32 %v2602_v12  ;;  %v2570_v58 = vmin.f32 %v8242_v2, 20.0  ;;  %v5412_v50 = vpop.f32.mrb[38].mxu1 }
 0x362   : > { %v2608_v19 = vmul.f32 1.442695, %v2571_v32  ;;  %v8247_v55 = vadd.f32 %v5412_v50, %v8220_v59  ;;  %v2434_v47 = vpop.f32.mrb[39].mxu1 }
 0x363   : > { %v2606_v8 = vmul.f32 1.442695, %v2570_v58  ;;  %v8250_v17 = vadd.f32 %v8220_v59, %v2434_v47 }
 0x364   : > { %6149 = vpow2.f32 %v2608_v19  ;;  %v2573_v25 = vmin.f32 %v8247_v55, 20.0 }
 0x365   : > { %6151 = vpow2.f32 %v2606_v8  ;;  %v2572_v18 = vmin.f32 %v8250_v17, 20.0 }
 0x366   : > { %v6142_v44 = vpop.eup %6141  ;;  %v2612_v53 = vmul.f32 1.442695, %v2573_v25 }
 0x367   : > { %v6144_v56 = vpop.eup %6143  ;;  %v2663_v30 = vadd.f32 2.0, %v6142_v44  ;;  %v2610_v46 = vmul.f32 1.442695, %v2572_v18  ;;  %v5415_v1 = vpop.f32.mrb[40].mxu1 }
 0x368   : > { %v2662_v23 = vadd.f32 2.0, %v6144_v56  ;;  %6153 = vpow2.f32 %v2612_v53  ;;  %v8255_v0 = vadd.f32 %v5415_v1, %v8220_v59  ;;  %v2444_v45 = vpop.f32.mrb[41].mxu1 }
 0x369   : > { %v2695_v42 = vmul.f32 %v6142_v44, %v2663_v30  ;;  %6155 = vpow2.f32 %v2610_v46  ;;  %v8258_v7 = vadd.f32 %v8220_v59, %v2444_v45 }
 0x36a   : > { %v6146_v60 = vpop.eup %6145  ;;  %v2694_v34 = vmul.f32 %v6144_v56, %v2662_v23  ;;  %v2575_v43 = vmin.f32 %v8255_v0, 20.0 }
 0x36b   : > { %v6148_v20 = vpop.eup %6147  ;;  %v2727_v61 = vadd.f32 2.0, %v2695_v42  ;;  %v2665_v48 = vadd.f32 2.0, %v6146_v60  ;;  %v2574_v10 = vmin.f32 %v8258_v7, 20.0  ;;  %v2887_v25 = vmul.f32 %v2695_v42, %v8223_v5 }
 0x36c   : > { %v2726_v29 = vadd.f32 2.0, %v2694_v34  ;;  %v2664_v4 = vadd.f32 2.0, %v6148_v20  ;;  %v2616_v35 = vmul.f32 1.442695, %v2575_v43  ;;  %v2886_v30 = vmul.f32 %v2694_v34, %v8226_v22 }
 0x36d   : > { %6157 = vrcp.f32 %v2727_v61  ;;  %v2697_v49 = vmul.f32 %v6146_v60, %v2665_v48  ;;  %v2614_v62 = vmul.f32 1.442695, %v2574_v10 }
 0x36e   : > { %v6150_v37 = vpop.eup %6149  ;;  %6159 = vrcp.f32 %v2726_v29  ;;  %v8262_v9 = vmul.f32 %v6148_v20, %v2664_v4 }
 0x36f   : > { %v6152_v33 = vpop.eup %6151  ;;  %v2729_v51 = vadd.f32 2.0, %v2697_v49  ;;  %v2667_v27 = vadd.f32 2.0, %v6150_v37  ;;  %6161 = vpow2.f32 %v2616_v35  ;;  %v5418_v31 = vpop.f32.mrb[42].mxu1  ;;  %v2889_v43 = vmul.f32 %v2697_v49, %v8231_v40 }
 0x370   : > { %v2728_v24 = vadd.f32 2.0, %v8262_v9  ;;  %v2666_v52 = vadd.f32 2.0, %v6152_v33  ;;  %6163 = vpow2.f32 %v2614_v62  ;;  %v2454_v13 = vpop.f32.mrb[43].mxu1  ;;  %v8266_v26 = vadd.f32 %v5418_v31, %v8220_v59 }
 0x371   : > { %6165 = vrcp.f32 %v2729_v51  ;;  %v2699_v16 = vmul.f32 %v6150_v37, %v2667_v27  ;;  %v8269_v39 = vadd.f32 %v8220_v59, %v2454_v13 }
 0x372   : > { %v6154_v54 = vpop.eup %6153  ;;  %6167 = vrcp.f32 %v2728_v24  ;;  %v8271_v21 = vmul.f32 %v6152_v33, %v2666_v52  ;;  %v2577_v14 = vmin.f32 %v8266_v26, 20.0  ;;  %v2888_v52 = vmul.f32 %v8262_v9, %v8234_v6 }
 0x373   : > { %v6156_v63 = vpop.eup %6155  ;;  %v8273_v3 = vadd.f32 2.0, %v2699_v16  ;;  %v2669_v36 = vadd.f32 2.0, %v6154_v54  ;;  %v2576_v41 = vmin.f32 %v8269_v39, 20.0  ;;  %v2891_v13 = vmul.f32 %v2699_v16, %v8239_v57 }
 0x374   : > { %v8277_v15 = vadd.f32 2.0, %v8271_v21  ;;  %v2668_v11 = vadd.f32 2.0, %v6156_v63  ;;  %v5421_v28 = vpop.f32.mrb[44].mxu1  ;;  %v2620_v12 = vmul.f32 1.442695, %v2577_v14 }
 0x375   : > { %6169 = vrcp.f32 %v8273_v3  ;;  %v8281_v38 = vmul.f32 %v6154_v54, %v2669_v36  ;;  %v8284_v32 = vadd.f32 %v5421_v28, %v8220_v59  ;;  %v2464_v58 = vpop.f32.mrb[45].mxu1  ;;  %v2618_v19 = vmul.f32 1.442695, %v2576_v41 }
 0x376   : > { %6171 = vrcp.f32 %v8277_v15  ;;  %v8287_v50 = vmul.f32 %v6156_v63, %v2668_v11  ;;  %v8290_v47 = vadd.f32 %v8220_v59, %v2464_v58 }
 0x377   : > { %v6158_v8 = vpop.eup %6157  ;;  %v8294_v18 = vadd.f32 2.0, %v8281_v38  ;;  %6173 = vpow2.f32 %v2620_v12  ;;  %v2579_v44 = vmin.f32 %v8284_v32, 20.0 }
 0x378   : > { %v6160_v53 = vpop.eup %6159  ;;  %v2791_v56 = vmul.f32 %v6158_v8, %v2727_v61  ;;  %v8299_v46 = vadd.f32 2.0, %v8287_v50  ;;  %6175 = vpow2.f32 %v2618_v19  ;;  %v2578_v5 = vmin.f32 %v8290_v47, 20.0 }
 0x379   : > { %v6162_v1 = vpop.eup %6161  ;;  %v2790_v23 = vmul.f32 %v6160_v53, %v2726_v29  ;;  %6177 = vrcp.f32 %v8294_v18  ;;  %v2624_v45 = vmul.f32 1.442695, %v2579_v44  ;;  %v5424_v61 = vpop.f32.mrb[46].mxu1 }
 0x37a   : > { %v6164_v42 = vpop.eup %6163  ;;  %v2823_v60 = vsub.f32 2.0, %v2791_v56  ;;  %6179 = vrcp.f32 %v8299_v46  ;;  %v2671_v20 = vadd.f32 2.0, %v6162_v1  ;;  %v2622_v10 = vmul.f32 1.442695, %v2578_v5  ;;  %v2474_v4 = vpop.f32.mrb[47].mxu1 }
 0x37b   : > { %v6166_v22 = vpop.eup %6165  ;;  %v2822_v34 = vsub.f32 2.0, %v2790_v23  ;;  %v2670_v48 = vadd.f32 2.0, %v6164_v42  ;;  %6181 = vpow2.f32 %v2624_v45  ;;  %v8308_v33 = vadd.f32 %v5424_v61, %v8220_v59 }
 0x37c   : > { %v6168_v29 = vpop.eup %6167  ;;  %v2855_v35 = vmul.f32 %v6158_v8, %v2823_v60  ;;  %v2793_v62 = vmul.f32 %v6166_v22, %v2729_v51  ;;  %v8305_v37 = vmul.f32 %v6162_v1, %v2671_v20  ;;  %6183 = vpow2.f32 %v2622_v10 }
 0x37d   : > { %v2854_v27 = vmul.f32 %v6160_v53, %v2822_v34  ;;  %v2792_v40 = vmul.f32 %v6168_v29, %v2728_v24  ;;  %v8310_v49 = vmul.f32 %v6164_v42, %v2670_v48  ;;  %v2581_v12 = vmin.f32 %v8308_v33, 20.0 }
 0x37e   : > { %v2825_v31 = vsub.f32 2.0, %v2793_v62  ;;  %v8316_v54 = vadd.f32 2.0, %v8305_v37  ;;  %v2919_v63 = vmul.f32 %v2887_v25, %v2855_v35  ;;  %v8324_v16 = vadd.f32 %v8220_v59, %v2474_v4 }
 0x37f   : > { %v6170_v51 = vpop.eup %6169  ;;  %v2918_v36 = vmul.f32 %v2886_v30, %v2854_v27  ;;  %v2824_v14 = vsub.f32 2.0, %v2792_v40  ;;  %v2734_v11 = vadd.f32 2.0, %v8310_v49  ;;  %v2628_v44 = vmul.f32 1.442695, %v2581_v12 }
 0x380   : > { %v6172_v41 = vpop.eup %6171  ;;  %v2857_v24 = vmul.f32 %v6166_v22, %v2825_v31  ;;  %v2795_v28 = vmul.f32 %v6170_v51, %v8273_v3  ;;  %6185 = vrcp.f32 %v8316_v54  ;;  %v2580_v1 = vmin.f32 %v8324_v16, 20.0 }
 0x381   : > { %v6174_v6 = vpop.eup %6173  ;;  %v2856_v9 = vmul.f32 %v6168_v29, %v2824_v14  ;;  %v2794_v57 = vmul.f32 %v6172_v41, %v8277_v15  ;;  %6187 = vrcp.f32 %v2734_v11  ;;  %5453 = vmatprep.mubr.msk.f32.mxu0 %vm2956_vm2, %v2918_v36  ;;  %v2892_v27 = vmul.f32 %v8287_v50, %v8250_v17 }
 0x382   : > { %v6176_v58 = vpop.eup %6175  ;;  %v2921_v19 = vmul.f32 %v2889_v43, %v2857_v24  ;;  %v2827_v8 = vsub.f32 2.0, %v2795_v28  ;;  %v2673_v25 = vadd.f32 2.0, %v6174_v6  ;;  %5454 = vmatmul.mubr.msk.f32.vlgmr.msra.gmra.mrb[32].mxu0 %vm2956_vm2, %v2919_v63  ;;  %6189 = vpow2.f32 %v2628_v44 }
 0x383   : > { %v6178_v3 = vpop.eup %6177  ;;  %v2920_v53 = vmul.f32 %v2888_v52, %v2856_v9  ;;  %v2826_v56 = vsub.f32 2.0, %v2794_v57  ;;  %v2672_v30 = vadd.f32 2.0, %v6176_v58  ;;  %v2890_v43 = vmul.f32 %v8271_v21, %v8242_v2 }
 0x384   : > { %v6180_v15 = vpop.eup %6179  ;;  %v2859_v23 = vmul.f32 %v6170_v51, %v2827_v8  ;;  %v2797_v45 = vmul.f32 %v6178_v3, %v8294_v18  ;;  %v8330_v5 = vmul.f32 %v6174_v6, %v2673_v25  ;;  %v2626_v48 = vmul.f32 1.442695, %v2580_v1 }
 0x385   : > { %v6182_v42 = vpop.eup %6181  ;;  %v2858_v60 = vmul.f32 %v6172_v41, %v2826_v56  ;;  %v2796_v20 = vmul.f32 %v6180_v15, %v8299_v46  ;;  %v8335_v61 = vmul.f32 %v6176_v58, %v2672_v30  ;;  %5456 = vmatprep.mubr.msk.f32.mxu0 %vm2956_vm2, %v2920_v53  ;;  %v2893_v31 = vmul.f32 %v8281_v38, %v8247_v55 }
 0x386   : > { %v2829_v22 = vsub.f32 2.0, %v2797_v45  ;;  %v2737_v34 = vadd.f32 2.0, %v8330_v5  ;;  %5457 = vmatmul.mubr.msk.f32.gmra.mrb[34].mxu0 %vm2956_vm2, %v2921_v19  ;;  %v6184_v18 = vpop.eup %6183  ;;  %v2923_v10 = vmul.f32 %v2891_v13, %v2859_v23  ;;  %v2675_v2 = vadd.f32 2.0, %v6182_v42 }
 0x387   : > { %v2922_v4 = vmul.f32 %v2890_v43, %v2858_v60  ;;  %v2828_v29 = vsub.f32 2.0, %v2796_v20  ;;  %v2736_v35 = vadd.f32 2.0, %v8335_v61  ;;  %v2674_v21 = vadd.f32 2.0, %v6184_v18 }
 0x388   : > { %v2861_v62 = vmul.f32 %v6178_v3, %v2829_v22  ;;  %6191 = vrcp.f32 %v2737_v34  ;;  %v8346_v52 = vmul.f32 %v6182_v42, %v2675_v2  ;;  %v2894_v19 = vmul.f32 %v8310_v49, %v8258_v7 }
 0x389   : > { %v2860_v46 = vmul.f32 %v6180_v15, %v2828_v29  ;;  %6193 = vrcp.f32 %v2736_v35  ;;  %5459 = vmatprep.mubr.msk.f32.mxu0 %vm2956_vm2, %v2922_v4  ;;  %v8348_v13 = vmul.f32 %v6184_v18, %v2674_v21  ;;  %v2895_v44 = vmul.f32 %v8305_v37, %v8255_v0 }
 0x38a   : > { %v6186_v40 = vpop.eup %6185  ;;  %6195 = vpow2.f32 %v2626_v48  ;;  %5460 = vmatmul.mubr.msk.f32.gmra.mrb[36].mxu0 %vm2956_vm2, %v2923_v10  ;;  %v2925_v14 = vmul.f32 %v2893_v31, %v2861_v62  ;;  %v8353_v50 = vadd.f32 2.0, %v8346_v52  ;;  %v2897_v21 = vmul.f32 %v8330_v5, %v8266_v26 }
 0x38b   : > { %v6188_v51 = vpop.eup %6187  ;;  %v2924_v63 = vmul.f32 %v2892_v27, %v2860_v46  ;;  %v2799_v36 = vmul.f32 %v6186_v40, %v8316_v54  ;;  %v8356_v41 = vadd.f32 2.0, %v8348_v13  ;;  %v5427_v55 = vpop.f32.mrb[48].mxu1  ;;  %v2899_v26 = vmul.f32 %v8346_v52, %v8284_v32 }
 0x38c   : > { %v2798_v17 = vmul.f32 %v6188_v51, %v2734_v11  ;;  %v8359_v24 = vadd.f32 %v5427_v55, %v8220_v59  ;;  %v2484_v28 = vpop.f32.mrb[49].mxu1  ;;  %v6190_v12 = vpop.eup %6189  ;;  %6197 = vrcp.f32 %v8353_v50 }
 0x38d   : > { %v2831_v38 = vsub.f32 2.0, %v2799_v36  ;;  %5462 = vmatprep.mubr.msk.f32.mxu0 %vm2956_vm2, %v2924_v63  ;;  %v8364_v54 = vadd.f32 %v8220_v59, %v2484_v28  ;;  %6199 = vrcp.f32 %v8356_v41  ;;  %v2677_v9 = vadd.f32 2.0, %v6190_v12 }
 0x38e   : > { %v2830_v6 = vsub.f32 2.0, %v2798_v17  ;;  %5463 = vmatmul.mubr.msk.f32.gmra.mrb[38].mxu0 %vm2956_vm2, %v2925_v14  ;;  %v2583_v57 = vmin.f32 %v8359_v24, 20.0 }
 0x38f   : > { %v2863_v11 = vmul.f32 %v6186_v40, %v2831_v38  ;;  %v2582_v8 = vmin.f32 %v8364_v54, 20.0  ;;  %v5430_v25 = vpop.f32.mrb[50].mxu1  ;;  %v8374_v3 = vmul.f32 %v6190_v12, %v2677_v9 }
 0x390   : > { %v2862_v58 = vmul.f32 %v6188_v51, %v2830_v6  ;;  %v2632_v53 = vmul.f32 1.442695, %v2583_v57  ;;  %v8377_v56 = vadd.f32 %v5430_v25, %v8220_v59  ;;  %v2494_v30 = vpop.f32.mrb[51].mxu1  ;;  %v2896_v51 = vmul.f32 %v8335_v61, %v8269_v39 }
 0x391   : > { %v2630_v23 = vmul.f32 1.442695, %v2582_v8  ;;  %v8380_v45 = vadd.f32 %v8220_v59, %v2494_v30  ;;  %v2927_v49 = vmul.f32 %v2895_v44, %v2863_v11  ;;  %v8383_v60 = vadd.f32 2.0, %v8374_v3 }
 0x392   : > { %v6192_v1 = vpop.eup %6191  ;;  %v2926_v15 = vmul.f32 %v2894_v19, %v2862_v58  ;;  %6201 = vpow2.f32 %v2632_v53  ;;  %v2585_v43 = vmin.f32 %v8377_v56, 20.0 }
 0x393   : > { %v6194_v7 = vpop.eup %6193  ;;  %v2801_v42 = vmul.f32 %v6192_v1, %v2737_v34  ;;  %6203 = vpow2.f32 %v2630_v23  ;;  %v2584_v20 = vmin.f32 %v8380_v45, 20.0  ;;  %v5433_v22 = vpop.f32.mrb[52].mxu1 }
 0x394   : > { %v6196_v0 = vpop.eup %6195  ;;  %v2800_v37 = vmul.f32 %v6194_v7, %v2736_v35  ;;  %5465 = vmatprep.mubr.msk.f32.mxu0 %vm2956_vm2, %v2926_v15  ;;  %6205 = vrcp.f32 %v8383_v60  ;;  %v8390_v34 = vadd.f32 %v5433_v22, %v8220_v59  ;;  %v2504_v10 = vpop.f32.mrb[53].mxu1  ;;  %v2636_v29 = vmul.f32 1.442695, %v2585_v43 }
 0x395   : > { %v2833_v48 = vsub.f32 2.0, %v2801_v42  ;;  %v2676_v18 = vadd.f32 2.0, %v6196_v0  ;;  %5466 = vmatmul.mubr.msk.f32.gmra.mrb[40].mxu0 %vm2956_vm2, %v2927_v49  ;;  %v2634_v35 = vmul.f32 1.442695, %v2584_v20  ;;  %v8394_v62 = vadd.f32 %v8220_v59, %v2504_v10 }
 0x396   : > { %v2832_v4 = vsub.f32 2.0, %v2800_v37  ;;  %v2587_v27 = vmin.f32 %v8390_v34, 20.0  ;;  %v6198_v40 = vpop.eup %6197  ;;  %6207 = vpow2.f32 %v2636_v29 }
 0x397   : > { %v2865_v2 = vmul.f32 %v6192_v1, %v2833_v48  ;;  %v8398_v46 = vmul.f32 %v6196_v0, %v2676_v18  ;;  %v2586_v63 = vmin.f32 %v8394_v62, 20.0  ;;  %v5436_v36 = vpop.f32.mrb[54].mxu1  ;;  %v6200_v14 = vpop.eup %6199  ;;  %v2803_v55 = vmul.f32 %v6198_v40, %v8353_v50 }
 0x398   : > { %v2864_v31 = vmul.f32 %v6194_v7, %v2832_v4  ;;  %v2514_v38 = vpop.f32.mrb[55].mxu1  ;;  %v2802_v12 = vmul.f32 %v6200_v14, %v8356_v41  ;;  %6209 = vpow2.f32 %v2634_v35  ;;  %v2640_v6 = vmul.f32 1.442695, %v2587_v27 }
 0x399   : > { %v2929_v17 = vmul.f32 %v2897_v21, %v2865_v2  ;;  %v2740_v5 = vadd.f32 2.0, %v8398_v46  ;;  %v2835_v39 = vsub.f32 2.0, %v2803_v55  ;;  %v2638_v61 = vmul.f32 1.442695, %v2586_v63 }
 0x39a   : > { %v2928_v28 = vmul.f32 %v2896_v51, %v2864_v31  ;;  %v8410_v11 = vadd.f32 %v5436_v36, %v8220_v59  ;;  %v2834_v9 = vsub.f32 2.0, %v2802_v12  ;;  %v2898_v50 = vmul.f32 %v8348_v13, %v8290_v47 }
 0x39b   : > { %6211 = vrcp.f32 %v2740_v5  ;;  %v8415_v32 = vadd.f32 %v8220_v59, %v2514_v38  ;;  %v5439_v52 = vpop.f32.mrb[56].mxu1  ;;  %v2867_v57 = vmul.f32 %v6198_v40, %v2835_v39 }
 0x39c   : > { %6213 = vpow2.f32 %v2640_v6  ;;  %5468 = vmatprep.mubr.msk.f32.mxu0 %vm2956_vm2, %v2928_v28  ;;  %v6202_v41 = vpop.eup %6201  ;;  %v2589_v58 = vmin.f32 %v8410_v11, 20.0  ;;  %v8420_v19 = vadd.f32 %v5439_v52, %v8220_v59  ;;  %v2524_v8 = vpop.f32.mrb[57].mxu1  ;;  %v2866_v47 = vmul.f32 %v6200_v14, %v2834_v9 }
 0x39d   : > { %6215 = vpow2.f32 %v2638_v61  ;;  %5469 = vmatmul.mubr.msk.f32.gmra.mrb[42].mxu0 %vm2956_vm2, %v2929_v17  ;;  %v6204_v25 = vpop.eup %6203  ;;  %v2679_v13 = vadd.f32 2.0, %v6202_v41  ;;  %v2588_v44 = vmin.f32 %v8415_v32, 20.0  ;;  %v8425_v53 = vadd.f32 %v8220_v59, %v2524_v8 }
 0x39e   : > { %v6206_v30 = vpop.eup %6205  ;;  %v2931_v1 = vmul.f32 %v2899_v26, %v2867_v57  ;;  %v2678_v15 = vadd.f32 2.0, %v6204_v25  ;;  %v2644_v23 = vmul.f32 1.442695, %v2589_v58  ;;  %v2591_v7 = vmin.f32 %v8420_v19, 20.0 }
 0x39f   : > { %v2930_v49 = vmul.f32 %v2898_v50, %v2866_v47  ;;  %v2805_v42 = vmul.f32 %v6206_v30, %v8383_v60  ;;  %v8429_v0 = vmul.f32 %v6202_v41, %v2679_v13  ;;  %v2642_v37 = vmul.f32 1.442695, %v2588_v44 }
 0x3a0   : > { %v8431_v43 = vmul.f32 %v6204_v25, %v2678_v15  ;;  %6217 = vpow2.f32 %v2644_v23  ;;  %v2648_v20 = vmul.f32 1.442695, %v2591_v7  ;;  %v2590_v22 = vmin.f32 %v8425_v53, 20.0  ;;  %v6208_v48 = vpop.eup %6207 }
 0x3a1   : > { %v2743_v18 = vadd.f32 2.0, %v8429_v0  ;;  %6219 = vpow2.f32 %v2642_v37  ;;  %5471 = vmatprep.mubr.msk.f32.mxu0 %vm2956_vm2, %v2930_v49  ;;  %v2681_v4 = vadd.f32 2.0, %v6208_v48  ;;  %v2837_v35 = vsub.f32 2.0, %v2805_v42 }
 0x3a2   : > { %v8437_v10 = vadd.f32 2.0, %v8431_v43  ;;  %6221 = vpow2.f32 %v2648_v20  ;;  %5472 = vmatmul.mubr.msk.f32.gmra.mrb[44].mxu0 %vm2956_vm2, %v2931_v1  ;;  %v6210_v29 = vpop.eup %6209  ;;  %v2646_v2 = vmul.f32 1.442695, %v2590_v22  ;;  %v2901_v26 = vmul.f32 %v8374_v3, %v8308_v33 }
 0x3a3   : > { %v5442_v60 = vpop.f32.mrb[58].mxu1  ;;  %6223 = vrcp.f32 %v2743_v18  ;;  %v8444_v31 = vmul.f32 %v6208_v48, %v2681_v4  ;;  %v2680_v51 = vadd.f32 2.0, %v6210_v29  ;;  %v2869_v50 = vmul.f32 %v6206_v30, %v2837_v35 }
 0x3a4   : > { %v8441_v21 = vadd.f32 %v5442_v60, %v8220_v59  ;;  %v2534_v27 = vpop.f32.mrb[59].mxu1  ;;  %6225 = vrcp.f32 %v8437_v10  ;;  %v2900_v41 = vmul.f32 %v8398_v46, %v8324_v16  ;;  %v2903_v35 = vmul.f32 %v8429_v0, %v8359_v24 }
 0x3a5   : > { %v6212_v40 = vpop.eup %6211  ;;  %v8447_v63 = vadd.f32 %v8220_v59, %v2534_v27  ;;  %6227 = vpow2.f32 %v2646_v2  ;;  %v8453_v38 = vadd.f32 2.0, %v8444_v31  ;;  %v8455_v28 = vmul.f32 %v6210_v29, %v2680_v51 }
 0x3a6   : > { %v6214_v36 = vpop.eup %6213  ;;  %v2804_v14 = vmul.f32 %v6212_v40, %v2740_v5  ;;  %v2593_v17 = vmin.f32 %v8441_v21, 20.0  ;;  %v2933_v15 = vmul.f32 %v2901_v26, %v2869_v50 }
 0x3a7   : > { %v6216_v55 = vpop.eup %6215  ;;  %v2683_v12 = vadd.f32 2.0, %v6214_v36  ;;  %v2592_v9 = vmin.f32 %v8447_v63, 20.0  ;;  %6229 = vrcp.f32 %v8453_v38  ;;  %v8460_v5 = vadd.f32 2.0, %v8455_v28  ;;  %v5445_v33 = vpop.f32.mrb[60].mxu1 }
 0x3a8   : > { %v2836_v6 = vsub.f32 2.0, %v2804_v14  ;;  %v2682_v39 = vadd.f32 2.0, %v6216_v55  ;;  %v2652_v61 = vmul.f32 1.442695, %v2593_v17  ;;  %v2544_v58 = vpop.f32.mrb[61].mxu1  ;;  %v8473_v13 = vadd.f32 %v5445_v33, %v8220_v59 }
 0x3a9   : > { %v8462_v52 = vmul.f32 %v6214_v36, %v2683_v12  ;;  %v2650_v47 = vmul.f32 1.442695, %v2592_v9  ;;  %v8487_v4 = vadd.f32 %v8220_v59, %v2544_v58  ;;  %v2902_v36 = vmul.f32 %v8431_v43, %v8364_v54 }
 0x3aa   : > { %v2868_v3 = vmul.f32 %v6212_v40, %v2836_v6  ;;  %v8466_v57 = vmul.f32 %v6216_v55, %v2682_v39  ;;  %6231 = vpow2.f32 %v2652_v61  ;;  %v6218_v8 = vpop.eup %6217  ;;  %v2595_v37 = vmin.f32 %v8473_v13, 20.0 }
 0x3ab   : > { %6233 = vrcp.f32 %v8460_v5  ;;  %v8470_v25 = vadd.f32 2.0, %v8462_v52  ;;  %v6220_v44 = vpop.eup %6219  ;;  %v2685_v16 = vadd.f32 2.0, %v6218_v8  ;;  %v2594_v6 = vmin.f32 %v8487_v4, 20.0 }
 0x3ac   : > { %v2932_v30 = vmul.f32 %v2900_v41, %v2868_v3  ;;  %v8476_v1 = vadd.f32 2.0, %v8466_v57  ;;  %v6222_v46 = vpop.eup %6221  ;;  %v2684_v23 = vadd.f32 2.0, %v6220_v44  ;;  %v5448_v60 = vpop.f32.mrb[62].mxu1  ;;  %v2656_v24 = vmul.f32 1.442695, %v2595_v37 }
 0x3ad   : > { %6235 = vrcp.f32 %v8470_v25  ;;  %v6224_v7 = vpop.eup %6223  ;;  %v8480_v49 = vmul.f32 %v6218_v8, %v2685_v16  ;;  %v2687_v42 = vadd.f32 2.0, %v6222_v46  ;;  %v8508_v43 = vadd.f32 %v5448_v60, %v8220_v59 }
 0x3ae   : > { %6237 = vrcp.f32 %v8476_v1  ;;  %5474 = vmatprep.mubr.msk.f32.mxu0 %vm2956_vm2, %v2932_v30  ;;  %v6226_v20 = vpop.eup %6225  ;;  %v2807_v22 = vmul.f32 %v6224_v7, %v2743_v18  ;;  %v8484_v48 = vmul.f32 %v6220_v44, %v2684_v23  ;;  %v2554_v18 = vpop.f32.mrb[63].mxu1  ;;  %v2905_v33 = vmul.f32 %v8444_v31, %v8377_v56 }
 0x3af   : > { %6239 = vpow2.f32 %v2650_v47  ;;  %5475 = vmatmul.mubr.msk.f32.gmra.mrb[46].mxu0 %vm2956_vm2, %v2933_v15  ;;  %v6228_v29 = vpop.eup %6227  ;;  %v2806_v2 = vmul.f32 %v6226_v20, %v8437_v10  ;;  %v2749_v27 = vadd.f32 2.0, %v8480_v49  ;;  %v8494_v40 = vmul.f32 %v6222_v46, %v2687_v42 }
 0x3b0   : > { %v2839_v51 = vsub.f32 2.0, %v2807_v22  ;;  %v2748_v14 = vadd.f32 2.0, %v8484_v48  ;;  %v2686_v17 = vadd.f32 2.0, %v6228_v29  ;;  %v2654_v30 = vmul.f32 1.442695, %v2594_v6 }
 0x3b1   : > { %v2838_v55 = vsub.f32 2.0, %v2806_v2  ;;  %6241 = vrcp.f32 %v2749_v27  ;;  %v8500_v26 = vadd.f32 2.0, %v8494_v40  ;;  %v6230_v0 = vpop.eup %6229  ;;  %v2597_v16 = vmin.f32 %v8508_v43, 20.0 }
 0x3b2   : > { %v2871_v10 = vmul.f32 %v6224_v7, %v2839_v51  ;;  %6243 = vrcp.f32 %v2748_v14  ;;  %v8502_v12 = vmul.f32 %v6228_v29, %v2686_v17  ;;  %v2809_v54 = vmul.f32 %v6230_v0, %v8453_v38 }
 0x3b3   : > { %v2870_v61 = vmul.f32 %v6226_v20, %v2838_v55  ;;  %6245 = vrcp.f32 %v8500_v26  ;;  %v8519_v31 = vadd.f32 %v8220_v59, %v2554_v18  ;;  %v2660_v29 = vmul.f32 1.442695, %v2597_v16 }
 0x3b4   : > { %v6232_v39 = vpop.eup %6231  ;;  %v2935_v50 = vmul.f32 %v2903_v35, %v2871_v10  ;;  %v2750_v3 = vadd.f32 2.0, %v8502_v12  ;;  %v2841_v8 = vsub.f32 2.0, %v2809_v54  ;;  %6247 = vpow2.f32 %v2656_v24 }
 0x3b5   : > { %v6234_v9 = vpop.eup %6233  ;;  %v2689_v41 = vadd.f32 2.0, %v6232_v39  ;;  %v2934_v58 = vmul.f32 %v2902_v36, %v2870_v61  ;;  %v2596_v35 = vmin.f32 %v8519_v31, 20.0 }
 0x3b6   : > { %v2808_v47 = vmul.f32 %v6234_v9, %v8460_v5  ;;  %6249 = vrcp.f32 %v2750_v3  ;;  %v2873_v15 = vmul.f32 %v6230_v0, %v2841_v8  ;;  %v2904_v5 = vmul.f32 %v8455_v28, %v8380_v45 }
 0x3b7   : > { %v6236_v44 = vpop.eup %6235  ;;  %v8514_v38 = vmul.f32 %v6232_v39, %v2689_v41  ;;  %5477 = vmatprep.mubr.msk.f32.mxu0 %vm2956_vm2, %v2934_v58  ;;  %6251 = vpow2.f32 %v2654_v30  ;;  %v2658_v55 = vmul.f32 1.442695, %v2596_v35 }
 0x3b8   : > { %v6238_v46 = vpop.eup %6237  ;;  %v2840_v23 = vsub.f32 2.0, %v2808_v47  ;;  %v2811_v56 = vmul.f32 %v6236_v44, %v8470_v25  ;;  %5478 = vmatmul.mubr.msk.f32.gmra.mrb[48].mxu0 %vm2956_vm2, %v2935_v50  ;;  %v2906_v25 = vmul.f32 %v8466_v57, %v8394_v62  ;;  %v2937_v45 = vmul.f32 %v2905_v33, %v2873_v15 }
 0x3b9   : > { %v6240_v7 = vpop.eup %6239  ;;  %v2810_v42 = vmul.f32 %v6238_v46, %v8476_v1  ;;  %v2753_v37 = vadd.f32 2.0, %v8514_v38  ;;  %v2907_v62 = vmul.f32 %v8462_v52, %v8390_v34 }
 0x3ba   : > { %v2872_v20 = vmul.f32 %v6234_v9, %v2840_v23  ;;  %v2843_v22 = vsub.f32 2.0, %v2811_v56  ;;  %v2688_v59 = vadd.f32 2.0, %v6240_v7 }
 0x3bb   : > { %v2842_v60 = vsub.f32 2.0, %v2810_v42  ;;  %6253 = vrcp.f32 %v2753_v37  ;;  %v6242_v2 = vpop.eup %6241 }
 0x3bc   : > { %v2936_v28 = vmul.f32 %v2904_v5, %v2872_v20  ;;  %v2875_v1 = vmul.f32 %v6236_v44, %v2843_v22  ;;  %v8530_v18 = vmul.f32 %v6240_v7, %v2688_v59  ;;  %v6244_v51 = vpop.eup %6243  ;;  %v2813_v17 = vmul.f32 %v6242_v2, %v2749_v27 }
 0x3bd   : > { %v2874_v36 = vmul.f32 %v6238_v46, %v2842_v60  ;;  %6255 = vpow2.f32 %v2660_v29  ;;  %v6246_v24 = vpop.eup %6245  ;;  %v2812_v57 = vmul.f32 %v6244_v51, %v2748_v14  ;;  %v2908_v14 = vmul.f32 %v8484_v48, %v8415_v32 }
 0x3be   : > { %v2752_v0 = vadd.f32 2.0, %v8530_v18  ;;  %5480 = vmatprep.mubr.msk.f32.mxu0 %vm2956_vm2, %v2936_v28  ;;  %v2845_v6 = vsub.f32 2.0, %v2813_v17  ;;  %v2815_v39 = vmul.f32 %v6246_v24, %v8500_v26  ;;  %6257 = vpow2.f32 %v2658_v55  ;;  %v6248_v61 = vpop.eup %6247 }
 0x3bf   : > { %v2938_v10 = vmul.f32 %v2906_v25, %v2874_v36  ;;  %5481 = vmatmul.mubr.msk.f32.gmra.mrb[50].mxu0 %vm2956_vm2, %v2937_v45  ;;  %v2844_v27 = vsub.f32 2.0, %v2812_v57  ;;  %v2939_v9 = vmul.f32 %v2907_v62, %v2875_v1  ;;  %v2691_v34 = vadd.f32 2.0, %v6248_v61 }
 0x3c0   : > { %6259 = vrcp.f32 %v2752_v0  ;;  %v6250_v54 = vpop.eup %6249  ;;  %v2877_v50 = vmul.f32 %v6242_v2, %v2845_v6  ;;  %v2847_v33 = vsub.f32 2.0, %v2815_v39  ;;  %v2909_v26 = vmul.f32 %v8480_v49, %v8410_v11 }
 0x3c1   : > { %5483 = vmatprep.mubr.msk.f32.mxu0 %vm2956_vm2, %v2938_v10  ;;  %v2876_v52 = vmul.f32 %v6244_v51, %v2844_v27  ;;  %v2814_v41 = vmul.f32 %v6250_v54, %v2750_v3  ;;  %v6252_v58 = vpop.eup %6251  ;;  %v2723_v8 = vmul.f32 %v6248_v61, %v2691_v34  ;;  %v2910_v7 = vmul.f32 %v8502_v12, %v8425_v53 }
 0x3c2   : > { %v2690_v30 = vadd.f32 2.0, %v6252_v58  ;;  %v2941_v46 = vmul.f32 %v2909_v26, %v2877_v50  ;;  %v2879_v15 = vmul.f32 %v6246_v24, %v2847_v33  ;;  %v2911_v11 = vmul.f32 %v8494_v40, %v8420_v19 }
 0x3c3   : > { %5484 = vmatmul.mubr.msk.f32.gmra.mrb[52].mxu0 %vm2956_vm2, %v2939_v9  ;;  %v2940_v47 = vmul.f32 %v2908_v14, %v2876_v52  ;;  %v2846_v44 = vsub.f32 2.0, %v2814_v41  ;;  %v2755_v23 = vadd.f32 2.0, %v2723_v8  ;;  %v2912_v45 = vmul.f32 %v8530_v18, %v8447_v63  ;;  %v3279_v41 = vld [vmem:[%s9377_s9 + $0x8] sm:$0xff] }
 0x3c4   : > { %v2722_v48 = vmul.f32 %v6252_v58, %v2690_v30  ;;  %v2943_v20 = vmul.f32 %v2911_v11, %v2879_v15  ;;  %v2913_v28 = vmul.f32 %v8514_v38, %v8441_v21  ;;  %v2915_v21 = vmul.f32 %v2723_v8, %v8473_v13  ;;  %v3278_v13 = vld [vmem:[%s9377_s9] sm:$0xff] }
 0x3c5   : > { %v6254_v16 = vpop.eup %6253  ;;  %v2878_v56 = vmul.f32 %v6250_v54, %v2846_v44  ;;  %5486 = vmatprep.mubr.msk.f32.mxu0 %vm2956_vm2, %v2940_v47  ;;  %6261 = vrcp.f32 %v2755_v23  ;;  %v5681_v58 = vpack.c.bf16 %v3279_v41, %v3278_v13  ;;  %v8581_v8 = vld [vmem:[%s9376_s8] ss:$0 sm:$0xff] }
 0x3c6   : > { %v2817_v32 = vmul.f32 %v6254_v16, %v2753_v37  ;;  %v2754_v5 = vadd.f32 2.0, %v2722_v48  ;;  %v2914_v18 = vmul.f32 %v2722_v48, %v8487_v4 }
 0x3c7   : > { %v6256_v3 = vpop.eup %6255  ;;  %5487 = vmatmul.mubr.msk.f32.gmra.mrb[54].mxu0 %vm2956_vm2, %v2941_v46  ;;  %v2942_v49 = vmul.f32 %v2910_v7, %v2878_v56  ;;  %5682 = vmatprep.subr.bf16.mxu1 %v5681_v58 }
 0x3c8   : > { %v6258_v42 = vpop.eup %6257  ;;  %v2693_v22 = vadd.f32 2.0, %v6256_v3  ;;  %v2849_v59 = vsub.f32 2.0, %v2817_v32  ;;  %6263 = vrcp.f32 %v2754_v5 }
 0x3c9   : > { %v2692_v53 = vadd.f32 2.0, %v6258_v42  ;;  %5489 = vmatprep.mubr.msk.f32.mxu0 %vm2956_vm2, %v2942_v49 }
 0x3ca   : > { %v6260_v25 = vpop.eup %6259  ;;  %v2725_v37 = vmul.f32 %v6256_v3, %v2693_v22  ;;  %v2881_v29 = vmul.f32 %v6254_v16, %v2849_v59 }
 0x3cb   : > { %v2816_v12 = vmul.f32 %v6260_v25, %v2752_v0  ;;  %5490 = vmatmul.mubr.msk.f32.gmra.mrb[56].mxu0 %vm2956_vm2, %v2943_v20  ;;  %v2724_v60 = vmul.f32 %v6258_v42, %v2692_v53 }
 0x3cc   : > { %v2757_v40 = vadd.f32 2.0, %v2725_v37  ;;  %v2945_v36 = vmul.f32 %v2913_v28, %v2881_v29  ;;  %v2917_v52 = vmul.f32 %v2725_v37, %v8508_v43  ;;  %v3280_v43 = vld [vmem:[%s9377_s9 + $0x10] sm:$0xff] }
 0x3cd   : > { %v2848_v19 = vsub.f32 2.0, %v2816_v12  ;;  %v2756_v35 = vadd.f32 2.0, %v2724_v60  ;;  %v2916_v34 = vmul.f32 %v2724_v60, %v8519_v31  ;;  %v3281_v31 = vld [vmem:[%s9377_s9 + $0x18] sm:$0xff] }
 0x3ce   : > { %6265 = vrcp.f32 %v2757_v40  ;;  %v5685_v26 = vpack.c.bf16 %v3281_v31, %v3280_v43 }
 0x3cf   : > { %v2880_v2 = vmul.f32 %v6260_v25, %v2848_v19  ;;  %6267 = vrcp.f32 %v2756_v35  ;;  %v6262_v1 = vpop.eup %6261 }
 0x3d0   : > { %v2819_v17 = vmul.f32 %v6262_v1, %v2755_v23 }
 0x3d1   : > { %v2944_v51 = vmul.f32 %v2912_v45, %v2880_v2 }
 0x3d2   : > { %v6264_v55 = vpop.eup %6263  ;;  %v2851_v24 = vsub.f32 2.0, %v2819_v17 }
 0x3d3   : > { %5492 = vmatprep.mubr.msk.f32.mxu0 %vm2956_vm2, %v2944_v51  ;;  %v2818_v62 = vmul.f32 %v6264_v55, %v2754_v5 }
 0x3d4   : > { %5493 = vmatmul.mubr.msk.f32.gmra.mrb[58].mxu0 %vm2956_vm2, %v2945_v36  ;;  %v2883_v0 = vmul.f32 %v6262_v1, %v2851_v24  ;;  %v3995_v24 = vld [vmem:[%s9379_s11 + $0x8] sm:$0xff] }
 0x3d5   : > { %v2850_v57 = vsub.f32 2.0, %v2818_v62 }
 0x3d6   : > { %v2947_v27 = vmul.f32 %v2915_v21, %v2883_v0 }
 0x3d7   : > { %v2882_v63 = vmul.f32 %v6264_v55, %v2850_v57  ;;  %v3994_v55 = vld [vmem:[%s9379_s11] sm:$0xff] }
 0x3d8   : > { %v6266_v10 = vpop.eup %6265  ;;  %v5689_v0 = vpack.c.bf16 %v3995_v24, %v3994_v55 }
 0x3d9   : > { %v6268_v6 = vpop.eup %6267  ;;  %v2821_v38 = vmul.f32 %v6266_v10, %v2757_v40  ;;  %v2946_v39 = vmul.f32 %v2914_v18, %v2882_v63 }
 0x3da   : > { %v2820_v61 = vmul.f32 %v6268_v6, %v2756_v35  ;;  %5690 = vmatprep.subr.bf16.mxu0 %v5689_v0 }
 0x3db   : > { %v2853_v54 = vsub.f32 2.0, %v2821_v38  ;;  %5495 = vmatprep.mubr.msk.f32.mxu1 %vm2956_vm2, %v2946_v39  ;;  %5692 = vmatpush3.bf16.msra.mxu0 %v5689_v0 }
 0x3dc   : > { %v2852_v9 = vsub.f32 2.0, %v2820_v61  ;;  %5496 = vmatmul.mubr.msk.f32.vlgmr.msra.gmra.mrb[64].mxu1 %vm2956_vm2, %v2947_v27 }
 0x3dd   : > { %v2885_v50 = vmul.f32 %v6266_v10, %v2853_v54  ;;  %5684 = vmatpush3.bf16.msra.mxu1 %v5681_v58 }
 0x3de   : > { %v2884_v33 = vmul.f32 %v6268_v6, %v2852_v9  ;;  %5686 = vmatprep.subr.bf16.mxu1 %v5685_v26 }
 0x3df   : > { %v2949_v14 = vmul.f32 %v2917_v52, %v2885_v50 }
 0x3e0   : > { %v2948_v4 = vmul.f32 %v2916_v34, %v2884_v33 }
 0x3e1   : > { %5688 = vmatpush3.bf16.msra.mxu1 %v5685_v26 }
 0x3e2   : > { %5498 = vmatprep.mubr.msk.f32.mxu1 %vm2956_vm2, %v2948_v4 }
 0x3e3   : > { %5499 = vmatmul.mubr.msk.f32.gmra.mrb[66].mxu1 %vm2956_vm2, %v2949_v14 }
 0x455   : > { %v5455_v47 = vpop.f32.mrb[32].mxu0 }
 0x456   : > { %v8584_v44 = vadd.f32 %v5455_v47, %v8581_v8  ;;  %v3119_v30 = vpop.f32.mrb[33].mxu0 }
 0x457   : > { %v8587_v16 = vadd.f32 %v8581_v8, %v3119_v30 }
 0x458   : > { %v3284_v46 = vmin.f32 %v8584_v44, 20.0 }
 0x459   : > { %v3283_v15 = vmin.f32 %v8587_v16, 20.0  ;;  %v5458_v23 = vpop.f32.mrb[34].mxu0 }
 0x45a   : > { %v3317_v56 = vmul.f32 1.442695, %v3284_v46  ;;  %v8592_v7 = vadd.f32 %v5458_v23, %v8581_v8  ;;  %v3129_v32 = vpop.f32.mrb[35].mxu0 }
 0x45b   : > { %v3315_v48 = vmul.f32 1.442695, %v3283_v15  ;;  %v8595_v3 = vadd.f32 %v8581_v8, %v3129_v32 }
 0x45c   : > { %6269 = vpow2.f32 %v3317_v56  ;;  %v3286_v11 = vmin.f32 %v8592_v7, 20.0 }
 0x45d   : > { %6271 = vpow2.f32 %v3315_v48  ;;  %v3285_v49 = vmin.f32 %v8595_v3, 20.0  ;;  %v5461_v5 = vpop.f32.mrb[36].mxu0 }
 0x45e   : > { %v3321_v42 = vmul.f32 1.442695, %v3286_v11  ;;  %v8600_v20 = vadd.f32 %v5461_v5, %v8581_v8  ;;  %v3139_v22 = vpop.f32.mrb[37].mxu0 }
 0x45f   : > { %v3319_v25 = vmul.f32 1.442695, %v3285_v49  ;;  %v8603_v59 = vadd.f32 %v8581_v8, %v3139_v22 }
 0x460   : > { %6273 = vpow2.f32 %v3321_v42  ;;  %v3288_v53 = vmin.f32 %v8600_v20, 20.0 }
 0x461   : > { %6275 = vpow2.f32 %v3319_v25  ;;  %v3287_v12 = vmin.f32 %v8603_v59, 20.0  ;;  %v5464_v37 = vpop.f32.mrb[38].mxu0 }
 0x462   : > { %v3325_v60 = vmul.f32 1.442695, %v3288_v53  ;;  %v8608_v19 = vadd.f32 %v5464_v37, %v8581_v8  ;;  %v3149_v40 = vpop.f32.mrb[39].mxu0 }
 0x463   : > { %v3323_v29 = vmul.f32 1.442695, %v3287_v12  ;;  %v8611_v35 = vadd.f32 %v8581_v8, %v3149_v40 }
 0x464   : > { %6277 = vpow2.f32 %v3325_v60  ;;  %v3290_v2 = vmin.f32 %v8608_v19, 20.0 }
 0x465   : > { %6279 = vpow2.f32 %v3323_v29  ;;  %v3289_v45 = vmin.f32 %v8611_v35, 20.0 }
 0x466   : > { %v6270_v28 = vpop.eup %6269  ;;  %v3329_v1 = vmul.f32 1.442695, %v3290_v2 }
 0x467   : > { %v6272_v51 = vpop.eup %6271  ;;  %v3380_v36 = vadd.f32 2.0, %v6270_v28  ;;  %v3327_v17 = vmul.f32 1.442695, %v3289_v45 }
 0x468   : > { %v3379_v62 = vadd.f32 2.0, %v6272_v51  ;;  %6281 = vpow2.f32 %v3329_v1  ;;  %v5467_v57 = vpop.f32.mrb[40].mxu0 }
 0x469   : > { %v3412_v10 = vmul.f32 %v6270_v28, %v3380_v36  ;;  %6283 = vpow2.f32 %v3327_v17  ;;  %v8622_v63 = vadd.f32 %v5467_v57, %v8581_v8  ;;  %v3159_v18 = vpop.f32.mrb[41].mxu0 }
 0x46a   : > { %v6274_v6 = vpop.eup %6273  ;;  %v8624_v21 = vmul.f32 %v6272_v51, %v3379_v62  ;;  %v8627_v38 = vadd.f32 %v8581_v8, %v3159_v18 }
 0x46b   : > { %v6276_v39 = vpop.eup %6275  ;;  %v3444_v61 = vadd.f32 2.0, %v3412_v10  ;;  %v3382_v27 = vadd.f32 2.0, %v6274_v6  ;;  %v3292_v54 = vmin.f32 %v8622_v63, 20.0  ;;  %v3604_v36 = vmul.f32 %v3412_v10, %v8584_v44 }
 0x46c   : > { %v3443_v9 = vadd.f32 2.0, %v8624_v21  ;;  %v3381_v50 = vadd.f32 2.0, %v6276_v39  ;;  %v3291_v33 = vmin.f32 %v8627_v38, 20.0 }
 0x46d   : > { %6285 = vrcp.f32 %v3444_v61  ;;  %v3414_v34 = vmul.f32 %v6274_v6, %v3382_v27  ;;  %v3333_v52 = vmul.f32 1.442695, %v3292_v54  ;;  %v3603_v6 = vmul.f32 %v8624_v21, %v8587_v16 }
 0x46e   : > { %v6278_v4 = vpop.eup %6277  ;;  %6287 = vrcp.f32 %v3443_v9  ;;  %v8632_v14 = vmul.f32 %v6276_v39, %v3381_v50  ;;  %v3331_v13 = vmul.f32 1.442695, %v3291_v33 }
 0x46f   : > { %v6280_v41 = vpop.eup %6279  ;;  %v3446_v58 = vadd.f32 2.0, %v3414_v34  ;;  %v3384_v43 = vadd.f32 2.0, %v6278_v4  ;;  %6289 = vpow2.f32 %v3333_v52 }
 0x470   : > { %v3445_v31 = vadd.f32 2.0, %v8632_v14  ;;  %v3383_v26 = vadd.f32 2.0, %v6280_v41  ;;  %6291 = vpow2.f32 %v3331_v13  ;;  %v5470_v47 = vpop.f32.mrb[42].mxu0  ;;  %v3605_v21 = vmul.f32 %v8632_v14, %v8595_v3 }
 0x471   : > { %6293 = vrcp.f32 %v3446_v58  ;;  %v3416_v30 = vmul.f32 %v6278_v4, %v3384_v43  ;;  %v8636_v46 = vadd.f32 %v5470_v47, %v8581_v8  ;;  %v3169_v15 = vpop.f32.mrb[43].mxu0 }
 0x472   : > { %v6282_v23 = vpop.eup %6281  ;;  %6295 = vrcp.f32 %v3445_v31  ;;  %v8638_v56 = vmul.f32 %v6280_v41, %v3383_v26  ;;  %v8641_v32 = vadd.f32 %v8581_v8, %v3169_v15 }
 0x473   : > { %v6284_v48 = vpop.eup %6283  ;;  %v3448_v11 = vadd.f32 2.0, %v3416_v30  ;;  %v3386_v49 = vadd.f32 2.0, %v6282_v23  ;;  %v3294_v5 = vmin.f32 %v8636_v46, 20.0 }
 0x474   : > { %v3447_v42 = vadd.f32 2.0, %v8638_v56  ;;  %v3385_v22 = vadd.f32 2.0, %v6284_v48  ;;  %v3293_v25 = vmin.f32 %v8641_v32, 20.0 }
 0x475   : > { %6297 = vrcp.f32 %v3448_v11  ;;  %v8646_v53 = vmul.f32 %v6282_v23, %v3386_v49  ;;  %v3337_v12 = vmul.f32 1.442695, %v3294_v5  ;;  %v5473_v40 = vpop.f32.mrb[44].mxu0 }
 0x476   : > { %6299 = vrcp.f32 %v3447_v42  ;;  %v8648_v37 = vmul.f32 %v6284_v48, %v3385_v22  ;;  %v3335_v60 = vmul.f32 1.442695, %v3293_v25  ;;  %v8654_v45 = vadd.f32 %v5473_v40, %v8581_v8  ;;  %v3179_v28 = vpop.f32.mrb[45].mxu0 }
 0x477   : > { %v6286_v29 = vpop.eup %6285  ;;  %v8651_v2 = vadd.f32 2.0, %v8646_v53  ;;  %6301 = vpow2.f32 %v3337_v12  ;;  %v8663_v57 = vadd.f32 %v8581_v8, %v3179_v28 }
 0x478   : > { %v6288_v1 = vpop.eup %6287  ;;  %v3508_v51 = vmul.f32 %v6286_v29, %v3444_v61  ;;  %v8658_v17 = vadd.f32 2.0, %v8648_v37  ;;  %6303 = vpow2.f32 %v3335_v60  ;;  %v3296_v62 = vmin.f32 %v8654_v45, 20.0 }
 0x479   : > { %v6290_v55 = vpop.eup %6289  ;;  %v3507_v24 = vmul.f32 %v6288_v1, %v3443_v9  ;;  %6305 = vrcp.f32 %v8651_v2  ;;  %v3606_v61 = vmul.f32 %v3414_v34, %v8592_v7  ;;  %v3295_v4 = vmin.f32 %v8663_v57, 20.0 }
 0x47a   : > { %v6292_v0 = vpop.eup %6291  ;;  %v3540_v18 = vsub.f32 2.0, %v3508_v51  ;;  %6307 = vrcp.f32 %v8658_v17  ;;  %v3388_v44 = vadd.f32 2.0, %v6290_v55  ;;  %v3341_v54 = vmul.f32 1.442695, %v3296_v62 }
 0x47b   : > { %v6294_v10 = vpop.eup %6293  ;;  %v3539_v39 = vsub.f32 2.0, %v3507_v24  ;;  %v3387_v27 = vadd.f32 2.0, %v6292_v0  ;;  %v3608_v7 = vmul.f32 %v3416_v30, %v8600_v20  ;;  %v3339_v5 = vmul.f32 1.442695, %v3295_v4 }
 0x47c   : > { %v6296_v9 = vpop.eup %6295  ;;  %v3572_v50 = vmul.f32 %v6286_v29, %v3540_v18  ;;  %v3510_v33 = vmul.f32 %v6294_v10, %v3446_v58  ;;  %v8669_v52 = vmul.f32 %v6290_v55, %v3388_v44  ;;  %6309 = vpow2.f32 %v3341_v54 }
 0x47d   : > { %v3571_v13 = vmul.f32 %v6288_v1, %v3539_v39  ;;  %v3509_v41 = vmul.f32 %v6296_v9, %v3445_v31  ;;  %v8672_v43 = vmul.f32 %v6292_v0, %v3387_v27  ;;  %v3607_v20 = vmul.f32 %v8638_v56, %v8603_v59 }
 0x47e   : > { %v3542_v16 = vsub.f32 2.0, %v3510_v33  ;;  %v8678_v34 = vadd.f32 2.0, %v8669_v52  ;;  %v3636_v58 = vmul.f32 %v3604_v36, %v3572_v50  ;;  %v3609_v4 = vmul.f32 %v8648_v37, %v8611_v35 }
 0x47f   : > { %v6298_v26 = vpop.eup %6297  ;;  %v3635_v47 = vmul.f32 %v3603_v6, %v3571_v13  ;;  %v3541_v15 = vsub.f32 2.0, %v3509_v41  ;;  %v8681_v23 = vadd.f32 2.0, %v8672_v43 }
 0x480   : > { %v6300_v31 = vpop.eup %6299  ;;  %v3574_v48 = vmul.f32 %v6294_v10, %v3542_v16  ;;  %v3512_v49 = vmul.f32 %v6298_v26, %v3448_v11  ;;  %6311 = vrcp.f32 %v8678_v34  ;;  %v3610_v16 = vmul.f32 %v8646_v53, %v8608_v19 }
 0x481   : > { %v6302_v22 = vpop.eup %6301  ;;  %v3573_v3 = vmul.f32 %v6296_v9, %v3541_v15  ;;  %v3511_v14 = vmul.f32 %v6300_v31, %v3447_v42  ;;  %6313 = vrcp.f32 %v8681_v23  ;;  %5509 = vmatprep.mubr.msk.f32.mxu1 %vm2241_vm1, %v3635_v47 }
 0x482   : > { %v6304_v30 = vpop.eup %6303  ;;  %v3638_v25 = vmul.f32 %v3606_v61, %v3574_v48  ;;  %v3544_v12 = vsub.f32 2.0, %v3512_v49  ;;  %v3390_v60 = vadd.f32 2.0, %v6302_v22  ;;  %6315 = vpow2.f32 %v3339_v5  ;;  %v5476_v40 = vpop.f32.mrb[46].mxu0  ;;  %5510 = vmatmul.mubr.msk.f32.vlgmr.msra.gmra.mrb[68].mxu1 %vm2241_vm1, %v3636_v58 }
 0x483   : > { %v6306_v11 = vpop.eup %6305  ;;  %v3637_v29 = vmul.f32 %v3605_v21, %v3573_v3  ;;  %v3543_v28 = vsub.f32 2.0, %v3511_v14  ;;  %v3389_v1 = vadd.f32 2.0, %v6304_v30  ;;  %v8690_v42 = vadd.f32 %v5476_v40, %v8581_v8  ;;  %v3189_v59 = vpop.f32.mrb[47].mxu0 }
 0x484   : > { %v6308_v56 = vpop.eup %6307  ;;  %v3576_v51 = vmul.f32 %v6298_v26, %v3544_v12  ;;  %v3514_v36 = vmul.f32 %v6306_v11, %v8651_v2  ;;  %v8693_v55 = vmul.f32 %v6302_v22, %v3390_v60  ;;  %v8696_v24 = vadd.f32 %v8581_v8, %v3189_v59 }
 0x485   : > { %v3575_v62 = vmul.f32 %v6300_v31, %v3543_v28  ;;  %v3513_v0 = vmul.f32 %v6308_v56, %v8658_v17  ;;  %v8699_v18 = vmul.f32 %v6304_v30, %v3389_v1  ;;  %v3298_v6 = vmin.f32 %v8690_v42, 20.0  ;;  %5512 = vmatprep.mubr.msk.f32.mxu1 %vm2241_vm1, %v3637_v29 }
 0x486   : > { %v3546_v44 = vsub.f32 2.0, %v3514_v36  ;;  %v3454_v10 = vadd.f32 2.0, %v8693_v55  ;;  %5513 = vmatmul.mubr.msk.f32.gmra.mrb[70].mxu1 %vm2241_vm1, %v3638_v25  ;;  %v6310_v2 = vpop.eup %6309  ;;  %v3640_v39 = vmul.f32 %v3608_v7, %v3576_v51  ;;  %v3297_v13 = vmin.f32 %v8696_v24, 20.0 }
 0x487   : > { %v3639_v61 = vmul.f32 %v3607_v20, %v3575_v62  ;;  %v3545_v27 = vsub.f32 2.0, %v3513_v0  ;;  %v3453_v54 = vadd.f32 2.0, %v8699_v18  ;;  %v3392_v17 = vadd.f32 2.0, %v6310_v2 }
 0x488   : > { %v3578_v9 = vmul.f32 %v6306_v11, %v3546_v44  ;;  %6317 = vrcp.f32 %v3454_v10  ;;  %v3345_v50 = vmul.f32 1.442695, %v3298_v6  ;;  %v3343_v47 = vmul.f32 1.442695, %v3297_v13 }
 0x489   : > { %v3577_v33 = vmul.f32 %v6308_v56, %v3545_v27  ;;  %6319 = vrcp.f32 %v3453_v54  ;;  %5515 = vmatprep.mubr.msk.f32.mxu1 %vm2241_vm1, %v3639_v61  ;;  %v8712_v21 = vmul.f32 %v6310_v2, %v3392_v17  ;;  %v3611_v30 = vmul.f32 %v8672_v43, %v8627_v38 }
 0x48a   : > { %v6312_v41 = vpop.eup %6311  ;;  %6321 = vpow2.f32 %v3345_v50  ;;  %5516 = vmatmul.mubr.msk.f32.gmra.mrb[72].mxu1 %vm2241_vm1, %v3640_v39  ;;  %v3642_v37 = vmul.f32 %v3610_v16, %v3578_v9  ;;  %v3612_v12 = vmul.f32 %v8669_v52, %v8622_v63  ;;  %v3614_v44 = vmul.f32 %v8693_v55, %v8636_v46 }
 0x48b   : > { %v6314_v7 = vpop.eup %6313  ;;  %v3641_v26 = vmul.f32 %v3609_v4, %v3577_v33  ;;  %v3516_v58 = vmul.f32 %v6312_v41, %v8678_v34  ;;  %v3456_v31 = vadd.f32 2.0, %v8712_v21  ;;  %v5479_v48 = vpop.f32.mrb[48].mxu0  ;;  %6323 = vpow2.f32 %v3343_v47 }
 0x48c   : > { %v6316_v35 = vpop.eup %6315  ;;  %v3515_v15 = vmul.f32 %v6314_v7, %v8681_v23  ;;  %v8719_v19 = vadd.f32 %v5479_v48, %v8581_v8  ;;  %v3199_v53 = vpop.f32.mrb[49].mxu0  ;;  %v3613_v2 = vmul.f32 %v8699_v18, %v8641_v32 }
 0x48d   : > { %v3548_v49 = vsub.f32 2.0, %v3516_v58  ;;  %v3391_v5 = vadd.f32 2.0, %v6316_v35  ;;  %5518 = vmatprep.mubr.msk.f32.mxu1 %vm2241_vm1, %v3641_v26  ;;  %6325 = vrcp.f32 %v3456_v31  ;;  %v8723_v34 = vadd.f32 %v8581_v8, %v3199_v53 }
 0x48e   : > { %v3547_v22 = vsub.f32 2.0, %v3515_v15  ;;  %5519 = vmatmul.mubr.msk.f32.gmra.mrb[74].mxu1 %vm2241_vm1, %v3642_v37  ;;  %v3300_v14 = vmin.f32 %v8719_v19, 20.0 }
 0x48f   : > { %v3580_v23 = vmul.f32 %v6312_v41, %v3548_v49  ;;  %v8726_v3 = vmul.f32 %v6316_v35, %v3391_v5  ;;  %v3299_v25 = vmin.f32 %v8723_v34, 20.0 }
 0x490   : > { %v3579_v20 = vmul.f32 %v6314_v7, %v3547_v22  ;;  %v3349_v40 = vmul.f32 1.442695, %v3300_v14 }
 0x491   : > { %v3455_v60 = vadd.f32 2.0, %v8726_v3  ;;  %v3347_v28 = vmul.f32 1.442695, %v3299_v25  ;;  %v3644_v56 = vmul.f32 %v3612_v12, %v3580_v23 }
 0x492   : > { %v6318_v11 = vpop.eup %6317  ;;  %v3643_v29 = vmul.f32 %v3611_v30, %v3579_v20  ;;  %v5482_v1 = vpop.f32.mrb[50].mxu0  ;;  %v3616_v20 = vmul.f32 %v8712_v21, %v8654_v45 }
 0x493   : > { %v6320_v59 = vpop.eup %6319  ;;  %v3518_v51 = vmul.f32 %v6318_v11, %v3454_v10  ;;  %6327 = vrcp.f32 %v3455_v60  ;;  %v8736_v36 = vadd.f32 %v5482_v1, %v8581_v8  ;;  %v3209_v38 = vpop.f32.mrb[51].mxu0 }
 0x494   : > { %v6322_v43 = vpop.eup %6321  ;;  %v3517_v62 = vmul.f32 %v6320_v59, %v3453_v54  ;;  %6329 = vpow2.f32 %v3349_v40  ;;  %v8739_v63 = vadd.f32 %v8581_v8, %v3209_v38  ;;  %5521 = vmatprep.mubr.msk.f32.mxu1 %vm2241_vm1, %v3643_v29 }
 0x495   : > { %v3550_v52 = vsub.f32 2.0, %v3518_v51  ;;  %v3394_v0 = vadd.f32 2.0, %v6322_v43  ;;  %6331 = vpow2.f32 %v3347_v28  ;;  %v3302_v6 = vmin.f32 %v8736_v36, 20.0  ;;  %5522 = vmatmul.mubr.msk.f32.gmra.mrb[76].mxu1 %vm2241_vm1, %v3644_v56  ;;  %v6324_v27 = vpop.eup %6323 }
 0x496   : > { %v3549_v10 = vsub.f32 2.0, %v3517_v62  ;;  %v3301_v39 = vmin.f32 %v8739_v63, 20.0  ;;  %v5485_v61 = vpop.f32.mrb[52].mxu0  ;;  %v3393_v41 = vadd.f32 2.0, %v6324_v27 }
 0x497   : > { %v3582_v54 = vmul.f32 %v6318_v11, %v3550_v52  ;;  %v8749_v9 = vmul.f32 %v6322_v43, %v3394_v0  ;;  %v3353_v17 = vmul.f32 1.442695, %v3302_v6  ;;  %v8752_v50 = vadd.f32 %v5485_v61, %v8581_v8  ;;  %v3219_v33 = vpop.f32.mrb[53].mxu0  ;;  %v6326_v4 = vpop.eup %6325 }
 0x498   : > { %v3581_v13 = vmul.f32 %v6320_v59, %v3549_v10  ;;  %v3351_v46 = vmul.f32 1.442695, %v3301_v39  ;;  %v8755_v55 = vadd.f32 %v8581_v8, %v3219_v33  ;;  %v3520_v18 = vmul.f32 %v6326_v4, %v3456_v31 }
 0x499   : > { %v3646_v32 = vmul.f32 %v3614_v44, %v3582_v54  ;;  %v3458_v16 = vadd.f32 2.0, %v8749_v9  ;;  %v8758_v26 = vmul.f32 %v6324_v27, %v3393_v41  ;;  %6333 = vpow2.f32 %v3353_v17 }
 0x49a   : > { %v3645_v7 = vmul.f32 %v3613_v2, %v3581_v13  ;;  %v3304_v58 = vmin.f32 %v8752_v50, 20.0  ;;  %v5488_v47 = vpop.f32.mrb[54].mxu0  ;;  %v3552_v35 = vsub.f32 2.0, %v3520_v18  ;;  %v3303_v37 = vmin.f32 %v8755_v55, 20.0 }
 0x49b   : > { %6335 = vrcp.f32 %v3458_v16  ;;  %v8763_v15 = vadd.f32 %v5488_v47, %v8581_v8  ;;  %v3229_v48 = vpop.f32.mrb[55].mxu0  ;;  %v3457_v49 = vadd.f32 2.0, %v8758_v26 }
 0x49c   : > { %6337 = vpow2.f32 %v3351_v46  ;;  %v3357_v31 = vmul.f32 1.442695, %v3304_v58  ;;  %5524 = vmatprep.mubr.msk.f32.mxu1 %vm2241_vm1, %v3645_v7  ;;  %v3355_v53 = vmul.f32 1.442695, %v3303_v37  ;;  %v8769_v23 = vadd.f32 %v8581_v8, %v3229_v48 }
 0x49d   : > { %v6328_v5 = vpop.eup %6327  ;;  %v3306_v22 = vmin.f32 %v8763_v15, 20.0  ;;  %5525 = vmatmul.mubr.msk.f32.gmra.mrb[78].mxu1 %vm2241_vm1, %v3646_v32  ;;  %6339 = vrcp.f32 %v3457_v49  ;;  %v3584_v40 = vmul.f32 %v6326_v4, %v3552_v35  ;;  %v3618_v37 = vmul.f32 %v8749_v9, %v8690_v42 }
 0x49e   : > { %v6330_v14 = vpop.eup %6329  ;;  %v3519_v30 = vmul.f32 %v6328_v5, %v3455_v60  ;;  %v5491_v25 = vpop.f32.mrb[56].mxu0  ;;  %6341 = vpow2.f32 %v3357_v31  ;;  %v3305_v56 = vmin.f32 %v8769_v23, 20.0  ;;  %v3615_v60 = vmul.f32 %v8726_v3, %v8663_v57 }
 0x49f   : > { %v6332_v12 = vpop.eup %6331  ;;  %v3396_v11 = vadd.f32 2.0, %v6330_v14  ;;  %v3361_v29 = vmul.f32 1.442695, %v3306_v22  ;;  %v3239_v28 = vpop.f32.mrb[57].mxu0  ;;  %6343 = vpow2.f32 %v3355_v53  ;;  %v8778_v38 = vadd.f32 %v5491_v25, %v8581_v8 }
 0x4a0   : > { %v3551_v1 = vsub.f32 2.0, %v3519_v30  ;;  %v3395_v59 = vadd.f32 2.0, %v6332_v12  ;;  %v8781_v45 = vadd.f32 %v8581_v8, %v3239_v28  ;;  %v3359_v62 = vmul.f32 1.442695, %v3305_v56 }
 0x4a1   : > { %v8775_v51 = vmul.f32 %v6330_v14, %v3396_v11  ;;  %6345 = vpow2.f32 %v3361_v29  ;;  %v3308_v0 = vmin.f32 %v8778_v38, 20.0  ;;  %v3648_v10 = vmul.f32 %v3616_v20, %v3584_v40 }
 0x4a2   : > { %v3583_v21 = vmul.f32 %v6328_v5, %v3551_v1  ;;  %v8785_v43 = vmul.f32 %v6332_v12, %v3395_v59  ;;  %v3307_v6 = vmin.f32 %v8781_v45, 20.0  ;;  %6347 = vpow2.f32 %v3359_v62 }
 0x4a3   : > { %v3460_v52 = vadd.f32 2.0, %v8775_v51  ;;  %v6334_v44 = vpop.eup %6333  ;;  %v3365_v54 = vmul.f32 1.442695, %v3308_v0  ;;  %v3617_v20 = vmul.f32 %v8758_v26, %v8696_v24 }
 0x4a4   : > { %v3647_v2 = vmul.f32 %v3615_v60, %v3583_v21  ;;  %v3459_v39 = vadd.f32 2.0, %v8785_v43  ;;  %v3398_v27 = vadd.f32 2.0, %v6334_v44  ;;  %v3363_v57 = vmul.f32 1.442695, %v3307_v6 }
 0x4a5   : > { %v6336_v61 = vpop.eup %6335  ;;  %6349 = vrcp.f32 %v3460_v52 }
 0x4a6   : > { %v6338_v3 = vpop.eup %6337  ;;  %v3522_v17 = vmul.f32 %v6336_v61, %v3458_v16  ;;  %6351 = vrcp.f32 %v3459_v39  ;;  %5527 = vmatprep.mubr.msk.f32.mxu1 %vm2241_vm1, %v3647_v2  ;;  %v8792_v33 = vmul.f32 %v6334_v44, %v3398_v27  ;;  %v3620_v44 = vmul.f32 %v8775_v51, %v8719_v19 }
 0x4a7   : > { %v3397_v4 = vadd.f32 2.0, %v6338_v3  ;;  %6353 = vpow2.f32 %v3365_v54  ;;  %v5494_v13 = vpop.f32.mrb[58].mxu0  ;;  %5528 = vmatmul.mubr.msk.f32.gmra.mrb[80].mxu1 %vm2241_vm1, %v3648_v10  ;;  %v6340_v41 = vpop.eup %6339  ;;  %v3619_v51 = vmul.f32 %v8785_v43, %v8723_v34 }
 0x4a8   : > { %v3554_v46 = vsub.f32 2.0, %v3522_v17  ;;  %6355 = vpow2.f32 %v3363_v57  ;;  %v8796_v32 = vadd.f32 %v5494_v13, %v8581_v8  ;;  %v3249_v18 = vpop.f32.mrb[59].mxu0  ;;  %v6342_v7 = vpop.eup %6341  ;;  %v3521_v58 = vmul.f32 %v6340_v41, %v3457_v49 }
 0x4a9   : > { %v3462_v16 = vadd.f32 2.0, %v8792_v33  ;;  %v8799_v47 = vmul.f32 %v6338_v3, %v3397_v4  ;;  %v6344_v35 = vpop.eup %6343  ;;  %v3400_v48 = vadd.f32 2.0, %v6342_v7  ;;  %v8805_v5 = vadd.f32 %v8581_v8, %v3249_v18 }
 0x4aa   : > { %v3310_v31 = vmin.f32 %v8796_v32, 20.0  ;;  %v3586_v22 = vmul.f32 %v6336_v61, %v3554_v46  ;;  %v3553_v14 = vsub.f32 2.0, %v3521_v58  ;;  %v3399_v25 = vadd.f32 2.0, %v6344_v35 }
 0x4ab   : > { %v6346_v53 = vpop.eup %6345  ;;  %6357 = vrcp.f32 %v3462_v16  ;;  %v3461_v49 = vadd.f32 2.0, %v8799_v47  ;;  %v8810_v30 = vmul.f32 %v6342_v7, %v3400_v48  ;;  %v3309_v40 = vmin.f32 %v8805_v5, 20.0 }
 0x4ac   : > { %v3402_v12 = vadd.f32 2.0, %v6346_v53  ;;  %v3585_v42 = vmul.f32 %v6340_v41, %v3553_v14  ;;  %v3369_v9 = vmul.f32 1.442695, %v3310_v31  ;;  %v6348_v11 = vpop.eup %6347  ;;  %v8816_v28 = vmul.f32 %v6344_v35, %v3399_v25 }
 0x4ad   : > { %6359 = vrcp.f32 %v3461_v49  ;;  %v8814_v29 = vadd.f32 2.0, %v8810_v30  ;;  %v3650_v56 = vmul.f32 %v3618_v37, %v3586_v22  ;;  %v3401_v26 = vadd.f32 2.0, %v6348_v11 }
 0x4ae   : > { %v8818_v1 = vmul.f32 %v6346_v53, %v3402_v12  ;;  %v3649_v24 = vmul.f32 %v3617_v20, %v3585_v42  ;;  %6361 = vpow2.f32 %v3369_v9  ;;  %v8822_v62 = vadd.f32 2.0, %v8816_v28 }
 0x4af   : > { %v6350_v59 = vpop.eup %6349  ;;  %6363 = vrcp.f32 %v8814_v29  ;;  %v3367_v0 = vmul.f32 1.442695, %v3309_v40  ;;  %v8829_v61 = vmul.f32 %v6348_v11, %v3401_v26  ;;  %v5497_v27 = vpop.f32.mrb[64].mxu1  ;;  %v3622_v26 = vmul.f32 %v8792_v33, %v8736_v36 }
 0x4b0   : > { %v6352_v21 = vpop.eup %6351  ;;  %v3524_v60 = vmul.f32 %v6350_v59, %v3460_v52  ;;  %v8827_v2 = vadd.f32 2.0, %v8818_v1  ;;  %5530 = vmatprep.mubr.msk.f32.mxu1 %vm2241_vm1, %v3649_v24  ;;  %6365 = vrcp.f32 %v8822_v62  ;;  %v8834_v3 = vadd.f32 %v5497_v27, %v8581_v8  ;;  %v3259_v17 = vpop.f32.mrb[65].mxu1 }
 0x4b1   : > { %v6354_v6 = vpop.eup %6353  ;;  %v3523_v10 = vmul.f32 %v6352_v21, %v3459_v39  ;;  %5531 = vmatmul.mubr.msk.f32.gmra.mrb[82].mxu1 %vm2241_vm1, %v3650_v56  ;;  %v3465_v39 = vadd.f32 2.0, %v8829_v61  ;;  %v8845_v58 = vadd.f32 %v8581_v8, %v3259_v17 }
 0x4b2   : > { %v6356_v52 = vpop.eup %6355  ;;  %v3556_v54 = vsub.f32 2.0, %v3524_v60  ;;  %v3404_v57 = vadd.f32 2.0, %v6354_v6  ;;  %6367 = vrcp.f32 %v8827_v2  ;;  %v3312_v7 = vmin.f32 %v8834_v3, 20.0 }
 0x4b3   : > { %v3555_v19 = vsub.f32 2.0, %v3523_v10  ;;  %v3403_v41 = vadd.f32 2.0, %v6356_v52  ;;  %6369 = vpow2.f32 %v3367_v0  ;;  %v3311_v22 = vmin.f32 %v8845_v58, 20.0 }
 0x4b4   : > { %v3588_v4 = vmul.f32 %v6350_v59, %v3556_v54  ;;  %v8841_v13 = vmul.f32 %v6354_v6, %v3404_v57  ;;  %6371 = vrcp.f32 %v3465_v39  ;;  %v3373_v53 = vmul.f32 1.442695, %v3312_v7 }
 0x4b5   : > { %v6358_v46 = vpop.eup %6357  ;;  %v3587_v18 = vmul.f32 %v6352_v21, %v3555_v19  ;;  %v8850_v31 = vmul.f32 %v6356_v52, %v3403_v41  ;;  %v3371_v40 = vmul.f32 1.442695, %v3311_v22  ;;  %v3623_v7 = vmul.f32 %v8816_v28, %v8755_v55 }
 0x4b6   : > { %v3652_v35 = vmul.f32 %v3620_v44, %v3588_v4  ;;  %v3526_v37 = vmul.f32 %v6358_v46, %v3462_v16  ;;  %v8848_v34 = vadd.f32 2.0, %v8841_v13  ;;  %v5500_v14 = vpop.f32.mrb[66].mxu1  ;;  %v3621_v44 = vmul.f32 %v8799_v47, %v8739_v63 }
 0x4b7   : > { %v6360_v43 = vpop.eup %6359  ;;  %v3651_v48 = vmul.f32 %v3619_v51, %v3587_v18  ;;  %v8855_v12 = vadd.f32 %v5500_v14, %v8581_v8  ;;  %v3269_v42 = vpop.f32.mrb[67].mxu1  ;;  %v8858_v9 = vadd.f32 2.0, %v8850_v31 }
 0x4b8   : > { %v3558_v20 = vsub.f32 2.0, %v3526_v37  ;;  %v3525_v25 = vmul.f32 %v6360_v43, %v3461_v49  ;;  %6373 = vrcp.f32 %v8848_v34  ;;  %v6362_v16 = vpop.eup %6361  ;;  %v8868_v60 = vadd.f32 %v8581_v8, %v3269_v42 }
 0x4b9   : > { %6375 = vpow2.f32 %v3373_v53  ;;  %5533 = vmatprep.mubr.msk.f32.mxu1 %vm2241_vm1, %v3651_v48  ;;  %v6364_v11 = vpop.eup %6363  ;;  %v3406_v24 = vadd.f32 2.0, %v6362_v16  ;;  %v3314_v49 = vmin.f32 %v8855_v12, 20.0  ;;  %v3624_v37 = vmul.f32 %v8810_v30, %v8752_v50 }
 0x4ba   : > { %v3590_v59 = vmul.f32 %v6358_v46, %v3558_v20  ;;  %v3557_v56 = vsub.f32 2.0, %v3525_v25  ;;  %5534 = vmatmul.mubr.msk.f32.gmra.mrb[84].mxu1 %vm2241_vm1, %v3652_v35  ;;  %v3528_v21 = vmul.f32 %v6364_v11, %v8814_v29  ;;  %6377 = vrcp.f32 %v8858_v9  ;;  %v6366_v0 = vpop.eup %6365 }
 0x4bb   : > { %v8872_v10 = vmul.f32 %v6362_v16, %v3406_v24  ;;  %6379 = vpow2.f32 %v3371_v40  ;;  %v3527_v54 = vmul.f32 %v6366_v0, %v8822_v62  ;;  %v3377_v36 = vmul.f32 1.442695, %v3314_v49 }
 0x4bc   : > { %v3589_v6 = vmul.f32 %v6360_v43, %v3557_v56  ;;  %v6368_v27 = vpop.eup %6367  ;;  %v3560_v52 = vsub.f32 2.0, %v3528_v21  ;;  %v3313_v33 = vmin.f32 %v8868_v60, 20.0  ;;  %v3654_v57 = vmul.f32 %v3622_v26, %v3590_v59 }
 0x4bd   : > { %v6370_v29 = vpop.eup %6369  ;;  %v3530_v8 = vmul.f32 %v6368_v27, %v8827_v2  ;;  %v3470_v19 = vadd.f32 2.0, %v8872_v10  ;;  %v3559_v63 = vsub.f32 2.0, %v3527_v54  ;;  %6381 = vpow2.f32 %v3377_v36 }
 0x4be   : > { %v3653_v17 = vmul.f32 %v3621_v44, %v3589_v6  ;;  %v6372_v51 = vpop.eup %6371  ;;  %v3592_v4 = vmul.f32 %v6364_v11, %v3560_v52  ;;  %v3405_v47 = vadd.f32 2.0, %v6370_v29  ;;  %v3375_v18 = vmul.f32 1.442695, %v3313_v33 }
 0x4bf   : > { %v3562_v41 = vsub.f32 2.0, %v3530_v8  ;;  %v3529_v46 = vmul.f32 %v6372_v51, %v3465_v39  ;;  %6383 = vrcp.f32 %v3470_v19  ;;  %v3591_v62 = vmul.f32 %v6366_v0, %v3559_v63 }
 0x4c0   : > { %5536 = vmatprep.mubr.msk.f32.mxu1 %vm2241_vm1, %v3653_v17  ;;  %v3437_v35 = vmul.f32 %v6370_v29, %v3405_v47  ;;  %6385 = vpow2.f32 %v3375_v18  ;;  %v3625_v39 = vmul.f32 %v8829_v61, %v8769_v23  ;;  %v3656_v20 = vmul.f32 %v3624_v37, %v3592_v4 }
 0x4c1   : > { %5537 = vmatmul.mubr.msk.f32.gmra.mrb[86].mxu1 %vm2241_vm1, %v3654_v57  ;;  %v3561_v43 = vsub.f32 2.0, %v3529_v46  ;;  %v3655_v53 = vmul.f32 %v3623_v7, %v3591_v62  ;;  %v3594_v25 = vmul.f32 %v6368_v27, %v3562_v41  ;;  %v3626_v30 = vmul.f32 %v8818_v1, %v8763_v15 }
 0x4c2   : > { %v6374_v2 = vpop.eup %6373  ;;  %v3469_v14 = vadd.f32 2.0, %v3437_v35  ;;  %v3627_v15 = vmul.f32 %v8850_v31, %v8781_v45  ;;  %v3629_v4 = vmul.f32 %v3437_v35, %v8805_v5  ;;  %v3630_v63 = vmul.f32 %v8872_v10, %v8796_v32 }
 0x4c3   : > { %v6376_v48 = vpop.eup %6375  ;;  %v3532_v22 = vmul.f32 %v6374_v2, %v8848_v34  ;;  %v3593_v55 = vmul.f32 %v6372_v51, %v3561_v43  ;;  %5539 = vmatprep.mubr.msk.f32.mxu1 %vm2241_vm1, %v3655_v53  ;;  %v3658_v34 = vmul.f32 %v3626_v30, %v3594_v25 }
 0x4c4   : > { %v3408_v28 = vadd.f32 2.0, %v6376_v48  ;;  %v6378_v42 = vpop.eup %6377  ;;  %6387 = vrcp.f32 %v3469_v14 }
 0x4c5   : > { %v3564_v16 = vsub.f32 2.0, %v3532_v22  ;;  %v6380_v50 = vpop.eup %6379  ;;  %v3657_v40 = vmul.f32 %v3625_v39, %v3593_v55  ;;  %v3531_v11 = vmul.f32 %v6378_v42, %v8858_v9  ;;  %5540 = vmatmul.mubr.msk.f32.gmra.mrb[88].mxu1 %vm2241_vm1, %v3656_v20  ;;  %v3628_v9 = vmul.f32 %v8841_v13, %v8778_v38 }
 0x4c6   : > { %v3440_v23 = vmul.f32 %v6376_v48, %v3408_v28  ;;  %v3407_v61 = vadd.f32 2.0, %v6380_v50 }
 0x4c7   : > { %v3563_v59 = vsub.f32 2.0, %v3531_v11  ;;  %5542 = vmatprep.mubr.msk.f32.mxu1 %vm2241_vm1, %v3657_v40  ;;  %v6382_v24 = vpop.eup %6381  ;;  %v3596_v49 = vmul.f32 %v6374_v2, %v3564_v16  ;;  %v4000_v11 = vld [vmem:[%s9379_s11 + $0x30] sm:$0xff] }
 0x4c8   : > { %v3472_v56 = vadd.f32 2.0, %v3440_v23  ;;  %v3439_v26 = vmul.f32 %v6380_v50, %v3407_v61  ;;  %v3410_v1 = vadd.f32 2.0, %v6382_v24  ;;  %v3632_v32 = vmul.f32 %v3440_v23, %v8834_v3  ;;  %v3996_v3 = vld [vmem:[%s9379_s11 + $0x10] sm:$0xff]  ;;  %v3997_v50 = vld [vmem:[%s9379_s11 + $0x18] sm:$0xff] }
 0x4c9   : > { %v6384_v21 = vpop.eup %6383  ;;  %v3595_v0 = vmul.f32 %v6378_v42, %v3563_v59  ;;  %5543 = vmatmul.mubr.msk.f32.gmra.mrb[90].mxu1 %vm2241_vm1, %v3658_v34  ;;  %v3660_v36 = vmul.f32 %v3628_v9, %v3596_v49  ;;  %v5693_v30 = vpack.c.bf16 %v3997_v50, %v3996_v3  ;;  %v4001_v23 = vld [vmem:[%s9379_s11 + $0x38] sm:$0xff]  ;;  %v8934_v34 = vld [vmem:[%s9378_s10] ss:$0 sm:$0xff] }
 0x4ca   : > { %6389 = vrcp.f32 %v3472_v56  ;;  %v3534_v6 = vmul.f32 %v6384_v21, %v3470_v19  ;;  %v3471_v44 = vadd.f32 2.0, %v3439_v26  ;;  %v6386_v27 = vpop.eup %6385  ;;  %v3442_v54 = vmul.f32 %v6382_v24, %v3410_v1 }
 0x4cb   : > { %v3659_v52 = vmul.f32 %v3627_v15, %v3595_v0  ;;  %v3409_v33 = vadd.f32 2.0, %v6386_v27  ;;  %v3631_v5 = vmul.f32 %v3439_v26, %v8845_v58  ;;  %5694 = vmatprep.subr.bf16.mxu0 %v5693_v30  ;;  %v5701_v61 = vpack.c.bf16 %v4001_v23, %v4000_v11 }
 0x4cc   : > { %6391 = vrcp.f32 %v3471_v44  ;;  %v3474_v29 = vadd.f32 2.0, %v3442_v54  ;;  %v3566_v45 = vsub.f32 2.0, %v3534_v6  ;;  %v3634_v42 = vmul.f32 %v3442_v54, %v8855_v12  ;;  %5696 = vmatpush3.bf16.msra.mxu0 %v5693_v30  ;;  %v3998_v12 = vld [vmem:[%s9379_s11 + $0x20] sm:$0xff] }
 0x4cd   : > { %5545 = vmatprep.mubr.msk.f32.mxu1 %vm2241_vm1, %v3659_v52  ;;  %v3441_v31 = vmul.f32 %v6386_v27, %v3409_v33 }
 0x4ce   : > { %v6388_v57 = vpop.eup %6387  ;;  %5546 = vmatmul.mubr.msk.f32.gmra.mrb[92].mxu1 %vm2241_vm1, %v3660_v36  ;;  %6393 = vrcp.f32 %v3474_v29  ;;  %v3598_v13 = vmul.f32 %v6384_v21, %v3566_v45 }
 0x4cf   : > { %v3533_v17 = vmul.f32 %v6388_v57, %v3469_v14  ;;  %v3473_v8 = vadd.f32 2.0, %v3441_v31  ;;  %v3633_v28 = vmul.f32 %v3441_v31, %v8868_v60  ;;  %v3999_v60 = vld [vmem:[%s9379_s11 + $0x28] sm:$0xff] }
 0x4d0   : > { %v3662_v18 = vmul.f32 %v3630_v63, %v3598_v13  ;;  %v5697_v40 = vpack.c.bf16 %v3999_v60, %v3998_v12 }
 0x4d1   : > { %v3565_v38 = vsub.f32 2.0, %v3533_v17  ;;  %6395 = vrcp.f32 %v3473_v8 }
 0x4d2   : > { %5698 = vmatprep.subr.bf16.mxu0 %v5697_v40 }
 0x4d3   : > { %v3597_v51 = vmul.f32 %v6388_v57, %v3565_v38  ;;  %5700 = vmatpush3.bf16.msra.mxu0 %v5697_v40 }
 0x4d4   : > { %v6390_v19 = vpop.eup %6389  ;;  %5702 = vmatprep.subr.bf16.mxu0 %v5701_v61 }
 0x4d5   : > { %v3536_v47 = vmul.f32 %v6390_v19, %v3472_v56  ;;  %v3661_v41 = vmul.f32 %v3629_v4, %v3597_v51 }
 0x4d6   : > { %v6392_v46 = vpop.eup %6391 }
 0x4d7   : > { %v3568_v62 = vsub.f32 2.0, %v3536_v47  ;;  %v3535_v7 = vmul.f32 %v6392_v46, %v3471_v44  ;;  %5548 = vmatprep.mubr.msk.f32.mxu1 %vm2241_vm1, %v3661_v41  ;;  %5704 = vmatpush3.bf16.msra.mxu0 %v5701_v61 }
 0x4d8   : > { %5549 = vmatmul.mubr.msk.f32.gmra.mrb[94].mxu1 %vm2241_vm1, %v3662_v18  ;;  %v6394_v2 = vpop.eup %6393 }
 0x4d9   : > { %v3567_v37 = vsub.f32 2.0, %v3535_v7  ;;  %v3600_v43 = vmul.f32 %v6390_v19, %v3568_v62  ;;  %v3538_v48 = vmul.f32 %v6394_v2, %v3474_v29 }
 0x4db   : > { %v3599_v53 = vmul.f32 %v6392_v46, %v3567_v37  ;;  %v6396_v35 = vpop.eup %6395  ;;  %v3570_v10 = vsub.f32 2.0, %v3538_v48  ;;  %v3664_v14 = vmul.f32 %v3632_v32, %v3600_v43 }
 0x4dc   : > { %v3537_v22 = vmul.f32 %v6396_v35, %v3473_v8 }
 0x4dd   : > { %v3663_v39 = vmul.f32 %v3631_v5, %v3599_v53  ;;  %v3602_v25 = vmul.f32 %v6394_v2, %v3570_v10 }
 0x4de   : > { %v3569_v20 = vsub.f32 2.0, %v3537_v22 }
 0x4df   : > { %5551 = vmatprep.mubr.msk.f32.mxu1 %vm2241_vm1, %v3663_v39  ;;  %v3666_v58 = vmul.f32 %v3634_v42, %v3602_v25 }
 0x4e0   : > { %5552 = vmatmul.mubr.msk.f32.gmra.mrb[96].mxu1 %vm2241_vm1, %v3664_v14  ;;  %v3601_v55 = vmul.f32 %v6396_v35, %v3569_v20 }
 0x4e2   : > { %v3665_v16 = vmul.f32 %v3633_v28, %v3601_v55 }
 0x4e4   : > { %5554 = vmatprep.mubr.msk.f32.mxu1 %vm2241_vm1, %v3665_v16 }
 0x4e5   : > { %5555 = vmatmul.mubr.msk.f32.gmra.mrb[98].mxu1 %vm2241_vm1, %v3666_v58 }
 0x555   : > { %v5511_v59 = vpop.f32.mrb[68].mxu1 }
 0x556   : > { %v8937_v56 = vadd.f32 %v5511_v59, %v8934_v34  ;;  %v3835_v24 = vpop.f32.mrb[69].mxu1 }
 0x557   : > { %v8940_v49 = vadd.f32 %v8934_v34, %v3835_v24 }
 0x558   : > { %v4004_v26 = vmin.f32 %v8937_v56, 20.0 }
 0x559   : > { %v4003_v21 = vmin.f32 %v8940_v49, 20.0  ;;  %v5514_v0 = vpop.f32.mrb[70].mxu1 }
 0x55a   : > { %v4037_v15 = vmul.f32 1.442695, %v4004_v26  ;;  %v8945_v1 = vadd.f32 %v5514_v0, %v8934_v34  ;;  %v3845_v9 = vpop.f32.mrb[71].mxu1 }
 0x55b   : > { %v4035_v6 = vmul.f32 1.442695, %v4003_v21  ;;  %v8948_v44 = vadd.f32 %v8934_v34, %v3845_v9 }
 0x55c   : > { %6397 = vpow2.f32 %v4037_v15  ;;  %v4006_v27 = vmin.f32 %v8945_v1, 20.0 }
 0x55d   : > { %6399 = vpow2.f32 %v4035_v6  ;;  %v4005_v52 = vmin.f32 %v8948_v44, 20.0  ;;  %v5517_v54 = vpop.f32.mrb[72].mxu1 }
 0x55e   : > { %v4041_v36 = vmul.f32 1.442695, %v4006_v27  ;;  %v8953_v33 = vadd.f32 %v5517_v54, %v8934_v34  ;;  %v3855_v29 = vpop.f32.mrb[73].mxu1 }
 0x55f   : > { %v4039_v57 = vmul.f32 1.442695, %v4005_v52  ;;  %v8956_v45 = vadd.f32 %v8934_v34, %v3855_v29 }
 0x560   : > { %6401 = vpow2.f32 %v4041_v36  ;;  %v4008_v31 = vmin.f32 %v8953_v33, 20.0 }
 0x561   : > { %6403 = vpow2.f32 %v4039_v57  ;;  %v4007_v17 = vmin.f32 %v8956_v45, 20.0  ;;  %v5520_v8 = vpop.f32.mrb[74].mxu1 }
 0x562   : > { %v4045_v38 = vmul.f32 1.442695, %v4008_v31  ;;  %v8961_v13 = vadd.f32 %v5520_v8, %v8934_v34  ;;  %v3865_v19 = vpop.f32.mrb[75].mxu1 }
 0x563   : > { %v4043_v51 = vmul.f32 1.442695, %v4007_v17  ;;  %v8964_v4 = vadd.f32 %v8934_v34, %v3865_v19 }
 0x564   : > { %6405 = vpow2.f32 %v4045_v38  ;;  %v4010_v63 = vmin.f32 %v8961_v13, 20.0 }
 0x565   : > { %6407 = vpow2.f32 %v4043_v51  ;;  %v4009_v47 = vmin.f32 %v8964_v4, 20.0 }
 0x566   : > { %v6398_v41 = vpop.eup %6397  ;;  %v4049_v46 = vmul.f32 1.442695, %v4010_v63 }
 0x567   : > { %v6400_v18 = vpop.eup %6399  ;;  %v4100_v62 = vadd.f32 2.0, %v6398_v41  ;;  %v4047_v7 = vmul.f32 1.442695, %v4009_v47 }
 0x568   : > { %v4099_v2 = vadd.f32 2.0, %v6400_v18  ;;  %6409 = vpow2.f32 %v4049_v46  ;;  %v5523_v37 = vpop.f32.mrb[76].mxu1 }
 0x569   : > { %v4132_v43 = vmul.f32 %v6398_v41, %v4100_v62  ;;  %6411 = vpow2.f32 %v4047_v7  ;;  %v8969_v48 = vadd.f32 %v5523_v37, %v8934_v34  ;;  %v3875_v53 = vpop.f32.mrb[77].mxu1 }
 0x56a   : > { %v6402_v5 = vpop.eup %6401  ;;  %v4131_v35 = vmul.f32 %v6400_v18, %v4099_v2  ;;  %v8972_v32 = vadd.f32 %v8934_v34, %v3875_v53 }
 0x56b   : > { %v6404_v10 = vpop.eup %6403  ;;  %v4164_v39 = vadd.f32 2.0, %v4132_v43  ;;  %v4102_v22 = vadd.f32 2.0, %v6402_v5  ;;  %v4012_v14 = vmin.f32 %v8969_v48, 20.0  ;;  %v4324_v47 = vmul.f32 %v4132_v43, %v8937_v56 }
 0x56c   : > { %v4163_v20 = vadd.f32 2.0, %v4131_v35  ;;  %v4101_v25 = vadd.f32 2.0, %v6404_v10  ;;  %v4011_v55 = vmin.f32 %v8972_v32, 20.0  ;;  %v4323_v62 = vmul.f32 %v4131_v35, %v8940_v49 }
 0x56d   : > { %6413 = vrcp.f32 %v4164_v39  ;;  %v4134_v28 = vmul.f32 %v6402_v5, %v4102_v22  ;;  %v4053_v42 = vmul.f32 1.442695, %v4012_v14 }
 0x56e   : > { %v6406_v16 = vpop.eup %6405  ;;  %6415 = vrcp.f32 %v4163_v20  ;;  %v8976_v58 = vmul.f32 %v6404_v10, %v4101_v25  ;;  %v4051_v3 = vmul.f32 1.442695, %v4011_v55 }
 0x56f   : > { %v6408_v50 = vpop.eup %6407  ;;  %v4166_v30 = vadd.f32 2.0, %v4134_v28  ;;  %v4104_v12 = vadd.f32 2.0, %v6406_v16  ;;  %6417 = vpow2.f32 %v4053_v42  ;;  %v4326_v5 = vmul.f32 %v4134_v28, %v8945_v1 }
 0x570   : > { %v4165_v60 = vadd.f32 2.0, %v8976_v58  ;;  %v4103_v40 = vadd.f32 2.0, %v6408_v50  ;;  %6419 = vpow2.f32 %v4051_v3  ;;  %v5526_v11 = vpop.f32.mrb[78].mxu1  ;;  %v4325_v28 = vmul.f32 %v8976_v58, %v8948_v44 }
 0x571   : > { %6421 = vrcp.f32 %v4166_v30  ;;  %v4136_v23 = vmul.f32 %v6406_v16, %v4104_v12  ;;  %v8980_v61 = vadd.f32 %v5526_v11, %v8934_v34  ;;  %v3885_v59 = vpop.f32.mrb[79].mxu1 }
 0x572   : > { %v6410_v24 = vpop.eup %6409  ;;  %6423 = vrcp.f32 %v4165_v60  ;;  %v8982_v26 = vmul.f32 %v6408_v50, %v4103_v40  ;;  %v8985_v21 = vadd.f32 %v8934_v34, %v3885_v59 }
 0x573   : > { %v6412_v0 = vpop.eup %6411  ;;  %v4168_v15 = vadd.f32 2.0, %v4136_v23  ;;  %v4106_v9 = vadd.f32 2.0, %v6410_v24  ;;  %v4014_v6 = vmin.f32 %v8980_v61, 20.0  ;;  %v4328_v16 = vmul.f32 %v4136_v23, %v8953_v33 }
 0x574   : > { %v4167_v27 = vadd.f32 2.0, %v8982_v26  ;;  %v4105_v52 = vadd.f32 2.0, %v6412_v0  ;;  %v4013_v54 = vmin.f32 %v8985_v21, 20.0  ;;  %v4327_v23 = vmul.f32 %v8982_v26, %v8956_v45 }
 0x575   : > { %6425 = vrcp.f32 %v4168_v15  ;;  %v8990_v36 = vmul.f32 %v6410_v24, %v4106_v9  ;;  %v4057_v29 = vmul.f32 1.442695, %v4014_v6 }
 0x576   : > { %6427 = vrcp.f32 %v4167_v27  ;;  %v8992_v57 = vmul.f32 %v6412_v0, %v4105_v52  ;;  %v4055_v31 = vmul.f32 1.442695, %v4013_v54 }
 0x577   : > { %v6414_v17 = vpop.eup %6413  ;;  %v8995_v8 = vadd.f32 2.0, %v8990_v36  ;;  %6429 = vpow2.f32 %v4057_v29 }
 0x578   : > { %v6416_v38 = vpop.eup %6415  ;;  %v4228_v19 = vmul.f32 %v6414_v17, %v4164_v39  ;;  %v8998_v51 = vadd.f32 2.0, %v8992_v57  ;;  %6431 = vpow2.f32 %v4055_v31 }
 0x579   : > { %v6418_v63 = vpop.eup %6417  ;;  %v4227_v41 = vmul.f32 %v6416_v38, %v4163_v20  ;;  %6433 = vrcp.f32 %v8995_v8 }
 0x57a   : > { %v6420_v46 = vpop.eup %6419  ;;  %v4260_v18 = vsub.f32 2.0, %v4228_v19  ;;  %6435 = vrcp.f32 %v8998_v51  ;;  %v4108_v7 = vadd.f32 2.0, %v6418_v63  ;;  %v5529_v2 = vpop.f32.mrb[80].mxu1 }
 0x57b   : > { %v6422_v37 = vpop.eup %6421  ;;  %v4259_v53 = vsub.f32 2.0, %v4227_v41  ;;  %v4107_v10 = vadd.f32 2.0, %v6420_v46  ;;  %v9006_v39 = vadd.f32 %v5529_v2, %v8934_v34  ;;  %v3895_v56 = vpop.f32.mrb[81].mxu1 }
 0x57c   : > { %v6424_v43 = vpop.eup %6423  ;;  %v4292_v22 = vmul.f32 %v6414_v17, %v4260_v18  ;;  %v4230_v14 = vmul.f32 %v6422_v37, %v4166_v30  ;;  %v9008_v20 = vmul.f32 %v6418_v63, %v4108_v7  ;;  %v9011_v49 = vadd.f32 %v8934_v34, %v3895_v56 }
 0x57d   : > { %v4291_v35 = vmul.f32 %v6416_v38, %v4259_v53  ;;  %v4229_v25 = vmul.f32 %v6424_v43, %v4165_v60  ;;  %v9013_v55 = vmul.f32 %v6420_v46, %v4107_v10  ;;  %v4016_v42 = vmin.f32 %v9006_v39, 20.0 }
 0x57e   : > { %v4262_v1 = vsub.f32 2.0, %v4230_v14  ;;  %v4172_v3 = vadd.f32 2.0, %v9008_v20  ;;  %v4356_v30 = vmul.f32 %v4324_v47, %v4292_v22  ;;  %v4015_v44 = vmin.f32 %v9011_v49, 20.0 }
 0x57f   : > { %v6426_v50 = vpop.eup %6425  ;;  %v4355_v12 = vmul.f32 %v4323_v62, %v4291_v35  ;;  %v4261_v40 = vsub.f32 2.0, %v4229_v25  ;;  %v4171_v11 = vadd.f32 2.0, %v9013_v55  ;;  %v4061_v0 = vmul.f32 1.442695, %v4016_v42 }
 0x580   : > { %v6428_v59 = vpop.eup %6427  ;;  %v4294_v60 = vmul.f32 %v6422_v37, %v4262_v1  ;;  %v4232_v24 = vmul.f32 %v6426_v50, %v4168_v15  ;;  %6437 = vrcp.f32 %v4172_v3  ;;  %v4059_v38 = vmul.f32 1.442695, %v4015_v44 }
 0x581   : > { %v6430_v9 = vpop.eup %6429  ;;  %v4293_v6 = vmul.f32 %v6424_v43, %v4261_v40  ;;  %v4231_v52 = vmul.f32 %v6428_v59, %v4167_v27  ;;  %6439 = vrcp.f32 %v4171_v11  ;;  %5573 = vmatprep.mubr.msk.f32.mxu0 %vm1524_vm0, %v4355_v12  ;;  %v4329_v22 = vmul.f32 %v8992_v57, %v8964_v4 }
 0x582   : > { %v6432_v33 = vpop.eup %6431  ;;  %v4264_v58 = vsub.f32 2.0, %v4232_v24  ;;  %v4110_v54 = vadd.f32 2.0, %v6430_v9  ;;  %6441 = vpow2.f32 %v4061_v0  ;;  %5574 = vmatmul.mubr.msk.f32.vlgmr.msra.gmra.mrb[60].mxu0 %vm1524_vm0, %v4356_v30  ;;  %v4358_v19 = vmul.f32 %v4326_v5, %v4294_v60 }
 0x583   : > { %v6434_v15 = vpop.eup %6433  ;;  %v4357_v29 = vmul.f32 %v4325_v28, %v4293_v6  ;;  %v4263_v31 = vsub.f32 2.0, %v4231_v52  ;;  %v4109_v17 = vadd.f32 2.0, %v6432_v33  ;;  %6443 = vpow2.f32 %v4059_v38 }
 0x584   : > { %v6436_v27 = vpop.eup %6435  ;;  %v4296_v63 = vmul.f32 %v6426_v50, %v4264_v58  ;;  %v4234_v47 = vmul.f32 %v6434_v15, %v8995_v8  ;;  %v9027_v41 = vmul.f32 %v6430_v9, %v4110_v54  ;;  %v5532_v26 = vpop.f32.mrb[82].mxu1  ;;  %v4330_v35 = vmul.f32 %v8990_v36, %v8961_v13 }
 0x585   : > { %v4295_v46 = vmul.f32 %v6428_v59, %v4263_v31  ;;  %v4233_v18 = vmul.f32 %v6436_v27, %v8998_v51  ;;  %v9030_v45 = vmul.f32 %v6432_v33, %v4109_v17  ;;  %5576 = vmatprep.mubr.msk.f32.mxu0 %vm1524_vm0, %v4357_v29  ;;  %v3905_v2 = vpop.f32.mrb[83].mxu1  ;;  %v9037_v51 = vadd.f32 %v5532_v26, %v8934_v34 }
 0x586   : > { %v4266_v62 = vsub.f32 2.0, %v4234_v47  ;;  %v4174_v7 = vadd.f32 2.0, %v9027_v41  ;;  %5577 = vmatmul.mubr.msk.f32.gmra.mrb[62].mxu0 %vm1524_vm0, %v4358_v19  ;;  %v4360_v37 = vmul.f32 %v4328_v16, %v4296_v63  ;;  %v9040_v56 = vadd.f32 %v8934_v34, %v3905_v2 }
 0x587   : > { %v4359_v53 = vmul.f32 %v4327_v23, %v4295_v46  ;;  %v4265_v8 = vsub.f32 2.0, %v4233_v18  ;;  %v4173_v5 = vadd.f32 2.0, %v9030_v45  ;;  %v4018_v25 = vmin.f32 %v9037_v51, 20.0 }
 0x588   : > { %v4298_v10 = vmul.f32 %v6434_v15, %v4266_v62  ;;  %6445 = vrcp.f32 %v4174_v7  ;;  %v4017_v42 = vmin.f32 %v9040_v56, 20.0  ;;  %v4331_v52 = vmul.f32 %v9013_v55, %v8972_v32 }
 0x589   : > { %v4297_v43 = vmul.f32 %v6436_v27, %v4265_v8  ;;  %6447 = vrcp.f32 %v4173_v5  ;;  %5579 = vmatprep.mubr.msk.f32.mxu0 %vm1524_vm0, %v4359_v53  ;;  %v4065_v4 = vmul.f32 1.442695, %v4018_v25  ;;  %v4332_v58 = vmul.f32 %v9008_v20, %v8969_v48 }
 0x58a   : > { %v6438_v14 = vpop.eup %6437  ;;  %5580 = vmatmul.mubr.msk.f32.gmra.mrb[64].mxu0 %vm1524_vm0, %v4360_v37  ;;  %v4362_v30 = vmul.f32 %v4330_v35, %v4298_v10  ;;  %v4063_v57 = vmul.f32 1.442695, %v4017_v42  ;;  %v4333_v53 = vmul.f32 %v9030_v45, %v8985_v21  ;;  %v4334_v10 = vmul.f32 %v9027_v41, %v8980_v61 }
 0x58b   : > { %v6440_v1 = vpop.eup %6439  ;;  %v4361_v28 = vmul.f32 %v4329_v22, %v4297_v43  ;;  %v4236_v16 = vmul.f32 %v6438_v14, %v4172_v3  ;;  %6449 = vpow2.f32 %v4065_v4 }
 0x58c   : > { %v6442_v50 = vpop.eup %6441  ;;  %v4235_v12 = vmul.f32 %v6440_v1, %v4171_v11  ;;  %6451 = vpow2.f32 %v4063_v57 }
 0x58d   : > { %v4268_v40 = vsub.f32 2.0, %v4236_v16  ;;  %v4112_v59 = vadd.f32 2.0, %v6442_v50  ;;  %v5535_v60 = vpop.f32.mrb[84].mxu1  ;;  %5582 = vmatprep.mubr.msk.f32.mxu0 %vm1524_vm0, %v4361_v28  ;;  %v6444_v0 = vpop.eup %6443 }
 0x58e   : > { %v4267_v13 = vsub.f32 2.0, %v4235_v12  ;;  %v9052_v36 = vadd.f32 %v5535_v60, %v8934_v34  ;;  %v3915_v24 = vpop.f32.mrb[85].mxu1  ;;  %5583 = vmatmul.mubr.msk.f32.gmra.mrb[66].mxu0 %vm1524_vm0, %v4362_v30  ;;  %v4111_v44 = vadd.f32 2.0, %v6444_v0 }
 0x58f   : > { %v4300_v3 = vmul.f32 %v6438_v14, %v4268_v40  ;;  %v9055_v9 = vmul.f32 %v6442_v50, %v4112_v59  ;;  %v9058_v11 = vadd.f32 %v8934_v34, %v3915_v24 }
 0x590   : > { %v4299_v6 = vmul.f32 %v6440_v1, %v4267_v13  ;;  %v4020_v33 = vmin.f32 %v9052_v36, 20.0  ;;  %v9067_v31 = vmul.f32 %v6444_v0, %v4111_v44 }
 0x591   : > { %v4176_v23 = vadd.f32 2.0, %v9055_v9  ;;  %v4019_v54 = vmin.f32 %v9058_v11, 20.0  ;;  %v4364_v27 = vmul.f32 %v4332_v58, %v4300_v3 }
 0x592   : > { %v6446_v15 = vpop.eup %6445  ;;  %v4363_v29 = vmul.f32 %v4331_v52, %v4299_v6  ;;  %v4069_v17 = vmul.f32 1.442695, %v4020_v33  ;;  %v4175_v63 = vadd.f32 2.0, %v9067_v31 }
 0x593   : > { %v6448_v38 = vpop.eup %6447  ;;  %v4238_v19 = vmul.f32 %v6446_v15, %v4174_v7  ;;  %6453 = vrcp.f32 %v4176_v23  ;;  %v4067_v32 = vmul.f32 1.442695, %v4019_v54 }
 0x594   : > { %v4237_v55 = vmul.f32 %v6448_v38, %v4173_v5  ;;  %6455 = vpow2.f32 %v4069_v17  ;;  %v5538_v47 = vpop.f32.mrb[86].mxu1  ;;  %5585 = vmatprep.mubr.msk.f32.mxu0 %vm1524_vm0, %v4363_v29 }
 0x595   : > { %v4270_v48 = vsub.f32 2.0, %v4238_v19  ;;  %6457 = vpow2.f32 %v4067_v32  ;;  %v9072_v20 = vadd.f32 %v5538_v47, %v8934_v34  ;;  %v3925_v46 = vpop.f32.mrb[87].mxu1  ;;  %5586 = vmatmul.mubr.msk.f32.gmra.mrb[68].mxu0 %vm1524_vm0, %v4364_v27  ;;  %v6450_v2 = vpop.eup %6449 }
 0x596   : > { %v4269_v18 = vsub.f32 2.0, %v4237_v55  ;;  %6459 = vrcp.f32 %v4175_v63  ;;  %v9076_v26 = vadd.f32 %v8934_v34, %v3925_v46  ;;  %v6452_v5 = vpop.eup %6451  ;;  %v4114_v43 = vadd.f32 2.0, %v6450_v2 }
 0x597   : > { %v4302_v62 = vmul.f32 %v6446_v15, %v4270_v48  ;;  %v4022_v7 = vmin.f32 %v9072_v20, 20.0  ;;  %v4113_v25 = vadd.f32 2.0, %v6452_v5 }
 0x598   : > { %v4301_v37 = vmul.f32 %v6448_v38, %v4269_v18  ;;  %v4021_v8 = vmin.f32 %v9076_v26, 20.0  ;;  %v5541_v14 = vpop.f32.mrb[88].mxu1  ;;  %v9087_v50 = vmul.f32 %v6450_v2, %v4114_v43 }
 0x599   : > { %v4073_v22 = vmul.f32 1.442695, %v4022_v7  ;;  %v9085_v1 = vadd.f32 %v5541_v14, %v8934_v34  ;;  %v3935_v28 = vpop.f32.mrb[89].mxu1  ;;  %v4366_v16 = vmul.f32 %v4334_v10, %v4302_v62  ;;  %v9092_v45 = vmul.f32 %v6452_v5, %v4113_v25 }
 0x59a   : > { %v4365_v35 = vmul.f32 %v4333_v53, %v4301_v37  ;;  %v4071_v42 = vmul.f32 1.442695, %v4021_v8  ;;  %v9090_v21 = vadd.f32 %v8934_v34, %v3935_v28  ;;  %v4178_v30 = vadd.f32 2.0, %v9087_v50 }
 0x59b   : > { %6461 = vpow2.f32 %v4073_v22  ;;  %v4024_v61 = vmin.f32 %v9085_v1, 20.0  ;;  %v4177_v59 = vadd.f32 2.0, %v9092_v45  ;;  %v4336_v53 = vmul.f32 %v9055_v9, %v9006_v39 }
 0x59c   : > { %6463 = vpow2.f32 %v4071_v42  ;;  %5588 = vmatprep.mubr.msk.f32.mxu0 %vm1524_vm0, %v4365_v35  ;;  %v4023_v12 = vmin.f32 %v9090_v21, 20.0  ;;  %v5544_v4 = vpop.f32.mrb[90].mxu1 }
 0x59d   : > { %v6454_v41 = vpop.eup %6453  ;;  %5589 = vmatmul.mubr.msk.f32.gmra.mrb[70].mxu0 %vm1524_vm0, %v4366_v16  ;;  %v4077_v60 = vmul.f32 1.442695, %v4024_v61  ;;  %v3945_v13 = vpop.f32.mrb[91].mxu1  ;;  %6465 = vrcp.f32 %v4178_v30  ;;  %v9101_v6 = vadd.f32 %v5544_v4, %v8934_v34 }
 0x59e   : > { %v6456_v57 = vpop.eup %6455  ;;  %v4240_v40 = vmul.f32 %v6454_v41, %v4176_v23  ;;  %v4075_v3 = vmul.f32 1.442695, %v4023_v12  ;;  %6467 = vrcp.f32 %v4177_v59  ;;  %v9104_v58 = vadd.f32 %v8934_v34, %v3945_v13 }
 0x59f   : > { %v6458_v24 = vpop.eup %6457  ;;  %v4116_v0 = vadd.f32 2.0, %v6456_v57  ;;  %6469 = vpow2.f32 %v4077_v60  ;;  %v4026_v15 = vmin.f32 %v9101_v6, 20.0 }
 0x5a0   : > { %v6460_v52 = vpop.eup %6459  ;;  %v4272_v44 = vsub.f32 2.0, %v4240_v40  ;;  %v4115_v33 = vadd.f32 2.0, %v6458_v24  ;;  %6471 = vpow2.f32 %v4075_v3  ;;  %v4025_v17 = vmin.f32 %v9104_v58, 20.0 }
 0x5a1   : > { %v4239_v54 = vmul.f32 %v6460_v52, %v4175_v63  ;;  %v9106_v23 = vmul.f32 %v6456_v57, %v4116_v0  ;;  %v5547_v38 = vpop.f32.mrb[92].mxu1  ;;  %v4081_v32 = vmul.f32 1.442695, %v4026_v15  ;;  %v4335_v63 = vmul.f32 %v9067_v31, %v9011_v49 }
 0x5a2   : > { %v9109_v29 = vmul.f32 %v6458_v24, %v4115_v33  ;;  %v3955_v55 = vpop.f32.mrb[93].mxu1  ;;  %v4304_v47 = vmul.f32 %v6454_v41, %v4272_v44  ;;  %v4079_v46 = vmul.f32 1.442695, %v4025_v17  ;;  %v9117_v7 = vadd.f32 %v5547_v38, %v8934_v34 }
 0x5a3   : > { %v4271_v27 = vsub.f32 2.0, %v4239_v54  ;;  %v4180_v19 = vadd.f32 2.0, %v9106_v23  ;;  %v9120_v2 = vadd.f32 %v8934_v34, %v3955_v55  ;;  %v4338_v57 = vmul.f32 %v9087_v50, %v9037_v51 }
 0x5a4   : > { %v4179_v48 = vadd.f32 2.0, %v9109_v29  ;;  %v4028_v31 = vmin.f32 %v9117_v7, 20.0  ;;  %v4368_v10 = vmul.f32 %v4336_v53, %v4304_v47  ;;  %v4337_v3 = vmul.f32 %v9092_v45, %v9040_v56 }
 0x5a5   : > { %v6462_v18 = vpop.eup %6461  ;;  %v4303_v62 = vmul.f32 %v6460_v52, %v4271_v27  ;;  %6473 = vrcp.f32 %v4180_v19  ;;  %v4027_v22 = vmin.f32 %v9120_v2, 20.0 }
 0x5a6   : > { %v6464_v37 = vpop.eup %6463  ;;  %6475 = vrcp.f32 %v4179_v48  ;;  %v4118_v8 = vadd.f32 2.0, %v6462_v18  ;;  %v4085_v25 = vmul.f32 1.442695, %v4028_v31 }
 0x5a7   : > { %v4367_v5 = vmul.f32 %v4335_v63, %v4303_v62  ;;  %v4117_v49 = vadd.f32 2.0, %v6464_v37  ;;  %6477 = vpow2.f32 %v4081_v32  ;;  %v6466_v14 = vpop.eup %6465  ;;  %v4083_v28 = vmul.f32 1.442695, %v4027_v22 }
 0x5a8   : > { %v9125_v43 = vmul.f32 %v6462_v18, %v4118_v8  ;;  %6479 = vpow2.f32 %v4079_v46  ;;  %v6468_v39 = vpop.eup %6467  ;;  %v4242_v9 = vmul.f32 %v6466_v14, %v4178_v30 }
 0x5a9   : > { %v9128_v35 = vmul.f32 %v6464_v37, %v4117_v49  ;;  %5591 = vmatprep.mubr.msk.f32.mxu0 %vm1524_vm0, %v4367_v5  ;;  %v6470_v16 = vpop.eup %6469  ;;  %v4241_v61 = vmul.f32 %v6468_v39, %v4177_v59  ;;  %6481 = vpow2.f32 %v4085_v25 }
 0x5aa   : > { %v9132_v42 = vadd.f32 2.0, %v9125_v43  ;;  %5592 = vmatmul.mubr.msk.f32.gmra.mrb[72].mxu0 %vm1524_vm0, %v4368_v10  ;;  %v6472_v12 = vpop.eup %6471  ;;  %v4274_v4 = vsub.f32 2.0, %v4242_v9  ;;  %v4120_v30 = vadd.f32 2.0, %v6470_v16  ;;  %v4339_v10 = vmul.f32 %v9109_v29, %v9058_v11 }
 0x5ab   : > { %v9136_v41 = vadd.f32 2.0, %v9128_v35  ;;  %v5550_v40 = vpop.f32.mrb[94].mxu1  ;;  %v4273_v60 = vsub.f32 2.0, %v4241_v61  ;;  %v4119_v13 = vadd.f32 2.0, %v6472_v12 }
 0x5ac   : > { %6483 = vrcp.f32 %v9132_v42  ;;  %v9143_v24 = vadd.f32 %v5550_v40, %v8934_v34  ;;  %v3965_v59 = vpop.f32.mrb[95].mxu1  ;;  %v4306_v0 = vmul.f32 %v6466_v14, %v4274_v4  ;;  %v9147_v52 = vmul.f32 %v6470_v16, %v4120_v30 }
 0x5ad   : > { %6485 = vrcp.f32 %v9136_v41  ;;  %v4305_v50 = vmul.f32 %v6468_v39, %v4273_v60  ;;  %v9149_v44 = vmul.f32 %v6472_v12, %v4119_v13  ;;  %v9153_v54 = vadd.f32 %v8934_v34, %v3965_v59 }
 0x5ae   : > { %6487 = vpow2.f32 %v4083_v28  ;;  %v4030_v33 = vmin.f32 %v9143_v24, 20.0  ;;  %v9156_v38 = vadd.f32 2.0, %v9147_v52  ;;  %v4370_v32 = vmul.f32 %v4338_v57, %v4306_v0 }
 0x5af   : > { %v6474_v51 = vpop.eup %6473  ;;  %v4369_v56 = vmul.f32 %v4337_v3, %v4305_v50  ;;  %v9159_v55 = vadd.f32 2.0, %v9149_v44  ;;  %v4029_v37 = vmin.f32 %v9153_v54, 20.0 }
 0x5b0   : > { %v6476_v15 = vpop.eup %6475  ;;  %v4244_v17 = vmul.f32 %v6474_v51, %v4180_v19  ;;  %6489 = vrcp.f32 %v9156_v38  ;;  %v4089_v18 = vmul.f32 1.442695, %v4030_v33 }
 0x5b1   : > { %v6478_v27 = vpop.eup %6477  ;;  %v4243_v45 = vmul.f32 %v6476_v15, %v4179_v48  ;;  %6491 = vrcp.f32 %v9159_v55  ;;  %5594 = vmatprep.mubr.msk.f32.mxu0 %vm1524_vm0, %v4369_v56  ;;  %v4340_v48 = vmul.f32 %v9106_v23, %v9052_v36  ;;  %v4342_v36 = vmul.f32 %v9125_v43, %v9072_v20 }
 0x5b2   : > { %v6480_v47 = vpop.eup %6479  ;;  %v4276_v63 = vsub.f32 2.0, %v4244_v17  ;;  %v4122_v46 = vadd.f32 2.0, %v6478_v27  ;;  %6493 = vpow2.f32 %v4089_v18  ;;  %5595 = vmatmul.mubr.msk.f32.gmra.mrb[74].mxu0 %vm1524_vm0, %v4370_v32  ;;  %v4087_v28 = vmul.f32 1.442695, %v4029_v37 }
 0x5b3   : > { %v4275_v62 = vsub.f32 2.0, %v4243_v45  ;;  %v4121_v19 = vadd.f32 2.0, %v6480_v47  ;;  %v5553_v5 = vpop.f32.mrb[96].mxu1  ;;  %v6482_v49 = vpop.eup %6481 }
 0x5b4   : > { %v4308_v53 = vmul.f32 %v6474_v51, %v4276_v63  ;;  %v9167_v8 = vmul.f32 %v6478_v27, %v4122_v46  ;;  %v9175_v14 = vadd.f32 %v5553_v5, %v8934_v34  ;;  %v3975_v25 = vpop.f32.mrb[97].mxu1  ;;  %v4124_v9 = vadd.f32 2.0, %v6482_v49 }
 0x5b5   : > { %v4307_v31 = vmul.f32 %v6476_v15, %v4275_v62  ;;  %v9172_v22 = vmul.f32 %v6480_v47, %v4121_v19  ;;  %v9187_v60 = vadd.f32 %v8934_v34, %v3975_v25 }
 0x5b6   : > { %v6484_v39 = vpop.eup %6483  ;;  %v4186_v23 = vadd.f32 2.0, %v9167_v8  ;;  %v4372_v61 = vmul.f32 %v4340_v48, %v4308_v53  ;;  %v9183_v30 = vmul.f32 %v6482_v49, %v4124_v9  ;;  %v4032_v40 = vmin.f32 %v9175_v14, 20.0 }
 0x5b7   : > { %v6486_v16 = vpop.eup %6485  ;;  %v4371_v12 = vmul.f32 %v4339_v10, %v4307_v31  ;;  %v4246_v4 = vmul.f32 %v6484_v39, %v9132_v42  ;;  %v4185_v11 = vadd.f32 2.0, %v9172_v22  ;;  %v4341_v42 = vmul.f32 %v9128_v35, %v9076_v26 }
 0x5b8   : > { %v6488_v29 = vpop.eup %6487  ;;  %v4245_v57 = vmul.f32 %v6486_v16, %v9136_v41  ;;  %6495 = vrcp.f32 %v4186_v23  ;;  %v4188_v59 = vadd.f32 2.0, %v9183_v30  ;;  %v5556_v41 = vpop.f32.mrb[98].mxu1  ;;  %v4093_v51 = vmul.f32 1.442695, %v4032_v40 }
 0x5b9   : > { %v4278_v20 = vsub.f32 2.0, %v4246_v4  ;;  %6497 = vrcp.f32 %v4185_v11  ;;  %v4123_v43 = vadd.f32 2.0, %v6488_v29  ;;  %5597 = vmatprep.mubr.msk.f32.mxu0 %vm1524_vm0, %v4371_v12  ;;  %v4031_v50 = vmin.f32 %v9187_v60, 20.0  ;;  %v3985_v33 = vpop.f32.mrb[99].mxu1 }
 0x5ba   : > { %v4277_v13 = vsub.f32 2.0, %v4245_v57  ;;  %6499 = vpow2.f32 %v4087_v28  ;;  %5598 = vmatmul.mubr.msk.f32.gmra.mrb[76].mxu0 %vm1524_vm0, %v4372_v61  ;;  %v6490_v15 = vpop.eup %6489  ;;  %v9198_v27 = vadd.f32 %v5556_v41, %v8934_v34  ;;  %v9201_v26 = vadd.f32 %v8934_v34, %v3985_v33 }
 0x5bb   : > { %v4310_v0 = vmul.f32 %v6484_v39, %v4278_v20  ;;  %v9194_v3 = vmul.f32 %v6488_v29, %v4123_v43  ;;  %6501 = vrcp.f32 %v4188_v59  ;;  %v6492_v35 = vpop.eup %6491  ;;  %v4248_v56 = vmul.f32 %v6490_v15, %v9156_v38 }
 0x5bc   : > { %v4309_v17 = vmul.f32 %v6486_v16, %v4277_v13  ;;  %v6494_v47 = vpop.eup %6493  ;;  %v4247_v46 = vmul.f32 %v6492_v35, %v9159_v55  ;;  %6503 = vpow2.f32 %v4093_v51  ;;  %v4091_v18 = vmul.f32 1.442695, %v4031_v50 }
 0x5bd   : > { %v4374_v32 = vmul.f32 %v4342_v36, %v4310_v0  ;;  %v4187_v45 = vadd.f32 2.0, %v9194_v3  ;;  %v4280_v62 = vsub.f32 2.0, %v4248_v56  ;;  %v4126_v19 = vadd.f32 2.0, %v6494_v47 }
 0x5be   : > { %v4373_v63 = vmul.f32 %v4341_v42, %v4309_v17  ;;  %v4034_v37 = vmin.f32 %v9198_v27, 20.0  ;;  %v4279_v53 = vsub.f32 2.0, %v4247_v46  ;;  %v4033_v34 = vmin.f32 %v9201_v26, 20.0 }
 0x5bf   : > { %6505 = vrcp.f32 %v4187_v45  ;;  %v4312_v38 = vmul.f32 %v6490_v15, %v4280_v62  ;;  %v9209_v48 = vmul.f32 %v6494_v47, %v4126_v19  ;;  %v4343_v31 = vmul.f32 %v9149_v44, %v9090_v21 }
 0x5c0   : > { %6507 = vpow2.f32 %v4091_v18  ;;  %5600 = vmatprep.mubr.msk.f32.mxu0 %vm1524_vm0, %v4373_v63  ;;  %v4097_v5 = vmul.f32 1.442695, %v4034_v37  ;;  %v4311_v49 = vmul.f32 %v6492_v35, %v4279_v53  ;;  %v4095_v10 = vmul.f32 1.442695, %v4033_v34 }
 0x5c1   : > { %5601 = vmatmul.mubr.msk.f32.gmra.mrb[78].mxu0 %vm1524_vm0, %v4374_v32  ;;  %v4344_v39 = vmul.f32 %v9147_v52, %v9085_v1  ;;  %v4190_v9 = vadd.f32 2.0, %v9209_v48  ;;  %v4346_v43 = vmul.f32 %v9167_v8, %v9101_v6  ;;  %v4348_v6 = vmul.f32 %v9183_v30, %v9117_v7 }
 0x5c2   : > { %v6496_v55 = vpop.eup %6495  ;;  %v4375_v16 = vmul.f32 %v4343_v31, %v4311_v49  ;;  %6509 = vpow2.f32 %v4097_v5 }
 0x5c3   : > { %v6498_v25 = vpop.eup %6497  ;;  %v4250_v36 = vmul.f32 %v6496_v55, %v4186_v23  ;;  %v4376_v12 = vmul.f32 %v4344_v39, %v4312_v38  ;;  %6511 = vrcp.f32 %v4190_v9  ;;  %v4345_v23 = vmul.f32 %v9172_v22, %v9104_v58 }
 0x5c4   : > { %v6500_v28 = vpop.eup %6499  ;;  %v4249_v61 = vmul.f32 %v6498_v25, %v4185_v11  ;;  %6513 = vpow2.f32 %v4095_v10  ;;  %5603 = vmatprep.mubr.msk.f32.mxu0 %vm1524_vm0, %v4375_v16  ;;  %v4347_v22 = vmul.f32 %v9194_v3, %v9120_v2  ;;  %v4350_v39 = vmul.f32 %v9209_v48, %v9143_v24 }
 0x5c5   : > { %v4282_v4 = vsub.f32 2.0, %v4250_v36  ;;  %v4125_v29 = vadd.f32 2.0, %v6500_v28  ;;  %v6502_v57 = vpop.eup %6501  ;;  %5604 = vmatmul.mubr.msk.f32.gmra.mrb[80].mxu0 %vm1524_vm0, %v4376_v12 }
 0x5c6   : > { %v4281_v40 = vsub.f32 2.0, %v4249_v61  ;;  %v4252_v44 = vmul.f32 %v6502_v57, %v4188_v59  ;;  %v6504_v1 = vpop.eup %6503 }
 0x5c7   : > { %v4314_v21 = vmul.f32 %v6496_v55, %v4282_v4  ;;  %v4157_v20 = vmul.f32 %v6500_v28, %v4125_v29  ;;  %v4128_v50 = vadd.f32 2.0, %v6504_v1 }
 0x5c8   : > { %v4313_v52 = vmul.f32 %v6498_v25, %v4281_v40  ;;  %v4284_v13 = vsub.f32 2.0, %v4252_v44 }
 0x5c9   : > { %v6506_v11 = vpop.eup %6505  ;;  %v4189_v42 = vadd.f32 2.0, %v4157_v20  ;;  %v4378_v33 = vmul.f32 %v4346_v43, %v4314_v21  ;;  %v4160_v35 = vmul.f32 %v6504_v1, %v4128_v50  ;;  %v4349_v10 = vmul.f32 %v4157_v20, %v9153_v54 }
 0x5ca   : > { %v6508_v41 = vpop.eup %6507  ;;  %v4377_v0 = vmul.f32 %v4345_v23, %v4313_v52  ;;  %v4251_v51 = vmul.f32 %v6506_v11, %v4187_v45  ;;  %v4316_v15 = vmul.f32 %v6502_v57, %v4284_v13 }
 0x5cb   : > { %6515 = vrcp.f32 %v4189_v42  ;;  %v4127_v59 = vadd.f32 2.0, %v6508_v41  ;;  %v4192_v56 = vadd.f32 2.0, %v4160_v35  ;;  %v4352_v44 = vmul.f32 %v4160_v35, %v9175_v14  ;;  %v9247_v14 = vld [vmem:[%s9380_s12] ss:$0 sm:$0xff] }
 0x5cc   : > { %v4283_v17 = vsub.f32 2.0, %v4251_v51  ;;  %5606 = vmatprep.mubr.msk.f32.mxu0 %vm1524_vm0, %v4377_v0  ;;  %v6510_v58 = vpop.eup %6509  ;;  %v4380_v18 = vmul.f32 %v4348_v6, %v4316_v15 }
 0x5cd   : > { %v4159_v32 = vmul.f32 %v6508_v41, %v4127_v59  ;;  %5607 = vmatmul.mubr.msk.f32.gmra.mrb[82].mxu0 %vm1524_vm0, %v4378_v33  ;;  %v6512_v45 = vpop.eup %6511  ;;  %v4130_v63 = vadd.f32 2.0, %v6510_v58  ;;  %6517 = vrcp.f32 %v4192_v56 }
 0x5ce   : > { %v4315_v8 = vmul.f32 %v6506_v11, %v4283_v17  ;;  %v6514_v46 = vpop.eup %6513  ;;  %v4254_v19 = vmul.f32 %v6512_v45, %v4190_v9 }
 0x5cf   : > { %v4191_v47 = vadd.f32 2.0, %v4159_v32  ;;  %v4162_v37 = vmul.f32 %v6510_v58, %v4130_v63  ;;  %v4129_v53 = vadd.f32 2.0, %v6514_v46  ;;  %v4351_v40 = vmul.f32 %v4159_v32, %v9187_v60 }
 0x5d0   : > { %v4379_v62 = vmul.f32 %v4347_v22, %v4315_v8  ;;  %v4286_v2 = vsub.f32 2.0, %v4254_v19 }
 0x5d1   : > { %6519 = vrcp.f32 %v4191_v47  ;;  %v4194_v34 = vadd.f32 2.0, %v4162_v37  ;;  %v4161_v7 = vmul.f32 %v6514_v46, %v4129_v53  ;;  %v4354_v60 = vmul.f32 %v4162_v37, %v9198_v27 }
 0x5d2   : > { %5609 = vmatprep.mubr.msk.f32.mxu0 %vm1524_vm0, %v4379_v62  ;;  %v4318_v55 = vmul.f32 %v6512_v45, %v4286_v2 }
 0x5d3   : > { %5610 = vmatmul.mubr.msk.f32.gmra.mrb[84].mxu0 %vm1524_vm0, %v4380_v18  ;;  %6521 = vrcp.f32 %v4194_v34  ;;  %v4193_v3 = vadd.f32 2.0, %v4161_v7  ;;  %v4353_v43 = vmul.f32 %v4161_v7, %v9201_v26 }
 0x5d4   : > { %v4382_v16 = vmul.f32 %v4350_v39, %v4318_v55 }
 0x5d5   : > { %v6516_v30 = vpop.eup %6515  ;;  %6523 = vrcp.f32 %v4193_v3 }
 0x5d6   : > { %v4253_v38 = vmul.f32 %v6516_v30, %v4189_v42 }
 0x5d7   : > { %v6518_v49 = vpop.eup %6517 }
 0x5d8   : > { %v4285_v5 = vsub.f32 2.0, %v4253_v38  ;;  %v4256_v36 = vmul.f32 %v6518_v49, %v4192_v56 }
 0x5da   : > { %v4317_v31 = vmul.f32 %v6516_v30, %v4285_v5  ;;  %v4288_v61 = vsub.f32 2.0, %v4256_v36 }
 0x5db   : > { %v6520_v25 = vpop.eup %6519 }
 0x5dc   : > { %v4381_v9 = vmul.f32 %v4349_v10, %v4317_v31  ;;  %v4255_v28 = vmul.f32 %v6520_v25, %v4191_v47  ;;  %v4320_v29 = vmul.f32 %v6518_v49, %v4288_v61 }
 0x5dd   : > { %v6522_v4 = vpop.eup %6521 }
 0x5de   : > { %v4287_v12 = vsub.f32 2.0, %v4255_v28  ;;  %5612 = vmatprep.mubr.msk.f32.mxu0 %vm1524_vm0, %v4381_v9  ;;  %v4258_v54 = vmul.f32 %v6522_v4, %v4194_v34  ;;  %v4384_v1 = vmul.f32 %v4352_v44, %v4320_v29 }
 0x5df   : > { %5613 = vmatmul.mubr.msk.f32.gmra.mrb[86].mxu0 %vm1524_vm0, %v4382_v16  ;;  %v6524_v21 = vpop.eup %6523 }
 0x5e0   : > { %v4319_v57 = vmul.f32 %v6520_v25, %v4287_v12  ;;  %v4290_v48 = vsub.f32 2.0, %v4258_v54  ;;  %v4257_v20 = vmul.f32 %v6524_v21, %v4193_v3 }
 0x5e2   : > { %v4383_v24 = vmul.f32 %v4351_v40, %v4319_v57  ;;  %v4289_v52 = vsub.f32 2.0, %v4257_v20  ;;  %v4322_v23 = vmul.f32 %v6522_v4, %v4290_v48 }
 0x5e4   : > { %5615 = vmatprep.mubr.msk.f32.mxu0 %vm1524_vm0, %v4383_v24  ;;  %v4321_v11 = vmul.f32 %v6524_v21, %v4289_v52  ;;  %v4386_v42 = vmul.f32 %v4354_v60, %v4322_v23 }
 0x5e5   : > { %5616 = vmatmul.mubr.msk.f32.gmra.mrb[88].mxu0 %vm1524_vm0, %v4384_v1 }
 0x5e6   : > { %v4385_v13 = vmul.f32 %v4353_v43, %v4321_v11 }
 0x5e8   : > { %5618 = vmatprep.mubr.msk.f32.mxu0 %vm1524_vm0, %v4385_v13 }
 0x5e9   : > { %5619 = vmatmul.mubr.msk.f32.gmra.mrb[90].mxu0 %vm1524_vm0, %v4386_v42 }
 0x655   : > { %v5575_v41 = vpop.f32.mrb[60].mxu0 }
 0x656   : > { %v4561_v0 = vadd.f32 %v5575_v41, %v9247_v14  ;;  %v4555_v51 = vpop.f32.mrb[61].mxu0 }
 0x657   : > { %v4556_v50 = vadd.f32 %v9247_v14, %v4555_v51 }
 0x658   : > { %4715 = vst [vmem:[%s9253_s27 + $0x8] sm:$0xff] %v4561_v0 }
 0x659   : > { %4714 = vst [vmem:[%s9253_s27] sm:$0xff] %v4556_v50  ;;  %v5578_v27 = vpop.f32.mrb[62].mxu0 }
 0x65a   : > { %v4571_v26 = vadd.f32 %v5578_v27, %v9247_v14  ;;  %v4565_v33 = vpop.f32.mrb[63].mxu0 }
 0x65b   : > { %v4566_v59 = vadd.f32 %v9247_v14, %v4565_v33 }
 0x65c   : > { %4717 = vst [vmem:[%s9253_s27 + $0x18] sm:$0xff] %v4571_v26 }
 0x65d   : > { %4716 = vst [vmem:[%s9253_s27 + $0x10] sm:$0xff] %v4566_v59  ;;  %v5581_v15 = vpop.f32.mrb[64].mxu0 }
 0x65e   : > { %v4581_v17 = vadd.f32 %v5581_v15, %v9247_v14  ;;  %v4575_v35 = vpop.f32.mrb[65].mxu0 }
 0x65f   : > { %v4576_v32 = vadd.f32 %v9247_v14, %v4575_v35 }
 0x660   : > { %4719 = vst [vmem:[%s9253_s27 + $0x28] sm:$0xff] %v4581_v17 }
 0x661   : > { %4718 = vst [vmem:[%s9253_s27 + $0x20] sm:$0xff] %v4576_v32  ;;  %v5584_v58 = vpop.f32.mrb[66].mxu0 }
 0x662   : > { %v4591_v6 = vadd.f32 %v5584_v58, %v9247_v14  ;;  %v4585_v8 = vpop.f32.mrb[67].mxu0 }
 0x663   : > { %v4586_v22 = vadd.f32 %v9247_v14, %v4585_v8 }
 0x664   : > { %4721 = vst [vmem:[%s9253_s27 + $0x38] sm:$0xff] %v4591_v6 }
 0x665   : > { %4720 = vst [vmem:[%s9253_s27 + $0x30] sm:$0xff] %v4586_v22 }
 0x668   : > { %v5587_v56 = vpop.f32.mrb[68].mxu0 }
 0x669   : > { %v4601_v45 = vadd.f32 %v5587_v56, %v9247_v14  ;;  %v4595_v47 = vpop.f32.mrb[69].mxu0 }
 0x66a   : > { %v4596_v63 = vadd.f32 %v9247_v14, %v4595_v47 }
 0x66b   : > { %4723 = vst [vmem:[%s9253_s27 + $0x48] sm:$0xff] %v4601_v45 }
 0x66c   : > { %4722 = vst [vmem:[%s9253_s27 + $0x40] sm:$0xff] %v4596_v63 }
 0x670   : > { %v5590_v46 = vpop.f32.mrb[70].mxu0 }
 0x671   : > { %v4611_v18 = vadd.f32 %v5590_v46, %v9247_v14  ;;  %v4605_v62 = vpop.f32.mrb[71].mxu0 }
 0x672   : > { %v4606_v19 = vadd.f32 %v9247_v14, %v4605_v62 }
 0x673   : > { %4725 = vst [vmem:[%s9253_s27 + $0x58] sm:$0xff] %v4611_v18 }
 0x674   : > { %4724 = vst [vmem:[%s9253_s27 + $0x50] sm:$0xff] %v4606_v19 }
 0x67d   : > { %v5593_v37 = vpop.f32.mrb[72].mxu0 }
 0x67e   : > { %v4621_v53 = vadd.f32 %v5593_v37, %v9247_v14  ;;  %v4615_v34 = vpop.f32.mrb[73].mxu0 }
 0x67f   : > { %v4616_v7 = vadd.f32 %v9247_v14, %v4615_v34 }
 0x680   : > { %4727 = vst [vmem:[%s9253_s27 + $0x68] sm:$0xff] %v4621_v53 }
 0x681   : > { %4726 = vst [vmem:[%s9253_s27 + $0x60] sm:$0xff] %v4616_v7 }
 0x685   : > { %v5596_v30 = vpop.f32.mrb[74].mxu0 }
 0x686   : > { %v4631_v2 = vadd.f32 %v5596_v30, %v9247_v14  ;;  %v4625_v3 = vpop.f32.mrb[75].mxu0 }
 0x687   : > { %v4626_v38 = vadd.f32 %v9247_v14, %v4625_v3 }
 0x688   : > { %4729 = vst [vmem:[%s9253_s27 + $0x78] sm:$0xff] %v4631_v2 }
 0x689   : > { %4728 = vst [vmem:[%s9253_s27 + $0x70] sm:$0xff] %v4626_v38 }
 0x68d   : > { %v5599_v5 = vpop.f32.mrb[76].mxu0 }
 0x68e   : > { %v4641_v55 = vadd.f32 %v5599_v5, %v9247_v14  ;;  %v4635_v49 = vpop.f32.mrb[77].mxu0 }
 0x68f   : > { %v4636_v31 = vadd.f32 %v9247_v14, %v4635_v49 }
 0x690   : > { %4731 = vst [vmem:[%s9253_s27 + $0x88] sm:$0xff] %v4641_v55 }
 0x691   : > { %4730 = vst [vmem:[%s9253_s27 + $0x80] sm:$0xff] %v4636_v31 }
 0x694   : > { %v5602_v10 = vpop.f32.mrb[78].mxu0 }
 0x695   : > { %v4651_v25 = vadd.f32 %v5602_v10, %v9247_v14  ;;  %v4645_v39 = vpop.f32.mrb[79].mxu0 }
 0x696   : > { %v4646_v36 = vadd.f32 %v9247_v14, %v4645_v39 }
 0x697   : > { %4733 = vst [vmem:[%s9253_s27 + $0x98] sm:$0xff] %v4651_v25 }
 0x698   : > { %4732 = vst [vmem:[%s9253_s27 + $0x90] sm:$0xff] %v4646_v36  ;;  %v5605_v9 = vpop.f32.mrb[80].mxu0 }
 0x699   : > { %v4661_v28 = vadd.f32 %v5605_v9, %v9247_v14  ;;  %v4655_v16 = vpop.f32.mrb[81].mxu0 }
 0x69a   : > { %v4656_v61 = vadd.f32 %v9247_v14, %v4655_v16 }
 0x69b   : > { %4735 = vst [vmem:[%s9253_s27 + $0xa8] sm:$0xff] %v4661_v28 }
 0x69c   : > { %4734 = vst [vmem:[%s9253_s27 + $0xa0] sm:$0xff] %v4656_v61 }
 0x6a0   : > { %v5608_v12 = vpop.f32.mrb[82].mxu0 }
 0x6a1   : > { %v4671_v4 = vadd.f32 %v5608_v12, %v9247_v14  ;;  %v4665_v29 = vpop.f32.mrb[83].mxu0 }
 0x6a2   : > { %v4666_v57 = vadd.f32 %v9247_v14, %v4665_v29 }
 0x6a3   : > { %4737 = vst [vmem:[%s9253_s27 + $0xb8] sm:$0xff] %v4671_v4 }
 0x6a4   : > { %4736 = vst [vmem:[%s9253_s27 + $0xb0] sm:$0xff] %v4666_v57 }
 0x6a6   : > { %v5611_v40 = vpop.f32.mrb[84].mxu0 }
 0x6a7   : > { %v4681_v54 = vadd.f32 %v5611_v40, %v9247_v14  ;;  %v4675_v21 = vpop.f32.mrb[85].mxu0 }
 0x6a8   : > { %v4676_v44 = vadd.f32 %v9247_v14, %v4675_v21 }
 0x6a9   : > { %4739 = vst [vmem:[%s9253_s27 + $0xc8] sm:$0xff] %v4681_v54 }
 0x6aa   : > { %4738 = vst [vmem:[%s9253_s27 + $0xc0] sm:$0xff] %v4676_v44 }
 0x6b2   : > { %v5614_v24 = vpop.f32.mrb[86].mxu0 }
 0x6b3   : > { %v4691_v48 = vadd.f32 %v5614_v24, %v9247_v14  ;;  %v4685_v20 = vpop.f32.mrb[87].mxu0 }
 0x6b4   : > { %v4686_v1 = vadd.f32 %v9247_v14, %v4685_v20 }
 0x6b5   : > { %4741 = vst [vmem:[%s9253_s27 + $0xd8] sm:$0xff] %v4691_v48 }
 0x6b6   : > { %4740 = vst [vmem:[%s9253_s27 + $0xd0] sm:$0xff] %v4686_v1 }
 0x6b8   : > { %v5617_v52 = vpop.f32.mrb[88].mxu0 }
 0x6b9   : > { %v4701_v23 = vadd.f32 %v5617_v52, %v9247_v14  ;;  %v4695_v11 = vpop.f32.mrb[89].mxu0 }
 0x6ba   : > { %v4696_v43 = vadd.f32 %v9247_v14, %v4695_v11 }
 0x6bb   : > { %4743 = vst [vmem:[%s9253_s27 + $0xe8] sm:$0xff] %v4701_v23 }
 0x6bc   : > { %4742 = vst [vmem:[%s9253_s27 + $0xe0] sm:$0xff] %v4696_v43  ;;  %v5620_v60 = vpop.f32.mrb[90].mxu0 }
 0x6bd   : > { %v4711_v13 = vadd.f32 %v5620_v60, %v9247_v14  ;;  %v4705_v42 = vpop.f32.mrb[91].mxu0 }
 0x6be   : > { %v4706_v41 = vadd.f32 %v9247_v14, %v4705_v42 }
 0x6bf   : > { %4745 = vst [vmem:[%s9253_s27 + $0xf8] sm:$0xff] %v4711_v13 }
 0x6c0   : > { %4744 = vst [vmem:[%s9253_s27 + $0xf0] sm:$0xff] %v4706_v41 }
 0x6c1   : > { %6568 = shalt.err (!%p6565_p2)
}
 0x6c2   : > { %s6569_s25 = scalar_lea.hbm %s9319_s16, 4096  ;;  %s6573_s17 = scalar_lea.hbm %s9381_s13, 8192 }
 0x6c3   : > { %p6570_p4 = scmp.ne.s32.totalorder %s9319_s16, %s6569_s25  ;;  %p6574_p9 = scmp.lt.u32.totalorder %s9319_s16, %s9381_s13 }
 0x6c4   : > { %p6575_p1 = scmp.lt.u32.totalorder %s6573_s17, %s6569_s25  ;;  %p6577_p6 = scmp.lt.u32.totalorder %s6569_s25, %s9319_s16 }
 0x6c5   : > { %p6571_p5 = pnand %p6570_p4, %p9417_p11 }
 0x6c6   : > { %p6576_p3 = por %p6575_p1, %p6574_p9 }
 0x6c7   : > { %p6572_p7 = pneg %p6571_p5 }
 0x6c8   : > { %p6578_p12 = por %p6577_p6, %p6576_p3 }
 0x6ca   : > { %p6579_p13 = pnand %p6578_p12, %p6572_p7 }
 0x6cc   : > { %6582 = shalt.err (!%p6579_p13)
}
 0x6cd   : > { %s6627_s15 = smov 128   ;;  %s6628_s19 = smov 8  }
 0x6ce   : > { %5709 = dma.vmem_to_hbm [thread:$0]  (%p9417_p11), %s9321_s14, 4096, %s9319_s16, %s4747_s29, %s6627_s15, %s6627_s15, %s6628_s19  }
 0x6cf PF: > { %s9418_s23 = sld [smem:[#allocation8_spill]]  ;;  %p9419_p8 = scmp.ne.s32.totalorder %s9401_s21, 0 }
 0x6d0   : > { %p9420_p10 = scmp.ge.s32.totalorder %s6621_s28, 2 }
 0x6d2   : > { %p5716_p0 = pnand %p9420_p10, %p9419_p8 }
 0x6d5   : > { %s4775_s27 = sand.u32 1, %s9418_s23  }
 0x6d6   : > { %s4776_s25 = scalar_lea.sflag [#allocation4], %s4775_s27 }
 0x6d7   : > { %6604 = dma.done.wait (!%p5716_p0), %s4776_s25, 4096  }
 0x6d8   : > { %6606 = vsyncadd (!%p5716_p0), %s4776_s25, 4294963200  ;;  %s9421_s28 = sld [smem:[#allocation10_spill]]  ;;  %s9422_s18 = sld [smem:[#allocation9_spill]] }
 0x6d9   : > { %s9423_s27 = sld [smem:[#allocation11_spill]]  ;;  %s9424_s25 = smov %s6613_s26 }
 0x6de   : > { %p26_p2 = scmp.ge.s32.totalorder %s9421_s28, 4   ;;  %s9425_s26 = smov %s9422_s18 }
 0x6e0   :  { %28 = sbr.rel (!%p26_p2) target bundleno = 5 (0x5), region = 117 }
 0x6e7   :  { %4781 = vsyncpa [#allocation3], 1 }
 0x6e8   :  { %4783 = vsyncpa [#allocation3 + $0x1], 1 }
 0x6e9   :  { %4784 = vsyncpa [#allocation4], 1 }
 0x6ea   :  { %4786 = vsyncpa [#allocation4 + $0x1], 1 }

</bundles_post_ra>
